<compile_context>
chip_gen: v7x
topology: tpu7x:2x2x1
jax: 0.10.0
libtpu: 0.0.40
codegen_flags: <defaults>
</compile_context>

<pallas_src>
import functools

import jax
import jax.numpy as jnp
from jax.experimental import pallas as pl
from jax.experimental.pallas import tpu as pltpu


def _head_major(t, heads, dim_head):
    """(rows, heads*dim_head) -> (heads, rows, dim_head), once per tile."""
    rows = t.shape[0]
    t = t.reshape(rows, heads, dim_head)
    return pltpu.einshape("rhd->hrd", t)


# ---------------------------------------------------------------------------
# Kernel 1: K/V projection — runs once per (batch, kv-tile).
# ---------------------------------------------------------------------------
def _kv_projection_kernel(xc_ref, wk_ref, wv_ref, k_ref, v_ref, *, heads, dim_head):
    xc = xc_ref[0]                                                     # (tk, D) bf16
    k = jnp.dot(xc, wk_ref[...], preferred_element_type=jnp.float32)   # (tk, inner) f32
    v = jnp.dot(xc, wv_ref[...], preferred_element_type=jnp.float32)
    k_ref[0] = _head_major(k, heads, dim_head).astype(k_ref.dtype)     # (H, tk, Dh) bf16
    v_ref[0] = _head_major(v, heads, dim_head).astype(v_ref.dtype)


# ---------------------------------------------------------------------------
# Kernel 2: flash attention (+ fused Q projection and output projection).
# ---------------------------------------------------------------------------
def _attention_kernel(xq_ref, k_ref, v_ref, wq_ref, wo_ref, bo_ref, o_ref,
                      q_scr, m_scr, l_scr, acc_scr,
                      *, heads, dim_head, n_valid, n_pad):
    ki = pl.program_id(2)
    last_kv = pl.num_programs(2) - 1
    tq = xq_ref.shape[1]
    tk = k_ref.shape[2]
    inner = heads * dim_head

    # ---- once per (batch, q-tile): Q projection (scale folded into Wq) + init ----
    @pl.when(ki == 0)
    def _init():
        xq = xq_ref[0]                                                     # (tq, D) bf16
        q = jnp.dot(xq, wq_ref[...], preferred_element_type=jnp.float32)   # (tq, inner)
        q_scr[...] = _head_major(q, heads, dim_head).astype(q_scr.dtype)   # (H, tq, Dh) bf16
        m_scr[...] = jnp.full_like(m_scr, -jnp.inf)
        l_scr[...] = jnp.zeros_like(l_scr)
        acc_scr[...] = jnp.zeros_like(acc_scr)

    q = q_scr[...]                                                         # (H, tq, Dh) bf16
    k = k_ref[0]                                                           # (H, tk, Dh) bf16
    v = v_ref[0]                                                           # (H, tk, Dh) bf16

    # ---- scores for all heads in one batched MXU stream (no slicing, no .T) ----
    s = jnp.einsum("hqd,hkd->hqk", q, k,
                   preferred_element_type=jnp.float32)                     # (H, tq, tk) f32

    # ---- mask the zero-padded kv tail (only the last kv tile can contain it) ----
    if n_valid < n_pad:  # static check; the select is cheap and tail-only in effect
        col = ki * tk + jax.lax.broadcasted_iota(jnp.int32, (1, 1, tk), 2)
        s = jnp.where(col < n_valid, s, -jnp.inf)

    # ---- online (flash) softmax accumulation; statistics lane-dense f32 ----
    m_prev = m_scr[...]                                                    # (H, tq)
    m_new = jnp.maximum(m_prev, jnp.max(s, axis=-1))                       # (H, tq)
    alpha = jnp.exp(m_prev - m_new)                                        # (H, tq)
    p = jnp.exp(s - m_new[..., None])                                      # (H, tq, tk)
    l_scr[...] = alpha * l_scr[...] + jnp.sum(p, axis=-1)
    acc_scr[...] = alpha[..., None] * acc_scr[...] + jnp.einsum(
        "hqk,hkd->hqd", p.astype(jnp.bfloat16), v,
        preferred_element_type=jnp.float32)
    m_scr[...] = m_new

    # ---- once per (batch, q-tile): normalize, merge heads, output projection ----
    @pl.when(ki == last_kv)
    def _finalize():
        inv_l = 1.0 / l_scr[...]                                           # exact; once per q-tile
        o_h = acc_scr[...] * inv_l[..., None]                              # (H, tq, Dh) f32
        o_h = pltpu.einshape("hqd->qhd", o_h).reshape(tq, inner)           # 'b h n d -> b n (h d)'
        out = jnp.dot(o_h.astype(jnp.bfloat16), wo_ref[...],
                      preferred_element_type=jnp.float32)
        out = out + bo_ref[...]                                            # (tq, D) lane-dense
        # TODO(synk): Dropout(p=0.0) is identity; non-zero dropout not implemented.
        o_ref[0] = out.astype(o_ref.dtype)


# ---------------------------------------------------------------------------
# Host-side wrapper
# ---------------------------------------------------------------------------
def _vmem_capacity_bytes():
    try:
        return int(pltpu.get_tpu_info().vmem_capacity_bytes)
    except Exception:
        return 64 * 1024 * 1024  # conservative (v7x-sized) default


def _tile_sizes(n_pad, batch, big_vmem):
    tq = 256 if n_pad % 256 == 0 else 128
    tk = tq if big_vmem else 128           # smaller kv tile on small-VMEM (v7x) chips
    if (not big_vmem) and tq == 256 and batch * (n_pad // tq) < 2:
        tq = 128                            # expose >=2 parallel grid steps for 2-core chips
    return tq, tk


def _forward(x, wq, wkv, wo, bo, *, heads, dim_head, single_buffer_weights):
    B, N, D = x.shape
    inner = heads * dim_head
    scale = dim_head ** (-0.5)

    # Split the fused kv weight on the host so the kernels never lane-slice;
    # fold the softmax scale into Wq (one-time host-side op, not per-token work).
    wk = wkv[:, :inner]
    wv = wkv[:, inner:]
    wqb = (wq * scale).astype(jnp.bfloat16)
    wkb = wk.astype(jnp.bfloat16)
    wvb = wv.astype(jnp.bfloat16)
    wob = wo.astype(jnp.bfloat16)
    bo2 = bo.reshape(1, D).astype(jnp.float32)

    # Pad the sequence to a multiple of 128 (clean (8,128) tiles, pipelining,
    # megacore-parallel q tiles); padded KV columns are masked inside the kernel.
    n_pad = -(-N // 128) * 128
    xb = x.astype(jnp.bfloat16)
    if n_pad != N:
        xb = jnp.pad(xb, ((0, 0), (0, n_pad - N), (0, 0)))

    vmem_cap = _vmem_capacity_bytes()
    big_vmem = vmem_cap >= 100 * 1024 * 1024
    vmem_limit = (96 if big_vmem else 32) * 1024 * 1024
    tq, tk = _tile_sizes(n_pad, B, big_vmem)

    def const_spec(shape):
        index_map = lambda *idx: (0,) * len(shape)
        if single_buffer_weights:
            # Constant-index weights/bias: double-buffering only doubles VMEM.
            return pl.BlockSpec(shape, index_map, pipeline_mode=pl.Buffered(1))
        return pl.BlockSpec(shape, index_map)

    # ---- Kernel 1: project K/V once per (batch, kv-tile), head-major bf16 ----
    kv_kernel = functools.partial(_kv_projection_kernel, heads=heads, dim_head=dim_head)
    k_hm, v_hm = pl.pallas_call(
        kv_kernel,
        out_shape=(jax.ShapeDtypeStruct((B, heads, n_pad, dim_head), jnp.bfloat16),
                   jax.ShapeDtypeStruct((B, heads, n_pad, dim_head), jnp.bfloat16)),
        grid_spec=pltpu.PrefetchScalarGridSpec(
            num_scalar_prefetch=0,
            grid=(B, n_pad // tk),
            in_specs=[
                pl.BlockSpec((1, tk, D), lambda b, ki: (b, ki, 0)),   # context rows
                const_spec((D, inner)),                               # Wk
                const_spec((D, inner)),                               # Wv
            ],
            out_specs=[
                pl.BlockSpec((1, heads, tk, dim_head), lambda b, ki: (b, 0, ki, 0)),
                pl.BlockSpec((1, heads, tk, dim_head), lambda b, ki: (b, 0, ki, 0)),
            ],
        ),
        compiler_params=pltpu.CompilerParams(
            dimension_semantics=("parallel", "parallel"),
            vmem_limit_bytes=vmem_limit),
    )(xb, wkb, wvb)

    # ---- Kernel 2: flash attention over (batch, q-tile, kv-tile) ----
    attn_kernel = functools.partial(_attention_kernel, heads=heads, dim_head=dim_head,
                                    n_valid=N, n_pad=n_pad)
    out = pl.pallas_call(
        attn_kernel,
        out_shape=jax.ShapeDtypeStruct((B, n_pad, D), x.dtype),
        grid_spec=pltpu.PrefetchScalarGridSpec(
            num_scalar_prefetch=0,
            grid=(B, n_pad // tq, n_pad // tk),
            in_specs=[
                pl.BlockSpec((1, tq, D), lambda b, qi, ki: (b, qi, 0)),                   # x (queries)
                pl.BlockSpec((1, heads, tk, dim_head), lambda b, qi, ki: (b, 0, ki, 0)),  # K (head-major)
                pl.BlockSpec((1, heads, tk, dim_head), lambda b, qi, ki: (b, 0, ki, 0)),  # V (head-major)
                const_spec((D, inner)),     # Wq (scale pre-folded)
                const_spec((inner, D)),     # Wout
                const_spec((1, D)),         # bout
            ],
            out_specs=pl.BlockSpec((1, tq, D), lambda b, qi, ki: (b, qi, 0)),
            scratch_shapes=[
                pltpu.VMEM((heads, tq, dim_head), jnp.bfloat16),  # q, head-major
                pltpu.VMEM((heads, tq), jnp.float32),             # running max m (lane-dense)
                pltpu.VMEM((heads, tq), jnp.float32),             # running sum l (lane-dense)
                pltpu.VMEM((heads, tq, dim_head), jnp.float32),   # running un-normalized O
            ],
        ),
        compiler_params=pltpu.CompilerParams(
            dimension_semantics=("parallel", "parallel", "arbitrary"),
            vmem_limit_bytes=vmem_limit),
    )(xb, k_hm, v_hm, wqb, wob, bo2)

    if n_pad != N:
        out = out[:, :N, :]
    return out


def attention_forward(x, wq, wkv, wo, bo, *, heads, dim_head):
    """Forward pass of Attention(dim, heads, dim_head), context=None (self-attention)."""
    try:
        return _forward(x, wq, wkv, wo, bo, heads=heads, dim_head=dim_head,
                        single_buffer_weights=True)
    except Exception:
        # Fallback: this JAX build rejects pipeline_mode=pl.Buffered on TPU inputs;
        # default double-buffered constant weights are functionally identical.
        return _forward(x, wq, wkv, wo, bo, heads=heads, dim_head=dim_head,
                        single_buffer_weights=False)


def reference_forward(x, wq, wkv, wo, bo, *, heads, dim_head):
    """Pure-JAX reference (f32 math on bf16-rounded operands, matching the kernel's MXU inputs)."""
    rnd = lambda a: a.astype(jnp.bfloat16).astype(jnp.float32)
    x, wq, wkv, wo = map(rnd, (x, wq, wkv, wo))
    B, N, D = x.shape
    inner = heads * dim_head
    scale = dim_head ** (-0.5)
    q = x @ wq
    kv = x @ wkv
    k, v = kv[..., :inner], kv[..., inner:]

    def split_heads(t):  # b n (h d) -> b h n d
        return t.reshape(B, N, heads, dim_head).transpose(0, 2, 1, 3)

    q, k, v = map(split_heads, (q, k, v))
    dots = jnp.einsum("bhid,bhjd->bhij", q, k) * scale
    attn = jax.nn.softmax(dots, axis=-1)
    out = jnp.einsum("bhij,bhjd->bhid", attn, v)
    out = out.transpose(0, 2, 1, 3).reshape(B, N, inner)
    return out @ wo + bo


if __name__ == "__main__":
    # small shapes consistent with the module
    B, N, D = 2, 8, 32
    heads, dim_head = 4, 16
    inner = heads * dim_head

    key = jax.random.PRNGKey(0)
    kx, kq, kkv, ko, kb = jax.random.split(key, 5)

    x = jax.random.normal(kx, (B, N, D), dtype=jnp.float32)
    # deterministic parameter init (nn.Linear-style uniform ranges, fixed seed)
    wq = jax.random.uniform(kq, (D, inner), jnp.float32, -1.0, 1.0) / jnp.sqrt(D)
    wkv = jax.random.uniform(kkv, (D, 2 * inner), jnp.float32, -1.0, 1.0) / jnp.sqrt(D)
    wo = jax.random.uniform(ko, (inner, D), jnp.float32, -1.0, 1.0) / jnp.sqrt(inner)
    bo = jax.random.uniform(kb, (D,), jnp.float32, -1.0, 1.0) / jnp.sqrt(inner)

    out = attention_forward(x, wq, wkv, wo, bo, heads=heads, dim_head=dim_head)
    out = jax.block_until_ready(out)

    ref = reference_forward(x, wq, wkv, wo, bo, heads=heads, dim_head=dim_head)
    assert out.shape == (B, N, D)
    max_err = float(jnp.max(jnp.abs(out - ref)))
    assert jnp.allclose(out, ref, atol=3e-2, rtol=3e-2), f"mismatch vs reference (max abs err {max_err})"

    print("KERNEL_OK")
</pallas_src>

<mosaic_0001>
module attributes {stable_mosaic.version = 11 : i64} {
  func.func @_kv_projection_kernel(%arg0: i32, %arg1: i32, %arg2: memref<1x128x32xbf16, #tpu.memory_space<vmem>>, %arg3: memref<32x64xbf16, #tpu.memory_space<vmem>>, %arg4: memref<32x64xbf16, #tpu.memory_space<vmem>>, %arg5: memref<1x4x128x16xbf16, #tpu.memory_space<vmem>>, %arg6: memref<1x4x128x16xbf16, #tpu.memory_space<vmem>>) attributes {dimension_semantics = [#tpu.dimension_semantics<parallel>, #tpu.dimension_semantics<parallel>], iteration_bounds = array<i64: 2, 1>, scalar_prefetch = 0 : i64, scratch_operands = 0 : i64, tpu.core_type = #tpu.core_type<tc>, window_params = [{transform_indices = @transform_0, window_bounds = array<i64: 1, 128, 32>}, {pipeline_mode = #tpu.pipeline_mode<synchronous>, transform_indices = @transform_1, window_bounds = array<i64: 32, 64>}, {pipeline_mode = #tpu.pipeline_mode<synchronous>, transform_indices = @transform_2, window_bounds = array<i64: 32, 64>}, {transform_indices = @transform_3, window_bounds = array<i64: 1, 4, 128, 16>}, {transform_indices = @transform_4, window_bounds = array<i64: 1, 4, 128, 16>}]} {
    %c0 = arith.constant 0 : index
    %c0_0 = arith.constant 0 : index
    %c0_1 = arith.constant 0 : index
    %0 = vector.load %arg2[%c0, %c0_0, %c0_1] : memref<1x128x32xbf16, #tpu.memory_space<vmem>>, vector<1x128x32xbf16>
    %1 = vector.shape_cast %0 : vector<1x128x32xbf16> to vector<128x32xbf16>
    %c0_2 = arith.constant 0 : index
    %c0_3 = arith.constant 0 : index
    %2 = vector.load %arg3[%c0_2, %c0_3] : memref<32x64xbf16, #tpu.memory_space<vmem>>, vector<32x64xbf16>
    %cst = arith.constant dense<0.000000e+00> : vector<128x64xf32>
    %3 = tpu.matmul %1, %2, %cst {dimension_numbers = #tpu.dot_dimension_numbers<[1], [0], [0], [1], [0, 0, 1, 1], [], []>} : vector<128x32xbf16>, vector<32x64xbf16>, vector<128x64xf32> -> vector<128x64xf32>
    %c0_4 = arith.constant 0 : index
    %c0_5 = arith.constant 0 : index
    %4 = vector.load %arg4[%c0_4, %c0_5] : memref<32x64xbf16, #tpu.memory_space<vmem>>, vector<32x64xbf16>
    %cst_6 = arith.constant dense<0.000000e+00> : vector<128x64xf32>
    %5 = tpu.matmul %1, %4, %cst_6 {dimension_numbers = #tpu.dot_dimension_numbers<[1], [0], [0], [1], [0, 0, 1, 1], [], []>} : vector<128x32xbf16>, vector<32x64xbf16>, vector<128x64xf32> -> vector<128x64xf32>
    %6 = vector.shape_cast %3 : vector<128x64xf32> to vector<128x4x16xf32>
    %7 = tpu.transpose %6, [1, 0, 2] : vector<128x4x16xf32> -> vector<4x128x16xf32>
    %8 = arith.truncf %7 : vector<4x128x16xf32> to vector<4x128x16xbf16>
    %c0_7 = arith.constant 0 : index
    %c0_8 = arith.constant 0 : index
    %c0_9 = arith.constant 0 : index
    %c0_10 = arith.constant 0 : index
    %9 = vector.load %arg5[%c0_7, %c0_8, %c0_9, %c0_10] : memref<1x4x128x16xbf16, #tpu.memory_space<vmem>>, vector<1x4x128x16xbf16>
    %10 = vector.shape_cast %9 : vector<1x4x128x16xbf16> to vector<4x128x16xbf16>
    %11 = vector.shape_cast %8 : vector<4x128x16xbf16> to vector<1x4x128x16xbf16>
    tpu.vector_store %arg5[%c0_7, %c0_8, %c0_9, %c0_10], %11 {strides = array<i32>} : memref<1x4x128x16xbf16, #tpu.memory_space<vmem>>, vector<1x4x128x16xbf16>,
    %12 = vector.shape_cast %5 : vector<128x64xf32> to vector<128x4x16xf32>
    %13 = tpu.transpose %12, [1, 0, 2] : vector<128x4x16xf32> -> vector<4x128x16xf32>
    %14 = arith.truncf %13 : vector<4x128x16xf32> to vector<4x128x16xbf16>
    %c0_11 = arith.constant 0 : index
    %c0_12 = arith.constant 0 : index
    %c0_13 = arith.constant 0 : index
    %c0_14 = arith.constant 0 : index
    %15 = vector.load %arg6[%c0_11, %c0_12, %c0_13, %c0_14] : memref<1x4x128x16xbf16, #tpu.memory_space<vmem>>, vector<1x4x128x16xbf16>
    %16 = vector.shape_cast %15 : vector<1x4x128x16xbf16> to vector<4x128x16xbf16>
    %17 = vector.shape_cast %14 : vector<4x128x16xbf16> to vector<1x4x128x16xbf16>
    tpu.vector_store %arg6[%c0_11, %c0_12, %c0_13, %c0_14], %17 {strides = array<i32>} : memref<1x4x128x16xbf16, #tpu.memory_space<vmem>>, vector<1x4x128x16xbf16>,
    return
  }
  func.func @transform_0(%arg0: i32, %arg1: i32) -> (i32, i32, i32) {
    %c0_i32 = arith.constant 0 : i32
    %c0_i32_0 = arith.constant 0 : i32
    return %arg0, %arg1, %c0_i32 : i32, i32, i32
  }
  func.func @transform_1(%arg0: i32, %arg1: i32) -> (i32, i32) {
    %c0_i32 = arith.constant 0 : i32
    %c0_i32_0 = arith.constant 0 : i32
    %c0_i32_1 = arith.constant 0 : i32
    return %c0_i32, %c0_i32_0 : i32, i32
  }
  func.func @transform_2(%arg0: i32, %arg1: i32) -> (i32, i32) {
    %c0_i32 = arith.constant 0 : i32
    %c0_i32_0 = arith.constant 0 : i32
    %c0_i32_1 = arith.constant 0 : i32
    return %c0_i32, %c0_i32_0 : i32, i32
  }
  func.func @transform_3(%arg0: i32, %arg1: i32) -> (i32, i32, i32, i32) {
    %c0_i32 = arith.constant 0 : i32
    %c0_i32_0 = arith.constant 0 : i32
    %c0_i32_1 = arith.constant 0 : i32
    return %arg0, %c0_i32, %arg1, %c0_i32_0 : i32, i32, i32, i32
  }
  func.func @transform_4(%arg0: i32, %arg1: i32) -> (i32, i32, i32, i32) {
    %c0_i32 = arith.constant 0 : i32
    %c0_i32_0 = arith.constant 0 : i32
    %c0_i32_1 = arith.constant 0 : i32
    return %arg0, %c0_i32, %arg1, %c0_i32_0 : i32, i32, i32, i32
  }
}

module attributes {stable_mosaic.version = 11 : i64} {
  func.func @_kv_projection_kernel(%arg0: i32, %arg1: i32, %arg2: memref<1x128x32xbf16, #tpu.memory_space<vmem>>, %arg3: memref<32x64xbf16, #tpu.memory_space<vmem>>, %arg4: memref<32x64xbf16, #tpu.memory_space<vmem>>, %arg5: memref<1x4x128x16xbf16, #tpu.memory_space<vmem>>, %arg6: memref<1x4x128x16xbf16, #tpu.memory_space<vmem>>) attributes {dimension_semantics = [#tpu.dimension_semantics<parallel>, #tpu.dimension_semantics<parallel>], iteration_bounds = array<i64: 2, 1>, scalar_prefetch = 0 : i64, scratch_operands = 0 : i64, tpu.core_type = #tpu.core_type<tc>, window_params = [{transform_indices = @transform_0, window_bounds = array<i64: 1, 128, 32>}, {pipeline_mode = #tpu.pipeline_mode<synchronous>, transform_indices = @transform_1, window_bounds = array<i64: 32, 64>}, {pipeline_mode = #tpu.pipeline_mode<synchronous>, transform_indices = @transform_2, window_bounds = array<i64: 32, 64>}, {transform_indices = @transform_3, window_bounds = array<i64: 1, 4, 128, 16>}, {transform_indices = @transform_4, window_bounds = array<i64: 1, 4, 128, 16>}]} {
    %c0 = arith.constant 0 : index
    %c0_0 = arith.constant 0 : index
    %c0_1 = arith.constant 0 : index
    %0 = vector.load %arg2[%c0, %c0_0, %c0_1] : memref<1x128x32xbf16, #tpu.memory_space<vmem>>, vector<1x128x32xbf16>
    %1 = vector.shape_cast %0 : vector<1x128x32xbf16> to vector<128x32xbf16>
    %c0_2 = arith.constant 0 : index
    %c0_3 = arith.constant 0 : index
    %2 = vector.load %arg3[%c0_2, %c0_3] : memref<32x64xbf16, #tpu.memory_space<vmem>>, vector<32x64xbf16>
    %cst = arith.constant dense<0.000000e+00> : vector<128x64xf32>
    %3 = tpu.matmul %1, %2, %cst {dimension_numbers = #tpu.dot_dimension_numbers<[1], [0], [0], [1], [0, 0, 1, 1], [], []>} : vector<128x32xbf16>, vector<32x64xbf16>, vector<128x64xf32> -> vector<128x64xf32>
    %c0_4 = arith.constant 0 : index
    %c0_5 = arith.constant 0 : index
    %4 = vector.load %arg4[%c0_4, %c0_5] : memref<32x64xbf16, #tpu.memory_space<vmem>>, vector<32x64xbf16>
    %cst_6 = arith.constant dense<0.000000e+00> : vector<128x64xf32>
    %5 = tpu.matmul %1, %4, %cst_6 {dimension_numbers = #tpu.dot_dimension_numbers<[1], [0], [0], [1], [0, 0, 1, 1], [], []>} : vector<128x32xbf16>, vector<32x64xbf16>, vector<128x64xf32> -> vector<128x64xf32>
    %6 = vector.shape_cast %3 : vector<128x64xf32> to vector<128x4x16xf32>
    %7 = tpu.transpose %6, [1, 0, 2] : vector<128x4x16xf32> -> vector<4x128x16xf32>
    %8 = arith.truncf %7 : vector<4x128x16xf32> to vector<4x128x16xbf16>
    %c0_7 = arith.constant 0 : index
    %c0_8 = arith.constant 0 : index
    %c0_9 = arith.constant 0 : index
    %c0_10 = arith.constant 0 : index
    %9 = vector.load %arg5[%c0_7, %c0_8, %c0_9, %c0_10] : memref<1x4x128x16xbf16, #tpu.memory_space<vmem>>, vector<1x4x128x16xbf16>
    %10 = vector.shape_cast %9 : vector<1x4x128x16xbf16> to vector<4x128x16xbf16>
    %11 = vector.shape_cast %8 : vector<4x128x16xbf16> to vector<1x4x128x16xbf16>
    tpu.vector_store %arg5[%c0_7, %c0_8, %c0_9, %c0_10], %11 {strides = array<i32>} : memref<1x4x128x16xbf16, #tpu.memory_space<vmem>>, vector<1x4x128x16xbf16>,
    %12 = vector.shape_cast %5 : vector<128x64xf32> to vector<128x4x16xf32>
    %13 = tpu.transpose %12, [1, 0, 2] : vector<128x4x16xf32> -> vector<4x128x16xf32>
    %14 = arith.truncf %13 : vector<4x128x16xf32> to vector<4x128x16xbf16>
    %c0_11 = arith.constant 0 : index
    %c0_12 = arith.constant 0 : index
    %c0_13 = arith.constant 0 : index
    %c0_14 = arith.constant 0 : index
    %15 = vector.load %arg6[%c0_11, %c0_12, %c0_13, %c0_14] : memref<1x4x128x16xbf16, #tpu.memory_space<vmem>>, vector<1x4x128x16xbf16>
    %16 = vector.shape_cast %15 : vector<1x4x128x16xbf16> to vector<4x128x16xbf16>
    %17 = vector.shape_cast %14 : vector<4x128x16xbf16> to vector<1x4x128x16xbf16>
    tpu.vector_store %arg6[%c0_11, %c0_12, %c0_13, %c0_14], %17 {strides = array<i32>} : memref<1x4x128x16xbf16, #tpu.memory_space<vmem>>, vector<1x4x128x16xbf16>,
    return
  }
  func.func @transform_0(%arg0: i32, %arg1: i32) -> (i32, i32, i32) {
    %c0_i32 = arith.constant 0 : i32
    %c0_i32_0 = arith.constant 0 : i32
    return %arg0, %arg1, %c0_i32 : i32, i32, i32
  }
  func.func @transform_1(%arg0: i32, %arg1: i32) -> (i32, i32) {
    %c0_i32 = arith.constant 0 : i32
    %c0_i32_0 = arith.constant 0 : i32
    %c0_i32_1 = arith.constant 0 : i32
    return %c0_i32, %c0_i32_0 : i32, i32
  }
  func.func @transform_2(%arg0: i32, %arg1: i32) -> (i32, i32) {
    %c0_i32 = arith.constant 0 : i32
    %c0_i32_0 = arith.constant 0 : i32
    %c0_i32_1 = arith.constant 0 : i32
    return %c0_i32, %c0_i32_0 : i32, i32
  }
  func.func @transform_3(%arg0: i32, %arg1: i32) -> (i32, i32, i32, i32) {
    %c0_i32 = arith.constant 0 : i32
    %c0_i32_0 = arith.constant 0 : i32
    %c0_i32_1 = arith.constant 0 : i32
    return %arg0, %c0_i32, %arg1, %c0_i32_0 : i32, i32, i32, i32
  }
  func.func @transform_4(%arg0: i32, %arg1: i32) -> (i32, i32, i32, i32) {
    %c0_i32 = arith.constant 0 : i32
    %c0_i32_0 = arith.constant 0 : i32
    %c0_i32_1 = arith.constant 0 : i32
    return %arg0, %c0_i32, %arg1, %c0_i32_0 : i32, i32, i32, i32
  }
}

</mosaic_0001>

<bundles_post_ra>
// kernel: tpu_custom_call.1
= control target key start
LH: loop header
LB: loop body
LE: loop exit
PB: predicated region body
PF: predicated region fallthrough
CT: control target
= control target key end

     0   :  { %s6538_s15 = smov 0   ;;  %s6540_s16 = smov 0   ;;  %s7950_s0 = inlined_call_operand.vmem [shape: bf16[2,128,32], index: 0, kind: input, shape index: {}]   ;;  %s7951_s1 = inlined_call_operand.vmem [shape: bf16[32,64], index: 1, kind: input, shape index: {}]   ;;  %s7952_s2 = inlined_call_operand.vmem [shape: bf16[32,64], index: 2, kind: input, shape index: {}]   ;;  %s7953_s3 = inlined_call_operand.vmem [shape: bf16[2,4,128,16], index: 3, kind: output, shape index: {0}]   ;;  %s7954_s4 = inlined_call_operand.vmem [shape: bf16[2,4,128,16], index: 4, kind: output, shape index: {1}]  }
   0x1   :  { %s6542_s17 = smov 0  }
   0x2 LB: > { %s27_s18 = sadd.s32 1, %s6502_s16  ;;  %p6023_p0 = scmp.ge.s32.totalorder %s6506_s17, 1  ;;  %s6506_s17 = sphi %s6542_s17, %s15_s17   ;;  %s6502_s16 = sphi %s6540_s16, %s7956_s16   ;;  %s6498_s15 = sphi %s6538_s15, %s7955_s15  }
   0x3   : > { %p29_p1 = scmp.ge.s32.totalorder %s27_s18, 2  ;;  %p188_p2 = scmp.lt.s32.totalorder %s6506_s17, 3 }
   0x5   : > { %s7958_s18 = smov (%p29_p1, %s27_s18), 0  ;;  %p189_p3 = pnand %p6023_p0, %p188_p2 }
   0x6   : > { %v6472_v0 = vld [vmem:[%s7951_s1] sm:$0xff] (!%p189_p3)   ;;  %p232_p4 = scmp.lt.s32.totalorder (!%p189_p3), %s6498_s15, 1  ;;  %v6473_v1 = vld [vmem:[%s7951_s1 + $0x8] sm:$0xff] (!%p189_p3)   ;;  %vm334_vm0 = vcmask (!%p189_p3), 261120   ;;  %s6508_s5 = smov (!%p189_p3), 96   ;;  %v734_v46 = vlaneseq (!%p189_p3)  ;;  %vm3161_vm1 = vcmask (!%p189_p3), 125952  }
   0x7   : > { %192 = sbr.rel (%p189_p3) target bundleno = 698 (0x2ba), region = 32  ;;  %6403 = vmatprep.subr.bf16.mxu0 (!%p189_p3), %v6472_v0  ;;  %v6474_v2 = vld [vmem:[%s7952_s2] sm:$0xff] (!%p189_p3)   ;;  %v6477_v3 = vld [vmem:[%s7952_s2 + $0x8] sm:$0xff] (!%p189_p3)   ;;  %s6509_s6 = smov (!%p189_p3), 112   ;;  %v6511_v44 = vmov (!%p189_p3), 1983009808  }
   0x8   : > { %6404 = vmatpush3.bf16.msra.mxu0 (!%p189_p3), %v6472_v0  ;;  %6423 = vmatprep.subr.bf16.mxu1 (!%p189_p3), %v6474_v2  ;;  %s6510_s7 = smov (!%p189_p3), 80   ;;  %v732_v45 = vunpack.c.l.s4 (!%p189_p3), %v6511_v44  ;;  %v6512_v47 = vmov (!%p189_p3), 1934713408   ;;  %v735_v50 = vshrl.u32 (!%p189_p3), %v734_v46, 7 }
   0x9   : > { %6405 = vmatprep.subr.bf16.mxu0 (!%p189_p3), %v6473_v1  ;;  %6424 = vmatpush3.bf16.msra.mxu1 (!%p189_p3), %v6474_v2  ;;  %v764_v48 = vunpack.c.l.s4 (!%p189_p3), %v6512_v47 }
   0xa   : > { %6425 = vmatprep.subr.bf16.mxu1 (!%p189_p3), %v6477_v3  ;;  %v733_v49 = vunpack.c.0.s8 (!%p189_p3), %v732_v45 }
   0xb   : > { %v765_v53 = vunpack.c.0.s8 (!%p189_p3), %v764_v48 }
   0xc   : > { %6406 = vmatpush3.bf16.msra.mxu0 (!%p189_p3), %v6473_v1  ;;  %v6774_v54 = vsub.s32 (!%p189_p3), %v733_v49, %v735_v50 }
   0xd   : > { %6426 = vmatpush3.bf16.msra.mxu1 (!%p189_p3), %v6477_v3  ;;  %v6778_v61 = vsub.s32 (!%p189_p3), %v765_v53, %v735_v50 }
   0xe   : > { %s7960_s15 = smov (!%p232_p4, %s6498_s15), 1 }
   0xf   : > { %s6252_s27 = sshll.u32 %s7960_s15, 6  ;;  %s6253_s8 = sshll.u32 %s7960_s15, 8 }
  0x10   : > { %s239_s30 = scalar_lea.vmem %s7950_s0, %s6252_s27  ;;  %s6840_s11 = scalar_lea.vmem %s7953_s3, %s6253_s8 }
  0x11   : > { %v6475_v4 = vld [vmem:[%s239_s30] sm:$0xff]   ;;  %v6476_v5 = vld [vmem:[%s239_s30 + $0x8] sm:$0xff]   ;;  %v6478_v6 = vld [vmem:[%s239_s30 + $0x10] sm:$0xff]   ;;  %s6933_s14 = scalar_lea.vmem %s7954_s4, %s6253_s8 }
  0x12   : > { %6407 = vmatprep.mubr.msk.bf16.mxu0 %vm334_vm0, %v6475_v4  ;;  %6427 = vmatprep.mubr.msk.bf16.mxu1 %vm334_vm0, %v6475_v4  ;;  %v6479_v7 = vld [vmem:[%s239_s30 + $0x18] sm:$0xff]   ;;  %v6480_v8 = vld [vmem:[%s239_s30 + $0x20] sm:$0xff]   ;;  %v6481_v9 = vld [vmem:[%s239_s30 + $0x28] sm:$0xff]  }
  0x13   : > { %6408 = vmatmul.mubr.msk.bf16.vlgmr.msra.gmra.mrb[0].mxu0 %vm334_vm0, %v6476_v5  ;;  %6428 = vmatmul.mubr.msk.bf16.vlgmr.msra.gmra.mrb[0].mxu1 %vm334_vm0, %v6476_v5  ;;  %v6482_v10 = vld [vmem:[%s239_s30 + $0x30] sm:$0xff]   ;;  %v6483_v11 = vld [vmem:[%s239_s30 + $0x38] sm:$0xff]  }
  0x14   : > { %6411 = vmatprep.mubr.msk.bf16.mxu0 %vm334_vm0, %v6478_v6  ;;  %6431 = vmatprep.mubr.msk.bf16.mxu1 %vm334_vm0, %v6478_v6 }
  0x1b   : > { %6412 = vmatmul.mubr.msk.bf16.gmra.mrb[4].mxu0 %vm334_vm0, %v6479_v7  ;;  %6432 = vmatmul.mubr.msk.bf16.gmra.mrb[4].mxu1 %vm334_vm0, %v6479_v7 }
  0x1c   : > { %6415 = vmatprep.mubr.msk.bf16.mxu0 %vm334_vm0, %v6480_v8  ;;  %6435 = vmatprep.mubr.msk.bf16.mxu1 %vm334_vm0, %v6480_v8 }
  0x23   : > { %6416 = vmatmul.mubr.msk.bf16.gmra.mrb[8].mxu0 %vm334_vm0, %v6481_v9  ;;  %6436 = vmatmul.mubr.msk.bf16.gmra.mrb[8].mxu1 %vm334_vm0, %v6481_v9 }
  0x24   : > { %6419 = vmatprep.mubr.msk.bf16.mxu0 %vm334_vm0, %v6482_v10  ;;  %6439 = vmatprep.mubr.msk.bf16.mxu1 %vm334_vm0, %v6482_v10 }
  0x2b   : > { %6420 = vmatmul.mubr.msk.bf16.gmra.mrb[12].mxu0 %vm334_vm0, %v6483_v11  ;;  %6440 = vmatmul.mubr.msk.bf16.gmra.mrb[12].mxu1 %vm334_vm0, %v6483_v11 }
  0xe6   : > { %v6590_v12 = vpop.f32.mrb[0].mxu0  ;;  %v6600_v15 = vpop.f32.mrb[0].mxu1 }
  0xe7   : > { %637 = vrot.lane.b32.xlu0 %v6590_v12, %s6508_s5  ;;  %589 = vrot.lane.b32.xlu1 %v6590_v12, %s6509_s6  ;;  %v6596_v13 = vpop.f32.mrb[1].mxu0  ;;  %v6604_v17 = vpop.f32.mrb[1].mxu1 }
  0xe8   : > { %v6598_v14 = vpop.f32.mrb[2].mxu0  ;;  %v6606_v18 = vpop.f32.mrb[2].mxu1 }
  0xe9   : > { %v6602_v16 = vpop.f32.mrb[3].mxu0  ;;  %v6612_v19 = vpop.f32.mrb[3].mxu1 }
  0xeb   : > { %685 = vrot.lane.b32.xlu0 %v6590_v12, %s6510_s7  ;;  %591 = vrot.lane.b32.xlu1 %v6598_v14, %s6509_s6 }
  0xee   : > { %v6614_v20 = vpop.f32.mrb[4].mxu0  ;;  %v6624_v23 = vpop.f32.mrb[4].mxu1 }
  0xef   : > { %3246 = vrot.lane.b32.xlu0 %v6600_v15, %s6509_s6  ;;  %639 = vrot.lane.b32.xlu1 %v6598_v14, %s6508_s5  ;;  %v6620_v21 = vpop.f32.mrb[5].mxu0  ;;  %v6628_v25 = vpop.f32.mrb[5].mxu1 }
  0xf0   : > { %v6622_v22 = vpop.f32.mrb[6].mxu0  ;;  %v6630_v26 = vpop.f32.mrb[6].mxu1 }
  0xf1   : > { %v6626_v24 = vpop.f32.mrb[7].mxu0  ;;  %v6636_v27 = vpop.f32.mrb[7].mxu1 }
  0xf3   : > { %3294 = vrot.lane.b32.xlu0 %v6600_v15, %s6508_s5  ;;  %687 = vrot.lane.b32.xlu1 %v6598_v14, %s6510_s7 }
  0xf6   : > { %v6638_v28 = vpop.f32.mrb[8].mxu0  ;;  %v6648_v31 = vpop.f32.mrb[8].mxu1 }
  0xf7   : > { %3342 = vrot.lane.b32.xlu0 %v6600_v15, %s6510_s7  ;;  %3248 = vrot.lane.b32.xlu1 %v6606_v18, %s6509_s6  ;;  %v6644_v29 = vpop.f32.mrb[9].mxu0  ;;  %v6652_v33 = vpop.f32.mrb[9].mxu1 }
  0xf8   : > { %v6646_v30 = vpop.f32.mrb[10].mxu0  ;;  %v6654_v34 = vpop.f32.mrb[10].mxu1 }
  0xf9   : > { %v6650_v32 = vpop.f32.mrb[11].mxu0  ;;  %v6660_v35 = vpop.f32.mrb[11].mxu1 }
  0xfb   : > { %585 = vrot.lane.b32.xlu0 %v6596_v13, %s6509_s6  ;;  %3296 = vrot.lane.b32.xlu1 %v6606_v18, %s6508_s5 }
  0xfe   : > { %v6662_v36 = vpop.f32.mrb[12].mxu0  ;;  %v6686_v40 = vpop.f32.mrb[12].mxu1 }
  0xff   : > { %633 = vrot.lane.b32.xlu0 %v6596_v13, %s6508_s5  ;;  %3344 = vrot.lane.b32.xlu1 %v6606_v18, %s6510_s7  ;;  %v6668_v37 = vpop.f32.mrb[13].mxu0  ;;  %v6692_v41 = vpop.f32.mrb[13].mxu1 }
 0x100   : > { %v6670_v38 = vpop.f32.mrb[14].mxu0  ;;  %v6694_v42 = vpop.f32.mrb[14].mxu1 }
 0x101   : > { %v6672_v39 = vpop.f32.mrb[15].mxu0  ;;  %v6696_v43 = vpop.f32.mrb[15].mxu1 }
 0x103   : > { %681 = vrot.lane.b32.xlu0 %v6596_v13, %s6510_s7  ;;  %635 = vrot.lane.b32.xlu1 %v6602_v16, %s6508_s5 }
 0x107   : > { %3242 = vrot.lane.b32.xlu0 %v6604_v17, %s6509_s6  ;;  %683 = vrot.lane.b32.xlu1 %v6602_v16, %s6510_s7 }
 0x10b   : > { %3290 = vrot.lane.b32.xlu0 %v6604_v17, %s6508_s5  ;;  %3244 = vrot.lane.b32.xlu1 %v6612_v19, %s6509_s6 }
 0x10f   : > { %3338 = vrot.lane.b32.xlu0 %v6604_v17, %s6510_s7  ;;  %3292 = vrot.lane.b32.xlu1 %v6612_v19, %s6508_s5 }
 0x113   : > { %3340 = vrot.lane.b32.xlu1 %v6612_v19, %s6510_s7  ;;  %587 = vrot.lane.b32.xlu0 %v6602_v16, %s6509_s6 }
 0x117   : > { %597 = vrot.lane.b32.xlu0 %v6614_v20, %s6509_s6  ;;  %599 = vrot.lane.b32.xlu1 %v6622_v22, %s6509_s6 }
 0x11b   : > { %645 = vrot.lane.b32.xlu0 %v6614_v20, %s6508_s5  ;;  %647 = vrot.lane.b32.xlu1 %v6622_v22, %s6508_s5 }
 0x11f   : > { %693 = vrot.lane.b32.xlu0 %v6614_v20, %s6510_s7  ;;  %695 = vrot.lane.b32.xlu1 %v6622_v22, %s6510_s7 }
 0x123   : > { %3254 = vrot.lane.b32.xlu0 %v6624_v23, %s6509_s6  ;;  %3256 = vrot.lane.b32.xlu1 %v6630_v26, %s6509_s6 }
 0x127   : > { %3302 = vrot.lane.b32.xlu0 %v6624_v23, %s6508_s5  ;;  %3304 = vrot.lane.b32.xlu1 %v6630_v26, %s6508_s5 }
 0x12b   : > { %3350 = vrot.lane.b32.xlu0 %v6624_v23, %s6510_s7  ;;  %3352 = vrot.lane.b32.xlu1 %v6630_v26, %s6510_s7 }
 0x12f   : > { %593 = vrot.lane.b32.xlu0 %v6620_v21, %s6509_s6  ;;  %595 = vrot.lane.b32.xlu1 %v6626_v24, %s6509_s6 }
 0x133   : > { %641 = vrot.lane.b32.xlu0 %v6620_v21, %s6508_s5  ;;  %643 = vrot.lane.b32.xlu1 %v6626_v24, %s6508_s5 }
 0x137   : > { %689 = vrot.lane.b32.xlu0 %v6620_v21, %s6510_s7  ;;  %691 = vrot.lane.b32.xlu1 %v6626_v24, %s6510_s7 }
 0x13b   : > { %3250 = vrot.lane.b32.xlu0 %v6628_v25, %s6509_s6  ;;  %3252 = vrot.lane.b32.xlu1 %v6636_v27, %s6509_s6 }
 0x13f   : > { %3298 = vrot.lane.b32.xlu0 %v6628_v25, %s6508_s5  ;;  %3300 = vrot.lane.b32.xlu1 %v6636_v27, %s6508_s5 }
 0x143   : > { %3346 = vrot.lane.b32.xlu0 %v6628_v25, %s6510_s7  ;;  %3348 = vrot.lane.b32.xlu1 %v6636_v27, %s6510_s7 }
 0x147   : > { %605 = vrot.lane.b32.xlu0 %v6638_v28, %s6509_s6  ;;  %607 = vrot.lane.b32.xlu1 %v6646_v30, %s6509_s6 }
 0x14b   : > { %653 = vrot.lane.b32.xlu0 %v6638_v28, %s6508_s5  ;;  %655 = vrot.lane.b32.xlu1 %v6646_v30, %s6508_s5 }
 0x14f   : > { %701 = vrot.lane.b32.xlu0 %v6638_v28, %s6510_s7  ;;  %703 = vrot.lane.b32.xlu1 %v6646_v30, %s6510_s7 }
 0x153   : > { %3262 = vrot.lane.b32.xlu0 %v6648_v31, %s6509_s6  ;;  %3264 = vrot.lane.b32.xlu1 %v6654_v34, %s6509_s6 }
 0x157   : > { %3310 = vrot.lane.b32.xlu0 %v6648_v31, %s6508_s5  ;;  %3312 = vrot.lane.b32.xlu1 %v6654_v34, %s6508_s5 }
 0x159   : > { %v638_v51 = vpop.permute.xlu0 %637  ;;  %v590_v52 = vpop.permute.xlu1 %589 }
 0x15a   : > { %v865_v55 = vcombine.low %v6590_v12, %v638_v51  ;;  %v866_v56 = vcombine.high %v6590_v12, %v638_v51 }
 0x15b   : > { %3358 = vrot.lane.b32.xlu0 %v6648_v31, %s6510_s7  ;;  %3360 = vrot.lane.b32.xlu1 %v6654_v34, %s6510_s7 }
 0x15c   : > { %v873_v62 = vrot.slane %v865_v55, %v6774_v54  ;;  %v880_v63 = vrot.slane %v866_v56, %v6774_v54 }
 0x15d   : > { %v686_v57 = vpop.permute.xlu0 %685  ;;  %v592_v58 = vpop.permute.xlu1 %591 }
 0x15e   : > { %v881_v59 = vcombine.low %v590_v52, %v686_v57  ;;  %v882_v60 = vcombine.high %v590_v52, %v686_v57 }
 0x15f   : > { %601 = vrot.lane.b32.xlu0 %v6644_v29, %s6509_s6  ;;  %603 = vrot.lane.b32.xlu1 %v6650_v32, %s6509_s6 }
 0x160   : > { %v889_v0 = vrot.slane %v881_v59, %v6774_v54  ;;  %v896_v1 = vrot.slane %v882_v60, %v6774_v54 }
 0x161   : > { %v6788_v2 = vpop.permute.xlu0 %3246  ;;  %v640_v3 = vpop.permute.xlu1 %639 }
 0x162   : > { %v897_v4 = vcombine.low %v873_v62, %v889_v0  ;;  %v898_v5 = vcombine.high %v873_v62, %v889_v0  ;;  %v913_v6 = vcombine.low %v880_v63, %v896_v1  ;;  %v914_v7 = vcombine.high %v880_v63, %v896_v1 }
 0x163   : > { %v933_v8 = vcombine.low %v6598_v14, %v640_v3  ;;  %v934_v9 = vcombine.high %v6598_v14, %v640_v3  ;;  %649 = vrot.lane.b32.xlu0 %v6644_v29, %s6508_s5  ;;  %651 = vrot.lane.b32.xlu1 %v6650_v32, %s6508_s5 }
 0x164   : > { %v905_v10 = vrot.slane %v897_v4, %v6778_v61  ;;  %v912_v11 = vrot.slane %v898_v5, %v6778_v61  ;;  %v921_v12 = vrot.slane %v913_v6, %v6778_v61  ;;  %v928_v44 = vrot.slane %v914_v7, %v6778_v61 }
 0x165   : > { %v6800_v45 = vpop.permute.xlu0 %3294  ;;  %v688_v46 = vpop.permute.xlu1 %687  ;;  %v941_v50 = vrot.slane %v933_v8, %v6774_v54  ;;  %v948_v51 = vrot.slane %v934_v9, %v6774_v54 }
 0x166   : > { %v1953_v47 = vcombine.low %v905_v10, %v912_v11  ;;  %v6062_v48 = vcombine.high %v905_v10, %v912_v11  ;;  %v1969_v14 = vcombine.low %v921_v12, %v928_v44  ;;  %v6063_v49 = vcombine.high %v921_v12, %v928_v44 }
 0x167   : > { %v949_v52 = vcombine.low %v592_v58, %v688_v46  ;;  %v950_v53 = vcombine.high %v592_v58, %v688_v46  ;;  %697 = vrot.lane.b32.xlu0 %v6644_v29, %s6510_s7  ;;  %699 = vrot.lane.b32.xlu1 %v6650_v32, %s6510_s7  ;;  %v3522_v60 = vcombine.low %v6600_v15, %v6800_v45 }
 0x168   : > { %v1960_v55 = vrot.slane %v1953_v47, %v6774_v54  ;;  %v1968_v56 = vrot.slane %v6062_v48, %v6774_v54  ;;  %v1976_v57 = vrot.slane %v1969_v14, %v6774_v54  ;;  %v1984_v59 = vrot.slane %v6063_v49, %v6774_v54 }
 0x169   : > { %v3523_v58 = vcombine.high %v6600_v15, %v6800_v45  ;;  %v957_v62 = vrot.slane %v949_v52, %v6774_v54  ;;  %v964_v63 = vrot.slane %v950_v53, %v6774_v54  ;;  %v3343_v0 = vpop.permute.xlu0 %3342  ;;  %v6818_v10 = vpop.permute.xlu1 %3248 }
 0x16a   : > { %v1985_v1 = vcombine.low %v1960_v55, %v1968_v56  ;;  %v1986_v3 = vcombine.high %v1960_v55, %v1968_v56  ;;  %v2001_v4 = vcombine.low %v1976_v57, %v1984_v59  ;;  %v2002_v5 = vcombine.high %v1976_v57, %v1984_v59 }
 0x16b   : > { %v965_v6 = vcombine.low %v941_v50, %v957_v62  ;;  %v966_v7 = vcombine.high %v941_v50, %v957_v62  ;;  %v981_v8 = vcombine.low %v948_v51, %v964_v63  ;;  %v982_v9 = vcombine.high %v948_v51, %v964_v63  ;;  %3258 = vrot.lane.b32.xlu0 %v6652_v33, %s6509_s6 }
 0x16c   : > { %v1993_v15 = vrot.slane %v1985_v1, %v6778_v61  ;;  %v2000_v11 = vrot.slane %v1986_v3, %v6778_v61  ;;  %v2009_v12 = vrot.slane %v2001_v4, %v6778_v61  ;;  %v2016_v44 = vrot.slane %v2002_v5, %v6778_v61  ;;  %3260 = vrot.lane.b32.xlu1 %v6660_v35, %s6509_s6 }
 0x16d   : > { %v973_v45 = vrot.slane %v965_v6, %v6778_v61  ;;  %v980_v46 = vrot.slane %v966_v7, %v6778_v61  ;;  %v989_v47 = vrot.slane %v981_v8, %v6778_v61  ;;  %v996_v48 = vrot.slane %v982_v9, %v6778_v61  ;;  %v6833_v52 = vpop.permute.xlu0 %585  ;;  %v3297_v7 = vpop.permute.xlu1 %3296 }
 0x16e   : > { %v2017_v14 = vcombine.low %v1993_v15, %v2009_v12  ;;  %v2018_v49 = vcombine.high %v1993_v15, %v2009_v12  ;;  %v2019_v50 = vcombine.low %v2000_v11, %v2016_v44  ;;  %v2020_v51 = vcombine.high %v2000_v11, %v2016_v44 }
 0x16f   : > { %v2021_v53 = vcombine.low %v973_v45, %v980_v46  ;;  %v6064_v55 = vcombine.high %v973_v45, %v980_v46  ;;  %v2037_v56 = vcombine.low %v989_v47, %v996_v48  ;;  %v6065_v57 = vcombine.high %v989_v47, %v996_v48  ;;  %3306 = vrot.lane.b32.xlu0 %v6652_v33, %s6508_s5 }
 0x170   : > { %v6257_v59 = vpack.c.bf16 %v2017_v14, %v2017_v14  ;;  %v6273_v62 = vpack.c.bf16 %v2018_v49, %v2018_v49  ;;  %v6289_v63 = vpack.c.bf16 %v2019_v50, %v2019_v50  ;;  %v6305_v1 = vpack.c.bf16 %v2020_v51, %v2020_v51  ;;  %3308 = vrot.lane.b32.xlu1 %v6660_v35, %s6508_s5 }
 0x171   : > { %v2028_v3 = vrot.slane %v2021_v53, %v6774_v54  ;;  %v2036_v4 = vrot.slane %v6064_v55, %v6774_v54  ;;  %v2044_v5 = vrot.slane %v2037_v56, %v6774_v54  ;;  %v2052_v6 = vrot.slane %v6065_v57, %v6774_v54 }
 0x172   : > { %3164 = vst.msk [vmem:[%s6840_s11 + $0x8] sm:$0xf] %vm3161_vm1, %v6257_v59  ;;  %3180 = vst.msk [vmem:[%s6840_s11 + $0x48] sm:$0xf] %vm3161_vm1, %v6273_v62  ;;  %v3530_v8 = vrot.slane %v3522_v60, %v6774_v54  ;;  %v3537_v9 = vrot.slane %v3523_v58, %v6774_v54  ;;  %v3538_v15 = vcombine.low %v6788_v2, %v3343_v0  ;;  %v6868_v58 = vpop.permute.xlu0 %633 }
 0x173   : > { %3196 = vst.msk [vmem:[%s6840_s11 + $0x88] sm:$0xf] %vm3161_vm1, %v6289_v63  ;;  %3212 = vst.msk [vmem:[%s6840_s11 + $0xc8] sm:$0xf] %vm3161_vm1, %v6305_v1  ;;  %v3539_v11 = vcombine.high %v6788_v2, %v3343_v0  ;;  %v2053_v12 = vcombine.low %v2028_v3, %v2036_v4  ;;  %v2054_v44 = vcombine.high %v2028_v3, %v2036_v4  ;;  %3354 = vrot.lane.b32.xlu0 %v6652_v33, %s6510_s7 }
 0x174   : > { %v2069_v45 = vcombine.low %v2044_v5, %v2052_v6  ;;  %v2070_v46 = vcombine.high %v2044_v5, %v2052_v6  ;;  %v3546_v47 = vrot.slane %v3538_v15, %v6774_v54  ;;  %v3590_v14 = vcombine.low %v6606_v18, %v3297_v7  ;;  %3356 = vrot.lane.b32.xlu1 %v6660_v35, %s6510_s7  ;;  %v3345_v5 = vpop.permute.xlu1 %3344 }
 0x175   : > { %v3553_v48 = vrot.slane %v3539_v11, %v6774_v54  ;;  %v3591_v60 = vcombine.high %v6606_v18, %v3297_v7  ;;  %v2061_v2 = vrot.slane %v2053_v12, %v6778_v61  ;;  %v2068_v0 = vrot.slane %v2054_v44, %v6778_v61 }
 0x176   : > { %v2077_v49 = vrot.slane %v2069_v45, %v6778_v61  ;;  %v2084_v50 = vrot.slane %v2070_v46, %v6778_v61  ;;  %v3554_v51 = vcombine.low %v3530_v8, %v3546_v47  ;;  %v3555_v53 = vcombine.high %v3530_v8, %v3546_v47  ;;  %v6884_v45 = vpop.permute.xlu0 %681 }
 0x177   : > { %v3570_v55 = vcombine.low %v3537_v9, %v3553_v48  ;;  %v3571_v56 = vcombine.high %v3537_v9, %v3553_v48  ;;  %613 = vrot.lane.b32.xlu0 %v6662_v36, %s6509_s6  ;;  %v3598_v46 = vrot.slane %v3590_v14, %v6774_v54  ;;  %v3605_v47 = vrot.slane %v3591_v60, %v6774_v54 }
 0x178   : > { %v2085_v57 = vcombine.low %v2061_v2, %v2077_v49  ;;  %v2086_v59 = vcombine.high %v2061_v2, %v2077_v49  ;;  %v2087_v18 = vcombine.low %v2068_v0, %v2084_v50  ;;  %v2088_v62 = vcombine.high %v2068_v0, %v2084_v50  ;;  %615 = vrot.lane.b32.xlu1 %v6670_v38, %s6509_s6 }
 0x179   : > { %v3562_v63 = vrot.slane %v3554_v51, %v6778_v61  ;;  %v3569_v1 = vrot.slane %v3555_v53, %v6778_v61  ;;  %v3578_v3 = vrot.slane %v3570_v55, %v6778_v61  ;;  %v3585_v4 = vrot.slane %v3571_v56, %v6778_v61 }
 0x17a   : > { %v6258_v6 = vpack.c.bf16 %v2085_v57, %v2085_v57  ;;  %v6274_v7 = vpack.c.bf16 %v2086_v59, %v2086_v59  ;;  %v6290_v8 = vpack.c.bf16 %v2087_v18, %v2087_v18  ;;  %v6306_v9 = vpack.c.bf16 %v2088_v62, %v2088_v62 }
 0x17b   : > { %v4610_v15 = vcombine.low %v3562_v63, %v3569_v1  ;;  %v6158_v11 = vcombine.high %v3562_v63, %v3569_v1  ;;  %v4626_v12 = vcombine.low %v3578_v3, %v3585_v4  ;;  %v6159_v44 = vcombine.high %v3578_v3, %v3585_v4  ;;  %661 = vrot.lane.b32.xlu0 %v6662_v36, %s6508_s5  ;;  %v6912_v3 = vpop.permute.xlu1 %635 }
 0x17c   : > { %3165 = vst.msk [vmem:[%s6840_s11 + $0xc] sm:$0xf] %vm3161_vm1, %v6258_v6  ;;  %3181 = vst.msk [vmem:[%s6840_s11 + $0x4c] sm:$0xf] %vm3161_vm1, %v6274_v7  ;;  %v3606_v48 = vcombine.low %v6818_v10, %v3345_v5  ;;  %v3607_v2 = vcombine.high %v6818_v10, %v3345_v5  ;;  %663 = vrot.lane.b32.xlu1 %v6670_v38, %s6508_s5  ;;  %v729_v14 = vcombine.low %v6596_v13, %v6868_v58  ;;  %v6920_v6 = vpop.permute.xlu0 %3242 }
 0x17d   : > { %3197 = vst.msk [vmem:[%s6840_s11 + $0x8c] sm:$0xf] %vm3161_vm1, %v6290_v8  ;;  %3213 = vst.msk [vmem:[%s6840_s11 + $0xcc] sm:$0xf] %vm3161_vm1, %v6306_v9  ;;  %v4617_v0 = vrot.slane %v4610_v15, %v6774_v54  ;;  %v4625_v49 = vrot.slane %v6158_v11, %v6774_v54  ;;  %v4633_v50 = vrot.slane %v4626_v12, %v6774_v54 }
 0x17e   : > { %v4641_v51 = vrot.slane %v6159_v44, %v6774_v54  ;;  %v730_v10 = vcombine.high %v6596_v13, %v6868_v58  ;;  %v3614_v60 = vrot.slane %v3606_v48, %v6774_v54  ;;  %v3621_v53 = vrot.slane %v3607_v2, %v6774_v54 }
 0x17f   : > { %v4642_v55 = vcombine.low %v4617_v0, %v4625_v49  ;;  %v4643_v56 = vcombine.high %v4617_v0, %v4625_v49  ;;  %709 = vrot.lane.b32.xlu0 %v6662_v36, %s6510_s7 }
 0x180   : > { %v4658_v57 = vcombine.low %v4633_v50, %v4641_v51  ;;  %v4659_v59 = vcombine.high %v4633_v50, %v4641_v51  ;;  %v3622_v18 = vcombine.low %v3598_v46, %v3614_v60  ;;  %v3623_v62 = vcombine.high %v3598_v46, %v3614_v60  ;;  %711 = vrot.lane.b32.xlu1 %v6670_v38, %s6510_s7 }
 0x181   : > { %v3638_v63 = vcombine.low %v3605_v47, %v3621_v53  ;;  %v3639_v1 = vcombine.high %v3605_v47, %v3621_v53  ;;  %v4650_v13 = vrot.slane %v4642_v55, %v6778_v61  ;;  %v4657_v58 = vrot.slane %v4643_v56, %v6778_v61 }
 0x182   : > { %v4666_v4 = vrot.slane %v4658_v57, %v6778_v61  ;;  %v4673_v5 = vrot.slane %v4659_v59, %v6778_v61  ;;  %v3630_v7 = vrot.slane %v3622_v18, %v6778_v61  ;;  %v3637_v8 = vrot.slane %v3623_v62, %v6778_v61  ;;  %v6943_v59 = vpop.permute.xlu1 %683 }
 0x183   : > { %v3646_v9 = vrot.slane %v3638_v63, %v6778_v61  ;;  %v3653_v15 = vrot.slane %v3639_v1, %v6778_v61  ;;  %3270 = vrot.lane.b32.xlu0 %v6686_v40, %s6509_s6  ;;  %v737_v18 = vrot.slane %v729_v14, %v6774_v54  ;;  %v744_v62 = vrot.slane %v730_v10, %v6774_v54 }
 0x184   : > { %v4674_v11 = vcombine.low %v4650_v13, %v4666_v4  ;;  %v4675_v12 = vcombine.high %v4650_v13, %v4666_v4  ;;  %v4676_v44 = vcombine.low %v4657_v58, %v4673_v5  ;;  %v4677_v46 = vcombine.high %v4657_v58, %v4673_v5  ;;  %3272 = vrot.lane.b32.xlu1 %v6694_v42, %s6509_s6  ;;  %v3291_v13 = vpop.permute.xlu0 %3290 }
 0x185   : > { %v4678_v47 = vcombine.low %v3630_v7, %v3637_v8  ;;  %v6160_v48 = vcombine.high %v3630_v7, %v3637_v8  ;;  %v4694_v2 = vcombine.low %v3646_v9, %v3653_v15  ;;  %v6161_v0 = vcombine.high %v3646_v9, %v3653_v15 }
 0x186   : > { %v6321_v49 = vpack.c.bf16 %v4674_v11, %v4674_v11  ;;  %v6337_v50 = vpack.c.bf16 %v4675_v12, %v4675_v12  ;;  %v6353_v51 = vpack.c.bf16 %v4676_v44, %v4676_v44  ;;  %v6369_v60 = vpack.c.bf16 %v4677_v46, %v4677_v46 }
 0x187   : > { %v4685_v53 = vrot.slane %v4678_v47, %v6774_v54  ;;  %v4693_v55 = vrot.slane %v6160_v48, %v6774_v54  ;;  %v4701_v56 = vrot.slane %v4694_v2, %v6774_v54  ;;  %v4709_v57 = vrot.slane %v6161_v0, %v6774_v54  ;;  %3318 = vrot.lane.b32.xlu0 %v6686_v40, %s6508_s5 }
 0x188   : > { %5820 = vst.msk [vmem:[%s6933_s14 + $0x8] sm:$0xf] %vm3161_vm1, %v6321_v49  ;;  %5836 = vst.msk [vmem:[%s6933_s14 + $0x48] sm:$0xf] %vm3161_vm1, %v6337_v50  ;;  %v745_v63 = vcombine.low %v6833_v52, %v6884_v45  ;;  %v746_v1 = vcombine.high %v6833_v52, %v6884_v45  ;;  %v797_v10 = vcombine.low %v6602_v16, %v6912_v3  ;;  %3320 = vrot.lane.b32.xlu1 %v6694_v42, %s6508_s5  ;;  %v6973_v50 = vpop.permute.xlu1 %3244 }
 0x189   : > { %5852 = vst.msk [vmem:[%s6933_s14 + $0x88] sm:$0xf] %vm3161_vm1, %v6353_v51  ;;  %5868 = vst.msk [vmem:[%s6933_s14 + $0xc8] sm:$0xf] %vm3161_vm1, %v6369_v60  ;;  %v4710_v58 = vcombine.low %v4685_v53, %v4693_v55  ;;  %v4711_v4 = vcombine.high %v4685_v53, %v4693_v55  ;;  %v4726_v5 = vcombine.low %v4701_v56, %v4709_v57 }
 0x18a   : > { %v4727_v7 = vcombine.high %v4701_v56, %v4709_v57  ;;  %v753_v8 = vrot.slane %v745_v63, %v6774_v54  ;;  %v760_v14 = vrot.slane %v746_v1, %v6774_v54  ;;  %v798_v9 = vcombine.high %v6602_v16, %v6912_v3  ;;  %v3339_v56 = vpop.permute.xlu0 %3338 }
 0x18b   : > { %v4718_v52 = vrot.slane %v4710_v58, %v6778_v61  ;;  %v4725_v45 = vrot.slane %v4711_v4, %v6778_v61  ;;  %v4734_v15 = vrot.slane %v4726_v5, %v6778_v61  ;;  %609 = vrot.lane.b32.xlu0 %v6668_v37, %s6509_s6 }
 0x18c   : > { %v4741_v11 = vrot.slane %v4727_v7, %v6778_v61  ;;  %v761_v12 = vcombine.low %v737_v18, %v753_v8  ;;  %v762_v44 = vcombine.high %v737_v18, %v753_v8  ;;  %v777_v46 = vcombine.low %v744_v62, %v760_v14  ;;  %611 = vrot.lane.b32.xlu1 %v6672_v39, %s6509_s6 }
 0x18d   : > { %v778_v47 = vcombine.high %v744_v62, %v760_v14  ;;  %v4742_v48 = vcombine.low %v4718_v52, %v4734_v15  ;;  %v4743_v2 = vcombine.high %v4718_v52, %v4734_v15  ;;  %v3386_v7 = vcombine.low %v6604_v17, %v3291_v13 }
 0x18e   : > { %v4744_v0 = vcombine.low %v4725_v45, %v4741_v11  ;;  %v4745_v49 = vcombine.high %v4725_v45, %v4741_v11  ;;  %v769_v51 = vrot.slane %v761_v12, %v6778_v61  ;;  %v776_v60 = vrot.slane %v762_v44, %v6778_v61 }
 0x18f   : > { %v785_v53 = vrot.slane %v777_v46, %v6778_v61  ;;  %v792_v55 = vrot.slane %v778_v47, %v6778_v61  ;;  %v6322_v57 = vpack.c.bf16 %v4742_v48, %v4742_v48  ;;  %v6338_v18 = vpack.c.bf16 %v4743_v2, %v4743_v2  ;;  %657 = vrot.lane.b32.xlu0 %v6668_v37, %s6508_s5  ;;  %v3293_v46 = vpop.permute.xlu1 %3292 }
 0x190   : > { %v6354_v62 = vpack.c.bf16 %v4744_v0, %v4744_v0  ;;  %v6370_v63 = vpack.c.bf16 %v4745_v49, %v4745_v49  ;;  %v1817_v1 = vcombine.low %v769_v51, %v776_v60  ;;  %v6058_v58 = vcombine.high %v769_v51, %v776_v60  ;;  %659 = vrot.lane.b32.xlu1 %v6672_v39, %s6508_s5 }
 0x191   : > { %v1833_v4 = vcombine.low %v785_v53, %v792_v55  ;;  %v6059_v5 = vcombine.high %v785_v53, %v792_v55  ;;  %5821 = vst.msk [vmem:[%s6933_s14 + $0xc] sm:$0xf] %vm3161_vm1, %v6322_v57  ;;  %5837 = vst.msk [vmem:[%s6933_s14 + $0x4c] sm:$0xf] %vm3161_vm1, %v6338_v18  ;;  %v3387_v8 = vcombine.high %v6604_v17, %v3291_v13 }
 0x192   : > { %5853 = vst.msk [vmem:[%s6933_s14 + $0x8c] sm:$0xf] %vm3161_vm1, %v6354_v62  ;;  %5869 = vst.msk [vmem:[%s6933_s14 + $0xcc] sm:$0xf] %vm3161_vm1, %v6370_v63  ;;  %v3402_v14 = vcombine.low %v6920_v6, %v3339_v56  ;;  %v3403_v52 = vcombine.high %v6920_v6, %v3339_v56  ;;  %v1824_v45 = vrot.slane %v1817_v1, %v6774_v54 }
 0x193   : > { %v1832_v15 = vrot.slane %v6058_v58, %v6774_v54  ;;  %v1840_v11 = vrot.slane %v1833_v4, %v6774_v54  ;;  %v1848_v12 = vrot.slane %v6059_v5, %v6774_v54  ;;  %v3394_v17 = vrot.slane %v3386_v7, %v6774_v54  ;;  %705 = vrot.lane.b32.xlu0 %v6668_v37, %s6510_s7 }
 0x194   : > { %v3401_v13 = vrot.slane %v3387_v8, %v6774_v54  ;;  %v3410_v6 = vrot.slane %v3402_v14, %v6774_v54  ;;  %v3417_v44 = vrot.slane %v3403_v52, %v6774_v54  ;;  %707 = vrot.lane.b32.xlu1 %v6672_v39, %s6510_s7  ;;  %v7019_v14 = vpop.permute.xlu0 %587 }
 0x195   : > { %v1849_v47 = vcombine.low %v1824_v45, %v1832_v15  ;;  %v1850_v48 = vcombine.high %v1824_v45, %v1832_v15  ;;  %v1865_v2 = vcombine.low %v1840_v11, %v1848_v12  ;;  %v1866_v0 = vcombine.high %v1840_v11, %v1848_v12  ;;  %v3341_v12 = vpop.permute.xlu1 %3340 }
 0x196   : > { %v3418_v49 = vcombine.low %v3394_v17, %v3410_v6  ;;  %v3419_v51 = vcombine.high %v3394_v17, %v3410_v6  ;;  %v3434_v60 = vcombine.low %v3401_v13, %v3417_v44  ;;  %v3435_v53 = vcombine.high %v3401_v13, %v3417_v44 }
 0x197   : > { %v1857_v55 = vrot.slane %v1849_v47, %v6778_v61  ;;  %v1864_v56 = vrot.slane %v1850_v48, %v6778_v61  ;;  %v1873_v57 = vrot.slane %v1865_v2, %v6778_v61  ;;  %v1880_v18 = vrot.slane %v1866_v0, %v6778_v61  ;;  %3266 = vrot.lane.b32.xlu0 %v6692_v41, %s6509_s6 }
 0x198   : > { %v3426_v62 = vrot.slane %v3418_v49, %v6778_v61  ;;  %v3433_v63 = vrot.slane %v3419_v51, %v6778_v61  ;;  %v3442_v1 = vrot.slane %v3434_v60, %v6778_v61  ;;  %v3449_v58 = vrot.slane %v3435_v53, %v6778_v61  ;;  %3268 = vrot.lane.b32.xlu1 %v6696_v43, %s6509_s6 }
 0x199   : > { %v1881_v4 = vcombine.low %v1857_v55, %v1873_v57  ;;  %v1882_v5 = vcombine.high %v1857_v55, %v1873_v57  ;;  %v1883_v7 = vcombine.low %v1864_v56, %v1880_v18  ;;  %v1884_v8 = vcombine.high %v1864_v56, %v1880_v18 }
 0x19a   : > { %v4474_v52 = vcombine.low %v3426_v62, %v3433_v63  ;;  %v6154_v45 = vcombine.high %v3426_v62, %v3433_v63  ;;  %v4490_v15 = vcombine.low %v3442_v1, %v3449_v58  ;;  %v6155_v11 = vcombine.high %v3442_v1, %v3449_v58 }
 0x19b   : > { %v6255_v17 = vpack.c.bf16 %v1881_v4, %v1881_v4  ;;  %v6271_v13 = vpack.c.bf16 %v1882_v5, %v1882_v5  ;;  %v6287_v6 = vpack.c.bf16 %v1883_v7, %v1883_v7  ;;  %v6303_v44 = vpack.c.bf16 %v1884_v8, %v1884_v8  ;;  %3314 = vrot.lane.b32.xlu0 %v6692_v41, %s6508_s5 }
 0x19c   : > { %v4481_v47 = vrot.slane %v4474_v52, %v6774_v54  ;;  %v4489_v48 = vrot.slane %v6154_v45, %v6774_v54  ;;  %v4497_v2 = vrot.slane %v4490_v15, %v6774_v54  ;;  %v4505_v0 = vrot.slane %v6155_v11, %v6774_v54  ;;  %3316 = vrot.lane.b32.xlu1 %v6696_v43, %s6508_s5 }
 0x19d   : > { %3162 = vst.msk [vmem:[%s6840_s11] sm:$0xf] %vm3161_vm1, %v6255_v17  ;;  %3178 = vst.msk [vmem:[%s6840_s11 + $0x40] sm:$0xf] %vm3161_vm1, %v6271_v13  ;;  %v3454_v49 = vcombine.low %v6612_v19, %v3293_v46  ;;  %v3455_v51 = vcombine.high %v6612_v19, %v3293_v46  ;;  %v3470_v60 = vcombine.low %v6973_v50, %v3341_v12  ;;  %v7047_v19 = vpop.permute.xlu0 %597 }
 0x19e   : > { %3194 = vst.msk [vmem:[%s6840_s11 + $0x80] sm:$0xf] %vm3161_vm1, %v6287_v6  ;;  %3210 = vst.msk [vmem:[%s6840_s11 + $0xc0] sm:$0xf] %vm3161_vm1, %v6303_v44  ;;  %v3471_v53 = vcombine.high %v6973_v50, %v3341_v12  ;;  %v4506_v55 = vcombine.low %v4481_v47, %v4489_v48  ;;  %v4507_v56 = vcombine.high %v4481_v47, %v4489_v48 }
 0x19f   : > { %v4522_v57 = vcombine.low %v4497_v2, %v4505_v0  ;;  %v4523_v18 = vcombine.high %v4497_v2, %v4505_v0  ;;  %v3462_v62 = vrot.slane %v3454_v49, %v6774_v54  ;;  %v3469_v63 = vrot.slane %v3455_v51, %v6774_v54  ;;  %3362 = vrot.lane.b32.xlu0 %v6692_v41, %s6510_s7 }
 0x1a0   : > { %v3478_v1 = vrot.slane %v3470_v60, %v6774_v54  ;;  %v3485_v58 = vrot.slane %v3471_v53, %v6774_v54  ;;  %v4514_v50 = vrot.slane %v4506_v55, %v6778_v61  ;;  %v4521_v46 = vrot.slane %v4507_v56, %v6778_v61  ;;  %3364 = vrot.lane.b32.xlu1 %v6696_v43, %s6510_s7 }
 0x1a1   : > { %v4530_v4 = vrot.slane %v4522_v57, %v6778_v61  ;;  %v4537_v5 = vrot.slane %v4523_v18, %v6778_v61  ;;  %v646_v56 = vpop.permute.xlu0 %645  ;;  %v805_v57 = vrot.slane %v797_v10, %v6774_v54  ;;  %v812_v18 = vrot.slane %v798_v9, %v6774_v54 }
 0x1a2   : > { %v3486_v7 = vcombine.low %v3462_v62, %v3478_v1  ;;  %v3487_v8 = vcombine.high %v3462_v62, %v3478_v1  ;;  %v3502_v52 = vcombine.low %v3469_v63, %v3485_v58  ;;  %v3503_v45 = vcombine.high %v3469_v63, %v3485_v58 }
 0x1a3   : > { %v4538_v15 = vcombine.low %v4514_v50, %v4530_v4  ;;  %v4539_v11 = vcombine.high %v4514_v50, %v4530_v4  ;;  %v4540_v12 = vcombine.low %v4521_v46, %v4537_v5  ;;  %v4541_v17 = vcombine.high %v4521_v46, %v4537_v5  ;;  %3366 = vrot.lane.b32.xlu0 %v6686_v40, %s6510_s7 }
 0x1a4   : > { %v3494_v13 = vrot.slane %v3486_v7, %v6778_v61  ;;  %v3501_v6 = vrot.slane %v3487_v8, %v6778_v61  ;;  %v3510_v44 = vrot.slane %v3502_v52, %v6778_v61  ;;  %v3517_v47 = vrot.slane %v3503_v45, %v6778_v61  ;;  %3368 = vrot.lane.b32.xlu1 %v6694_v42, %s6510_s7 }
 0x1a5   : > { %v6319_v48 = vpack.c.bf16 %v4538_v15, %v4538_v15  ;;  %v6335_v2 = vpack.c.bf16 %v4539_v11, %v4539_v11  ;;  %v6351_v0 = vpack.c.bf16 %v4540_v12, %v4540_v12  ;;  %v6367_v49 = vpack.c.bf16 %v4541_v17, %v4541_v17  ;;  %v7095_v15 = vpop.permute.xlu1 %599 }
 0x1a6   : > { %v4542_v51 = vcombine.low %v3494_v13, %v3501_v6  ;;  %v6156_v60 = vcombine.high %v3494_v13, %v3501_v6  ;;  %v4558_v53 = vcombine.low %v3510_v44, %v3517_v47  ;;  %v6157_v55 = vcombine.high %v3510_v44, %v3517_v47 }
 0x1a7   : > { %5818 = vst.msk [vmem:[%s6933_s14] sm:$0xf] %vm3161_vm1, %v6319_v48  ;;  %5834 = vst.msk [vmem:[%s6933_s14 + $0x40] sm:$0xf] %vm3161_vm1, %v6335_v2  ;;  %v813_v62 = vcombine.low %v7019_v14, %v6943_v59  ;;  %v814_v63 = vcombine.high %v7019_v14, %v6943_v59  ;;  %v1137_v59 = vcombine.low %v6614_v20, %v646_v56 }
 0x1a8   : > { %5850 = vst.msk [vmem:[%s6933_s14 + $0x80] sm:$0xf] %vm3161_vm1, %v6351_v0  ;;  %5866 = vst.msk [vmem:[%s6933_s14 + $0xc0] sm:$0xf] %vm3161_vm1, %v6367_v49  ;;  %v4549_v16 = vrot.slane %v4542_v51, %v6774_v54  ;;  %v4557_v3 = vrot.slane %v6156_v60, %v6774_v54  ;;  %v4565_v10 = vrot.slane %v4558_v53, %v6774_v54  ;;  %v694_v51 = vpop.permute.xlu0 %693 }
 0x1a9   : > { %v4573_v9 = vrot.slane %v6157_v55, %v6774_v54  ;;  %v821_v1 = vrot.slane %v813_v62, %v6774_v54  ;;  %v828_v58 = vrot.slane %v814_v63, %v6774_v54  ;;  %v1138_v14 = vcombine.high %v6614_v20, %v646_v56 }
 0x1aa   : > { %v4574_v50 = vcombine.low %v4549_v16, %v4557_v3  ;;  %v4575_v46 = vcombine.high %v4549_v16, %v4557_v3 }
 0x1ab   : > { %v4590_v4 = vcombine.low %v4565_v10, %v4573_v9  ;;  %v4591_v5 = vcombine.high %v4565_v10, %v4573_v9  ;;  %v829_v7 = vcombine.low %v805_v57, %v821_v1  ;;  %v830_v8 = vcombine.high %v805_v57, %v821_v1  ;;  %v648_v1 = vpop.permute.xlu1 %647 }
 0x1ac   : > { %v845_v52 = vcombine.low %v812_v18, %v828_v58  ;;  %v846_v45 = vcombine.high %v812_v18, %v828_v58  ;;  %v4582_v11 = vrot.slane %v4574_v50, %v6778_v61  ;;  %v4589_v12 = vrot.slane %v4575_v46, %v6778_v61 }
 0x1ad   : > { %v4598_v17 = vrot.slane %v4590_v4, %v6778_v61  ;;  %v4605_v13 = vrot.slane %v4591_v5, %v6778_v61  ;;  %v837_v20 = vrot.slane %v829_v7, %v6778_v61  ;;  %v844_v6 = vrot.slane %v830_v8, %v6778_v61 }
 0x1ae   : > { %v853_v44 = vrot.slane %v845_v52, %v6778_v61  ;;  %v860_v47 = vrot.slane %v846_v45, %v6778_v61  ;;  %v1145_v58 = vrot.slane %v1137_v59, %v6774_v54  ;;  %v1152_v50 = vrot.slane %v1138_v14, %v6774_v54 }
 0x1af   : > { %v4606_v48 = vcombine.low %v4582_v11, %v4598_v17  ;;  %v4607_v2 = vcombine.high %v4582_v11, %v4598_v17  ;;  %v4608_v0 = vcombine.low %v4589_v12, %v4605_v13  ;;  %v4609_v49 = vcombine.high %v4589_v12, %v4605_v13  ;;  %v7125_v13 = vpop.permute.xlu0 %3254 }
 0x1b0   : > { %v1885_v60 = vcombine.low %v837_v20, %v844_v6  ;;  %v6060_v53 = vcombine.high %v837_v20, %v844_v6  ;;  %v1901_v55 = vcombine.low %v853_v44, %v860_v47  ;;  %v6061_v56 = vcombine.high %v853_v44, %v860_v47 }
 0x1b1   : > { %v6320_v57 = vpack.c.bf16 %v4606_v48, %v4606_v48  ;;  %v6336_v18 = vpack.c.bf16 %v4607_v2, %v4607_v2  ;;  %v6352_v62 = vpack.c.bf16 %v4608_v0, %v4608_v0  ;;  %v6368_v63 = vpack.c.bf16 %v4609_v49, %v4609_v49 }
 0x1b2   : > { %v1892_v16 = vrot.slane %v1885_v60, %v6774_v54  ;;  %v1900_v3 = vrot.slane %v6060_v53, %v6774_v54  ;;  %v1908_v10 = vrot.slane %v1901_v55, %v6774_v54  ;;  %v1916_v9 = vrot.slane %v6061_v56, %v6774_v54  ;;  %v696_v56 = vpop.permute.xlu1 %695 }
 0x1b3   : > { %5819 = vst.msk [vmem:[%s6933_s14 + $0x4] sm:$0xf] %vm3161_vm1, %v6320_v57  ;;  %5835 = vst.msk [vmem:[%s6933_s14 + $0x44] sm:$0xf] %vm3161_vm1, %v6336_v18  ;;  %v1153_v46 = vcombine.low %v7047_v19, %v694_v51  ;;  %v1154_v4 = vcombine.high %v7047_v19, %v694_v51  ;;  %v1205_v45 = vcombine.low %v6622_v22, %v648_v1 }
 0x1b4   : > { %5851 = vst.msk [vmem:[%s6933_s14 + $0x84] sm:$0xf] %vm3161_vm1, %v6352_v62  ;;  %5867 = vst.msk [vmem:[%s6933_s14 + $0xc4] sm:$0xf] %vm3161_vm1, %v6368_v63  ;;  %v1917_v5 = vcombine.low %v1892_v16, %v1900_v3  ;;  %v1918_v7 = vcombine.high %v1892_v16, %v1900_v3  ;;  %v1933_v8 = vcombine.low %v1908_v10, %v1916_v9 }
 0x1b5   : > { %v1934_v52 = vcombine.high %v1908_v10, %v1916_v9  ;;  %v1206_v11 = vcombine.high %v6622_v22, %v648_v1  ;;  %v1161_v12 = vrot.slane %v1153_v46, %v6774_v54  ;;  %v1168_v17 = vrot.slane %v1154_v4, %v6774_v54  ;;  %v3303_v1 = vpop.permute.xlu0 %3302 }
 0x1b6   : > { %v1925_v59 = vrot.slane %v1917_v5, %v6778_v61  ;;  %v1932_v14 = vrot.slane %v1918_v7, %v6778_v61  ;;  %v1941_v19 = vrot.slane %v1933_v8, %v6778_v61  ;;  %v1221_v46 = vcombine.low %v7095_v15, %v696_v56 }
 0x1b7   : > { %v1948_v20 = vrot.slane %v1934_v52, %v6778_v61  ;;  %v1169_v6 = vcombine.low %v1145_v58, %v1161_v12  ;;  %v1170_v44 = vcombine.high %v1145_v58, %v1161_v12  ;;  %v1185_v47 = vcombine.low %v1152_v50, %v1168_v17 }
 0x1b8   : > { %v1186_v48 = vcombine.high %v1152_v50, %v1168_v17  ;;  %v1949_v2 = vcombine.low %v1925_v59, %v1941_v19  ;;  %v1950_v22 = vcombine.high %v1925_v59, %v1941_v19  ;;  %v1213_v58 = vrot.slane %v1205_v45, %v6774_v54 }
 0x1b9   : > { %v1951_v0 = vcombine.low %v1932_v14, %v1948_v20  ;;  %v1952_v49 = vcombine.high %v1932_v14, %v1948_v20  ;;  %v1177_v51 = vrot.slane %v1169_v6, %v6778_v61  ;;  %v1184_v60 = vrot.slane %v1170_v44, %v6778_v61 }
 0x1ba   : > { %v1193_v53 = vrot.slane %v1185_v47, %v6778_v61  ;;  %v1200_v55 = vrot.slane %v1186_v48, %v6778_v61  ;;  %v6256_v57 = vpack.c.bf16 %v1949_v2, %v1949_v2  ;;  %v6272_v18 = vpack.c.bf16 %v1950_v22, %v1950_v22  ;;  %v7155_v48 = vpop.permute.xlu1 %3256 }
 0x1bb   : > { %v6288_v62 = vpack.c.bf16 %v1951_v0, %v1951_v0  ;;  %v6304_v63 = vpack.c.bf16 %v1952_v49, %v1952_v49  ;;  %v2225_v16 = vcombine.low %v1177_v51, %v1184_v60  ;;  %v6070_v3 = vcombine.high %v1177_v51, %v1184_v60 }
 0x1bc   : > { %v2241_v10 = vcombine.low %v1193_v53, %v1200_v55  ;;  %v6071_v9 = vcombine.high %v1193_v53, %v1200_v55  ;;  %3163 = vst.msk [vmem:[%s6840_s11 + $0x4] sm:$0xf] %vm3161_vm1, %v6256_v57  ;;  %3179 = vst.msk [vmem:[%s6840_s11 + $0x44] sm:$0xf] %vm3161_vm1, %v6272_v18  ;;  %v1220_v50 = vrot.slane %v1206_v11, %v6774_v54 }
 0x1bd   : > { %3195 = vst.msk [vmem:[%s6840_s11 + $0x84] sm:$0xf] %vm3161_vm1, %v6288_v62  ;;  %3211 = vst.msk [vmem:[%s6840_s11 + $0xc4] sm:$0xf] %vm3161_vm1, %v6304_v63  ;;  %v1222_v4 = vcombine.high %v7095_v15, %v696_v56  ;;  %v2232_v5 = vrot.slane %v2225_v16, %v6774_v54  ;;  %v2240_v7 = vrot.slane %v6070_v3, %v6774_v54  ;;  %v3351_v62 = vpop.permute.xlu0 %3350 }
 0x1be   : > { %v2248_v8 = vrot.slane %v2241_v10, %v6774_v54  ;;  %v2256_v52 = vrot.slane %v6071_v9, %v6774_v54  ;;  %v1229_v12 = vrot.slane %v1221_v46, %v6774_v54  ;;  %v3794_v45 = vcombine.low %v6624_v23, %v3303_v1 }
 0x1bf   : > { %v1236_v17 = vrot.slane %v1222_v4, %v6774_v54  ;;  %v3795_v11 = vcombine.high %v6624_v23, %v3303_v1  ;;  %v2257_v59 = vcombine.low %v2232_v5, %v2240_v7  ;;  %v2258_v14 = vcombine.high %v2232_v5, %v2240_v7 }
 0x1c0   : > { %v2273_v19 = vcombine.low %v2248_v8, %v2256_v52  ;;  %v2274_v15 = vcombine.high %v2248_v8, %v2256_v52  ;;  %v1237_v20 = vcombine.low %v1213_v58, %v1229_v12  ;;  %v1238_v6 = vcombine.high %v1213_v58, %v1229_v12  ;;  %v3305_v8 = vpop.permute.xlu1 %3304 }
 0x1c1   : > { %v1253_v44 = vcombine.low %v1220_v50, %v1236_v17  ;;  %v1254_v47 = vcombine.high %v1220_v50, %v1236_v17  ;;  %v2265_v2 = vrot.slane %v2257_v59, %v6778_v61  ;;  %v2272_v22 = vrot.slane %v2258_v14, %v6778_v61 }
 0x1c2   : > { %v2281_v0 = vrot.slane %v2273_v19, %v6778_v61  ;;  %v2288_v49 = vrot.slane %v2274_v15, %v6778_v61  ;;  %v1245_v23 = vrot.slane %v1237_v20, %v6778_v61  ;;  %v1252_v51 = vrot.slane %v1238_v6, %v6778_v61 }
 0x1c3   : > { %v1261_v60 = vrot.slane %v1253_v44, %v6778_v61  ;;  %v1268_v53 = vrot.slane %v1254_v47, %v6778_v61  ;;  %v3802_v52 = vrot.slane %v3794_v45, %v6774_v54  ;;  %v3809_v12 = vrot.slane %v3795_v11, %v6774_v54 }
 0x1c4   : > { %v2289_v55 = vcombine.low %v2265_v2, %v2281_v0  ;;  %v2290_v56 = vcombine.high %v2265_v2, %v2281_v0  ;;  %v2291_v57 = vcombine.low %v2272_v22, %v2288_v49  ;;  %v2292_v18 = vcombine.high %v2272_v22, %v2288_v49  ;;  %v7185_v22 = vpop.permute.xlu0 %593 }
 0x1c5   : > { %v2293_v63 = vcombine.low %v1245_v23, %v1252_v51  ;;  %v6072_v16 = vcombine.high %v1245_v23, %v1252_v51  ;;  %v2309_v3 = vcombine.low %v1261_v60, %v1268_v53  ;;  %v6073_v10 = vcombine.high %v1261_v60, %v1268_v53 }
 0x1c6   : > { %v6261_v9 = vpack.c.bf16 %v2289_v55, %v2289_v55  ;;  %v6277_v1 = vpack.c.bf16 %v2290_v56, %v2290_v56  ;;  %v6293_v58 = vpack.c.bf16 %v2291_v57, %v2291_v57  ;;  %v6309_v50 = vpack.c.bf16 %v2292_v18, %v2292_v18 }
 0x1c7   : > { %v2300_v46 = vrot.slane %v2293_v63, %v6774_v54  ;;  %v2308_v4 = vrot.slane %v6072_v16, %v6774_v54  ;;  %v2316_v5 = vrot.slane %v2309_v3, %v6774_v54  ;;  %v2324_v7 = vrot.slane %v6073_v10, %v6774_v54  ;;  %v3353_v16 = vpop.permute.xlu1 %3352 }
 0x1c8   : > { %3168 = vst.msk [vmem:[%s6840_s11 + $0x18] sm:$0xf] %vm3161_vm1, %v6261_v9  ;;  %3184 = vst.msk [vmem:[%s6840_s11 + $0x58] sm:$0xf] %vm3161_vm1, %v6277_v1  ;;  %v3810_v17 = vcombine.low %v7125_v13, %v3351_v62  ;;  %v3811_v59 = vcombine.high %v7125_v13, %v3351_v62  ;;  %v3862_v6 = vcombine.low %v6630_v26, %v3305_v8 }
 0x1c9   : > { %3200 = vst.msk [vmem:[%s6840_s11 + $0x98] sm:$0xf] %vm3161_vm1, %v6293_v58  ;;  %3216 = vst.msk [vmem:[%s6840_s11 + $0xd8] sm:$0xf] %vm3161_vm1, %v6309_v50  ;;  %v2325_v14 = vcombine.low %v2300_v46, %v2308_v4  ;;  %v2326_v19 = vcombine.high %v2300_v46, %v2308_v4  ;;  %v2341_v15 = vcombine.low %v2316_v5, %v2324_v7 }
 0x1ca   : > { %v2342_v20 = vcombine.high %v2316_v5, %v2324_v7  ;;  %v3863_v44 = vcombine.high %v6630_v26, %v3305_v8  ;;  %v3818_v47 = vrot.slane %v3810_v17, %v6774_v54  ;;  %v3825_v2 = vrot.slane %v3811_v59, %v6774_v54  ;;  %v642_v5 = vpop.permute.xlu0 %641 }
 0x1cb   : > { %v2333_v45 = vrot.slane %v2325_v14, %v6778_v61  ;;  %v2340_v11 = vrot.slane %v2326_v19, %v6778_v61  ;;  %v2349_v13 = vrot.slane %v2341_v15, %v6778_v61  ;;  %v3870_v7 = vrot.slane %v3862_v6, %v6774_v54 }
 0x1cc   : > { %v2356_v0 = vrot.slane %v2342_v20, %v6778_v61  ;;  %v3826_v49 = vcombine.low %v3802_v52, %v3818_v47  ;;  %v3827_v23 = vcombine.high %v3802_v52, %v3818_v47  ;;  %v3842_v51 = vcombine.low %v3809_v12, %v3825_v2 }
 0x1cd   : > { %v3843_v60 = vcombine.high %v3809_v12, %v3825_v2  ;;  %v2357_v53 = vcombine.low %v2333_v45, %v2349_v13  ;;  %v2358_v26 = vcombine.high %v2333_v45, %v2349_v13  ;;  %v3877_v8 = vrot.slane %v3863_v44, %v6774_v54 }
 0x1ce   : > { %v2359_v55 = vcombine.low %v2340_v11, %v2356_v0  ;;  %v2360_v56 = vcombine.high %v2340_v11, %v2356_v0  ;;  %v3834_v57 = vrot.slane %v3826_v49, %v6778_v61  ;;  %v3841_v18 = vrot.slane %v3827_v23, %v6778_v61  ;;  %v7215_v23 = vpop.permute.xlu1 %595 }
 0x1cf   : > { %v3850_v62 = vrot.slane %v3842_v51, %v6778_v61  ;;  %v3857_v63 = vrot.slane %v3843_v60, %v6778_v61  ;;  %v6262_v3 = vpack.c.bf16 %v2357_v53, %v2357_v53  ;;  %v6278_v10 = vpack.c.bf16 %v2358_v26, %v2358_v26 }
 0x1d0   : > { %v6294_v9 = vpack.c.bf16 %v2359_v55, %v2359_v55  ;;  %v6310_v1 = vpack.c.bf16 %v2360_v56, %v2360_v56  ;;  %v4882_v58 = vcombine.low %v3834_v57, %v3841_v18  ;;  %v6166_v50 = vcombine.high %v3834_v57, %v3841_v18 }
 0x1d1   : > { %v4898_v46 = vcombine.low %v3850_v62, %v3857_v63  ;;  %v6167_v4 = vcombine.high %v3850_v62, %v3857_v63  ;;  %3169 = vst.msk [vmem:[%s6840_s11 + $0x1c] sm:$0xf] %vm3161_vm1, %v6262_v3  ;;  %3185 = vst.msk [vmem:[%s6840_s11 + $0x5c] sm:$0xf] %vm3161_vm1, %v6278_v10  ;;  %v3878_v52 = vcombine.low %v7155_v48, %v3353_v16  ;;  %v690_v3 = vpop.permute.xlu0 %689 }
 0x1d2   : > { %3201 = vst.msk [vmem:[%s6840_s11 + $0x9c] sm:$0xf] %vm3161_vm1, %v6294_v9  ;;  %3217 = vst.msk [vmem:[%s6840_s11 + $0xdc] sm:$0xf] %vm3161_vm1, %v6310_v1  ;;  %v3879_v12 = vcombine.high %v7155_v48, %v3353_v16  ;;  %v4889_v17 = vrot.slane %v4882_v58, %v6774_v54  ;;  %v4897_v59 = vrot.slane %v6166_v50, %v6774_v54 }
 0x1d3   : > { %v4905_v14 = vrot.slane %v4898_v46, %v6774_v54  ;;  %v4913_v19 = vrot.slane %v6167_v4, %v6774_v54  ;;  %v3886_v15 = vrot.slane %v3878_v52, %v6774_v54  ;;  %v1001_v6 = vcombine.low %v6620_v21, %v642_v5 }
 0x1d4   : > { %v3893_v20 = vrot.slane %v3879_v12, %v6774_v54  ;;  %v1002_v44 = vcombine.high %v6620_v21, %v642_v5  ;;  %v4914_v47 = vcombine.low %v4889_v17, %v4897_v59  ;;  %v4915_v2 = vcombine.high %v4889_v17, %v4897_v59  ;;  %v644_v17 = vpop.permute.xlu1 %643 }
 0x1d5   : > { %v4930_v45 = vcombine.low %v4905_v14, %v4913_v19  ;;  %v4931_v48 = vcombine.high %v4905_v14, %v4913_v19  ;;  %v3894_v11 = vcombine.low %v3870_v7, %v3886_v15  ;;  %v3895_v13 = vcombine.high %v3870_v7, %v3886_v15 }
 0x1d6   : > { %v3910_v0 = vcombine.low %v3877_v8, %v3893_v20  ;;  %v3911_v49 = vcombine.high %v3877_v8, %v3893_v20  ;;  %v4922_v51 = vrot.slane %v4914_v47, %v6778_v61  ;;  %v4929_v60 = vrot.slane %v4915_v2, %v6778_v61 }
 0x1d7   : > { %v4938_v53 = vrot.slane %v4930_v45, %v6778_v61  ;;  %v4945_v26 = vrot.slane %v4931_v48, %v6778_v61  ;;  %v3902_v21 = vrot.slane %v3894_v11, %v6778_v61  ;;  %v3909_v55 = vrot.slane %v3895_v13, %v6778_v61 }
 0x1d8   : > { %v3918_v56 = vrot.slane %v3910_v0, %v6778_v61  ;;  %v3925_v57 = vrot.slane %v3911_v49, %v6778_v61  ;;  %v1009_v59 = vrot.slane %v1001_v6, %v6774_v54  ;;  %v1016_v14 = vrot.slane %v1002_v44, %v6774_v54  ;;  %v7245_v49 = vpop.permute.xlu0 %3250 }
 0x1d9   : > { %v4946_v18 = vcombine.low %v4922_v51, %v4938_v53  ;;  %v4947_v62 = vcombine.high %v4922_v51, %v4938_v53  ;;  %v4948_v63 = vcombine.low %v4929_v60, %v4945_v26  ;;  %v4949_v16 = vcombine.high %v4929_v60, %v4945_v26 }
 0x1da   : > { %v4950_v10 = vcombine.low %v3902_v21, %v3909_v55  ;;  %v6168_v9 = vcombine.high %v3902_v21, %v3909_v55  ;;  %v4966_v1 = vcombine.low %v3918_v56, %v3925_v57  ;;  %v6169_v58 = vcombine.high %v3918_v56, %v3925_v57 }
 0x1db   : > { %v6325_v50 = vpack.c.bf16 %v4946_v18, %v4946_v18  ;;  %v6341_v46 = vpack.c.bf16 %v4947_v62, %v4947_v62  ;;  %v6357_v4 = vpack.c.bf16 %v4948_v63, %v4948_v63  ;;  %v6373_v5 = vpack.c.bf16 %v4949_v16, %v4949_v16 }
 0x1dc   : > { %v4957_v7 = vrot.slane %v4950_v10, %v6774_v54  ;;  %v4965_v8 = vrot.slane %v6168_v9, %v6774_v54  ;;  %v4973_v52 = vrot.slane %v4966_v1, %v6774_v54  ;;  %v4981_v12 = vrot.slane %v6169_v58, %v6774_v54 }
 0x1dd   : > { %5824 = vst.msk [vmem:[%s6933_s14 + $0x18] sm:$0xf] %vm3161_vm1, %v6325_v50  ;;  %5840 = vst.msk [vmem:[%s6933_s14 + $0x58] sm:$0xf] %vm3161_vm1, %v6341_v46  ;;  %v1017_v19 = vcombine.low %v7185_v22, %v690_v3  ;;  %v1018_v15 = vcombine.high %v7185_v22, %v690_v3  ;;  %v1069_v48 = vcombine.low %v6626_v24, %v644_v17  ;;  %v692_v3 = vpop.permute.xlu1 %691 }
 0x1de   : > { %5856 = vst.msk [vmem:[%s6933_s14 + $0x98] sm:$0xf] %vm3161_vm1, %v6357_v4  ;;  %5872 = vst.msk [vmem:[%s6933_s14 + $0xd8] sm:$0xf] %vm3161_vm1, %v6373_v5  ;;  %v4982_v20 = vcombine.low %v4957_v7, %v4965_v8  ;;  %v4983_v47 = vcombine.high %v4957_v7, %v4965_v8  ;;  %v4998_v2 = vcombine.low %v4973_v52, %v4981_v12  ;;  %v3299_v7 = vpop.permute.xlu0 %3298 }
 0x1df   : > { %v4999_v45 = vcombine.high %v4973_v52, %v4981_v12  ;;  %v1070_v11 = vcombine.high %v6626_v24, %v644_v17  ;;  %v1025_v13 = vrot.slane %v1017_v19, %v6774_v54  ;;  %v1032_v0 = vrot.slane %v1018_v15, %v6774_v54 }
 0x1e0   : > { %v4990_v6 = vrot.slane %v4982_v20, %v6778_v61  ;;  %v4997_v44 = vrot.slane %v4983_v47, %v6778_v61  ;;  %v5006_v22 = vrot.slane %v4998_v2, %v6778_v61  ;;  %v1077_v8 = vrot.slane %v1069_v48, %v6774_v54 }
 0x1e1   : > { %v5013_v51 = vrot.slane %v4999_v45, %v6778_v61  ;;  %v1033_v60 = vcombine.low %v1009_v59, %v1025_v13  ;;  %v1034_v53 = vcombine.high %v1009_v59, %v1025_v13  ;;  %v1049_v26 = vcombine.low %v1016_v14, %v1032_v0 }
 0x1e2   : > { %v1050_v21 = vcombine.high %v1016_v14, %v1032_v0  ;;  %v5014_v55 = vcombine.low %v4990_v6, %v5006_v22  ;;  %v5015_v24 = vcombine.high %v4990_v6, %v5006_v22  ;;  %v1084_v52 = vrot.slane %v1070_v11, %v6774_v54 }
 0x1e3   : > { %v5016_v56 = vcombine.low %v4997_v44, %v5013_v51  ;;  %v5017_v57 = vcombine.high %v4997_v44, %v5013_v51  ;;  %v1041_v18 = vrot.slane %v1033_v60, %v6778_v61  ;;  %v1048_v62 = vrot.slane %v1034_v53, %v6778_v61  ;;  %v7275_v51 = vpop.permute.xlu1 %3252 }
 0x1e4   : > { %v1057_v63 = vrot.slane %v1049_v26, %v6778_v61  ;;  %v1064_v16 = vrot.slane %v1050_v21, %v6778_v61  ;;  %v6326_v10 = vpack.c.bf16 %v5014_v55, %v5014_v55  ;;  %v6342_v9 = vpack.c.bf16 %v5015_v24, %v5015_v24  ;;  %v3347_v55 = vpop.permute.xlu0 %3346 }
 0x1e5   : > { %v6358_v1 = vpack.c.bf16 %v5016_v56, %v5016_v56  ;;  %v6374_v58 = vpack.c.bf16 %v5017_v57, %v5017_v57  ;;  %v2089_v50 = vcombine.low %v1041_v18, %v1048_v62  ;;  %v6066_v46 = vcombine.high %v1041_v18, %v1048_v62 }
 0x1e6   : > { %v2105_v4 = vcombine.low %v1057_v63, %v1064_v16  ;;  %v6067_v5 = vcombine.high %v1057_v63, %v1064_v16  ;;  %5825 = vst.msk [vmem:[%s6933_s14 + $0x1c] sm:$0xf] %vm3161_vm1, %v6326_v10  ;;  %5841 = vst.msk [vmem:[%s6933_s14 + $0x5c] sm:$0xf] %vm3161_vm1, %v6342_v9  ;;  %v1085_v12 = vcombine.low %v7215_v23, %v692_v3 }
 0x1e7   : > { %5857 = vst.msk [vmem:[%s6933_s14 + $0x9c] sm:$0xf] %vm3161_vm1, %v6358_v1  ;;  %5873 = vst.msk [vmem:[%s6933_s14 + $0xdc] sm:$0xf] %vm3161_vm1, %v6374_v58  ;;  %v1086_v17 = vcombine.high %v7215_v23, %v692_v3  ;;  %v2096_v59 = vrot.slane %v2089_v50, %v6774_v54  ;;  %v2104_v14 = vrot.slane %v6066_v46, %v6774_v54 }
 0x1e8   : > { %v2112_v19 = vrot.slane %v2105_v4, %v6774_v54  ;;  %v2120_v15 = vrot.slane %v6067_v5, %v6774_v54  ;;  %v1093_v20 = vrot.slane %v1085_v12, %v6774_v54  ;;  %v3658_v2 = vcombine.low %v6628_v25, %v3299_v7  ;;  %v3301_v12 = vpop.permute.xlu1 %3300 }
 0x1e9   : > { %v1100_v47 = vrot.slane %v1086_v17, %v6774_v54  ;;  %v3659_v45 = vcombine.high %v6628_v25, %v3299_v7  ;;  %v2121_v48 = vcombine.low %v2096_v59, %v2104_v14  ;;  %v2122_v11 = vcombine.high %v2096_v59, %v2104_v14 }
 0x1ea   : > { %v2137_v13 = vcombine.low %v2112_v19, %v2120_v15  ;;  %v2138_v23 = vcombine.high %v2112_v19, %v2120_v15  ;;  %v1101_v0 = vcombine.low %v1077_v8, %v1093_v20  ;;  %v1102_v6 = vcombine.high %v1077_v8, %v1093_v20  ;;  %v7301_v15 = vpop.permute.xlu0 %605 }
 0x1eb   : > { %v1117_v44 = vcombine.low %v1084_v52, %v1100_v47  ;;  %v1118_v22 = vcombine.high %v1084_v52, %v1100_v47  ;;  %v2129_v60 = vrot.slane %v2121_v48, %v6778_v61  ;;  %v2136_v53 = vrot.slane %v2122_v11, %v6778_v61 }
 0x1ec   : > { %v2145_v26 = vrot.slane %v2137_v13, %v6778_v61  ;;  %v2152_v21 = vrot.slane %v2138_v23, %v6778_v61  ;;  %v1109_v25 = vrot.slane %v1101_v0, %v6778_v61  ;;  %v1116_v24 = vrot.slane %v1102_v6, %v6778_v61 }
 0x1ed   : > { %v1125_v56 = vrot.slane %v1117_v44, %v6778_v61  ;;  %v1132_v57 = vrot.slane %v1118_v22, %v6778_v61  ;;  %v3666_v17 = vrot.slane %v3658_v2, %v6774_v54  ;;  %v3673_v59 = vrot.slane %v3659_v45, %v6774_v54 }
 0x1ee   : > { %v2153_v18 = vcombine.low %v2129_v60, %v2145_v26  ;;  %v2154_v62 = vcombine.high %v2129_v60, %v2145_v26  ;;  %v2155_v63 = vcombine.low %v2136_v53, %v2152_v21  ;;  %v2156_v16 = vcombine.high %v2136_v53, %v2152_v21 }
 0x1ef   : > { %v2157_v3 = vcombine.low %v1109_v25, %v1116_v24  ;;  %v6068_v10 = vcombine.high %v1109_v25, %v1116_v24  ;;  %v2173_v9 = vcombine.low %v1125_v56, %v1132_v57  ;;  %v6069_v1 = vcombine.high %v1125_v56, %v1132_v57 }
 0x1f0   : > { %v6259_v58 = vpack.c.bf16 %v2153_v18, %v2153_v18  ;;  %v6275_v50 = vpack.c.bf16 %v2154_v62, %v2154_v62  ;;  %v6291_v46 = vpack.c.bf16 %v2155_v63, %v2155_v63  ;;  %v6307_v4 = vpack.c.bf16 %v2156_v16, %v2156_v16  ;;  %v3349_v62 = vpop.permute.xlu1 %3348  ;;  %v7315_v63 = vpop.permute.xlu0 %653 }
 0x1f1   : > { %v2164_v5 = vrot.slane %v2157_v3, %v6774_v54  ;;  %v2172_v7 = vrot.slane %v6068_v10, %v6774_v54  ;;  %v2180_v8 = vrot.slane %v2173_v9, %v6774_v54  ;;  %v2188_v52 = vrot.slane %v6069_v1, %v6774_v54 }
 0x1f2   : > { %3166 = vst.msk [vmem:[%s6840_s11 + $0x10] sm:$0xf] %vm3161_vm1, %v6259_v58  ;;  %3182 = vst.msk [vmem:[%s6840_s11 + $0x50] sm:$0xf] %vm3161_vm1, %v6275_v50  ;;  %v3674_v14 = vcombine.low %v7245_v49, %v3347_v55  ;;  %v3675_v19 = vcombine.high %v7245_v49, %v3347_v55  ;;  %v3726_v13 = vcombine.low %v6636_v27, %v3301_v12 }
 0x1f3   : > { %3198 = vst.msk [vmem:[%s6840_s11 + $0x90] sm:$0xf] %vm3161_vm1, %v6291_v46  ;;  %3214 = vst.msk [vmem:[%s6840_s11 + $0xd0] sm:$0xf] %vm3161_vm1, %v6307_v4  ;;  %v2189_v20 = vcombine.low %v2164_v5, %v2172_v7  ;;  %v2190_v47 = vcombine.high %v2164_v5, %v2172_v7  ;;  %v2205_v48 = vcombine.low %v2180_v8, %v2188_v52 }
 0x1f4   : > { %v2206_v11 = vcombine.high %v2180_v8, %v2188_v52  ;;  %v3727_v23 = vcombine.high %v6636_v27, %v3301_v12  ;;  %v3682_v0 = vrot.slane %v3674_v14, %v6774_v54  ;;  %v3689_v2 = vrot.slane %v3675_v19, %v6774_v54 }
 0x1f5   : > { %v2197_v45 = vrot.slane %v2189_v20, %v6778_v61  ;;  %v2204_v6 = vrot.slane %v2190_v47, %v6778_v61  ;;  %v2213_v49 = vrot.slane %v2205_v48, %v6778_v61  ;;  %v3734_v4 = vrot.slane %v3726_v13, %v6774_v54 }
 0x1f6   : > { %v2220_v44 = vrot.slane %v2206_v11, %v6778_v61  ;;  %v3690_v22 = vcombine.low %v3666_v17, %v3682_v0  ;;  %v3691_v60 = vcombine.high %v3666_v17, %v3682_v0  ;;  %v3706_v53 = vcombine.low %v3673_v59, %v3689_v2  ;;  %v702_v0 = vpop.permute.xlu0 %701 }
 0x1f7   : > { %v3707_v26 = vcombine.high %v3673_v59, %v3689_v2  ;;  %v2221_v21 = vcombine.low %v2197_v45, %v2213_v49  ;;  %v2222_v55 = vcombine.high %v2197_v45, %v2213_v49  ;;  %v3741_v5 = vrot.slane %v3727_v23, %v6774_v54  ;;  %v7339_v23 = vpop.permute.xlu1 %607 }
 0x1f8   : > { %v2223_v25 = vcombine.low %v2204_v6, %v2220_v44  ;;  %v2224_v27 = vcombine.high %v2204_v6, %v2220_v44  ;;  %v3698_v24 = vrot.slane %v3690_v22, %v6778_v61  ;;  %v3705_v56 = vrot.slane %v3691_v60, %v6778_v61 }
 0x1f9   : > { %v3714_v57 = vrot.slane %v3706_v53, %v6778_v61  ;;  %v3721_v18 = vrot.slane %v3707_v26, %v6778_v61  ;;  %v6260_v16 = vpack.c.bf16 %v2221_v21, %v2221_v21  ;;  %v6276_v3 = vpack.c.bf16 %v2222_v55, %v2222_v55 }
 0x1fa   : > { %v6292_v10 = vpack.c.bf16 %v2223_v25, %v2223_v25  ;;  %v6308_v9 = vpack.c.bf16 %v2224_v27, %v2224_v27  ;;  %v4746_v1 = vcombine.low %v3698_v24, %v3705_v56  ;;  %v6162_v58 = vcombine.high %v3698_v24, %v3705_v56 }
 0x1fb   : > { %v4762_v50 = vcombine.low %v3714_v57, %v3721_v18  ;;  %v6163_v46 = vcombine.high %v3714_v57, %v3721_v18  ;;  %3167 = vst.msk [vmem:[%s6840_s11 + $0x14] sm:$0xf] %vm3161_vm1, %v6260_v16  ;;  %3183 = vst.msk [vmem:[%s6840_s11 + $0x54] sm:$0xf] %vm3161_vm1, %v6276_v3  ;;  %v3742_v7 = vcombine.low %v7275_v51, %v3349_v62 }
 0x1fc   : > { %3199 = vst.msk [vmem:[%s6840_s11 + $0x94] sm:$0xf] %vm3161_vm1, %v6292_v10  ;;  %3215 = vst.msk [vmem:[%s6840_s11 + $0xd4] sm:$0xf] %vm3161_vm1, %v6308_v9  ;;  %v3743_v8 = vcombine.high %v7275_v51, %v3349_v62  ;;  %v4753_v52 = vrot.slane %v4746_v1, %v6774_v54  ;;  %v4761_v12 = vrot.slane %v6162_v58, %v6774_v54  ;;  %v656_v1 = vpop.permute.xlu1 %655  ;;  %v7349_v58 = vpop.permute.xlu0 %3262 }
 0x1fd   : > { %v4769_v17 = vrot.slane %v4762_v50, %v6774_v54  ;;  %v4777_v59 = vrot.slane %v6163_v46, %v6774_v54  ;;  %v3750_v14 = vrot.slane %v3742_v7, %v6774_v54  ;;  %v1409_v20 = vcombine.low %v6638_v28, %v7315_v63 }
 0x1fe   : > { %v3757_v19 = vrot.slane %v3743_v8, %v6774_v54  ;;  %v1410_v47 = vcombine.high %v6638_v28, %v7315_v63  ;;  %v4778_v48 = vcombine.low %v4753_v52, %v4761_v12  ;;  %v4779_v51 = vcombine.high %v4753_v52, %v4761_v12 }
 0x1ff   : > { %v4794_v11 = vcombine.low %v4769_v17, %v4777_v59  ;;  %v4795_v13 = vcombine.high %v4769_v17, %v4777_v59  ;;  %v3758_v2 = vcombine.low %v3734_v4, %v3750_v14  ;;  %v3759_v45 = vcombine.high %v3734_v4, %v3750_v14 }
 0x200   : > { %v3774_v6 = vcombine.low %v3741_v5, %v3757_v19  ;;  %v3775_v49 = vcombine.high %v3741_v5, %v3757_v19  ;;  %v4786_v44 = vrot.slane %v4778_v48, %v6778_v61  ;;  %v4793_v22 = vrot.slane %v4779_v51, %v6778_v61 }
 0x201   : > { %v4802_v60 = vrot.slane %v4794_v11, %v6778_v61  ;;  %v4809_v53 = vrot.slane %v4795_v13, %v6778_v61  ;;  %v3766_v28 = vrot.slane %v3758_v2, %v6778_v61  ;;  %v3773_v26 = vrot.slane %v3759_v45, %v6778_v61 }
 0x202   : > { %v3782_v21 = vrot.slane %v3774_v6, %v6778_v61  ;;  %v3789_v55 = vrot.slane %v3775_v49, %v6778_v61  ;;  %v1417_v7 = vrot.slane %v1409_v20, %v6774_v54  ;;  %v1424_v8 = vrot.slane %v1410_v47, %v6774_v54 }
 0x203   : > { %v4810_v25 = vcombine.low %v4786_v44, %v4802_v60  ;;  %v4811_v27 = vcombine.high %v4786_v44, %v4802_v60  ;;  %v4812_v24 = vcombine.low %v4793_v22, %v4809_v53  ;;  %v4813_v56 = vcombine.high %v4793_v22, %v4809_v53  ;;  %v704_v44 = vpop.permute.xlu1 %703  ;;  %v7375_v22 = vpop.permute.xlu0 %3310 }
 0x204   : > { %v4814_v57 = vcombine.low %v3766_v28, %v3773_v26  ;;  %v6164_v18 = vcombine.high %v3766_v28, %v3773_v26  ;;  %v4830_v62 = vcombine.low %v3782_v21, %v3789_v55  ;;  %v6165_v63 = vcombine.high %v3782_v21, %v3789_v55 }
 0x205   : > { %v6323_v16 = vpack.c.bf16 %v4810_v25, %v4810_v25  ;;  %v6339_v3 = vpack.c.bf16 %v4811_v27, %v4811_v27  ;;  %v6355_v10 = vpack.c.bf16 %v4812_v24, %v4812_v24  ;;  %v6371_v9 = vpack.c.bf16 %v4813_v56, %v4813_v56 }
 0x206   : > { %v4821_v50 = vrot.slane %v4814_v57, %v6774_v54  ;;  %v4829_v46 = vrot.slane %v6164_v18, %v6774_v54  ;;  %v4837_v4 = vrot.slane %v4830_v62, %v6774_v54  ;;  %v4845_v5 = vrot.slane %v6165_v63, %v6774_v54 }
 0x207   : > { %5822 = vst.msk [vmem:[%s6933_s14 + $0x10] sm:$0xf] %vm3161_vm1, %v6323_v16  ;;  %5838 = vst.msk [vmem:[%s6933_s14 + $0x50] sm:$0xf] %vm3161_vm1, %v6339_v3  ;;  %v1425_v52 = vcombine.low %v7301_v15, %v702_v0  ;;  %v1426_v12 = vcombine.high %v7301_v15, %v702_v0  ;;  %v1477_v48 = vcombine.low %v6646_v30, %v656_v1 }
 0x208   : > { %5854 = vst.msk [vmem:[%s6933_s14 + $0x90] sm:$0xf] %vm3161_vm1, %v6355_v10  ;;  %5870 = vst.msk [vmem:[%s6933_s14 + $0xd0] sm:$0xf] %vm3161_vm1, %v6371_v9  ;;  %v4846_v17 = vcombine.low %v4821_v50, %v4829_v46  ;;  %v4847_v59 = vcombine.high %v4821_v50, %v4829_v46  ;;  %v4862_v14 = vcombine.low %v4837_v4, %v4845_v5 }
 0x209   : > { %v4863_v19 = vcombine.high %v4837_v4, %v4845_v5  ;;  %v1478_v51 = vcombine.high %v6646_v30, %v656_v1  ;;  %v1433_v11 = vrot.slane %v1425_v52, %v6774_v54  ;;  %v1440_v13 = vrot.slane %v1426_v12, %v6774_v54 }
 0x20a   : > { %v4854_v20 = vrot.slane %v4846_v17, %v6778_v61  ;;  %v4861_v47 = vrot.slane %v4847_v59, %v6778_v61  ;;  %v4870_v2 = vrot.slane %v4862_v14, %v6778_v61  ;;  %v1485_v3 = vrot.slane %v1477_v48, %v6774_v54 }
 0x20b   : > { %v4877_v15 = vrot.slane %v4863_v19, %v6778_v61  ;;  %v1441_v0 = vcombine.low %v1417_v7, %v1433_v11  ;;  %v1442_v45 = vcombine.high %v1417_v7, %v1433_v11  ;;  %v1457_v6 = vcombine.low %v1424_v8, %v1440_v13  ;;  %v7397_v7 = vpop.permute.xlu1 %3264 }
 0x20c   : > { %v1458_v49 = vcombine.high %v1424_v8, %v1440_v13  ;;  %v4878_v30 = vcombine.low %v4854_v20, %v4870_v2  ;;  %v4879_v60 = vcombine.high %v4854_v20, %v4870_v2  ;;  %v1492_v10 = vrot.slane %v1478_v51, %v6774_v54  ;;  %v3359_v8 = vpop.permute.xlu0 %3358 }
 0x20d   : > { %v4880_v53 = vcombine.low %v4861_v47, %v4877_v15  ;;  %v4881_v28 = vcombine.high %v4861_v47, %v4877_v15  ;;  %v1449_v26 = vrot.slane %v1441_v0, %v6778_v61  ;;  %v1456_v21 = vrot.slane %v1442_v45, %v6778_v61 }
 0x20e   : > { %v1465_v55 = vrot.slane %v1457_v6, %v6778_v61  ;;  %v1472_v25 = vrot.slane %v1458_v49, %v6778_v61  ;;  %v6324_v27 = vpack.c.bf16 %v4878_v30, %v4878_v30  ;;  %v6340_v24 = vpack.c.bf16 %v4879_v60, %v4879_v60 }
 0x20f   : > { %v6356_v56 = vpack.c.bf16 %v4880_v53, %v4880_v53  ;;  %v6372_v57 = vpack.c.bf16 %v4881_v28, %v4881_v28  ;;  %v2497_v18 = vcombine.low %v1449_v26, %v1456_v21  ;;  %v6078_v62 = vcombine.high %v1449_v26, %v1456_v21  ;;  %v7413_v53 = vpop.permute.xlu1 %3312 }
 0x210   : > { %v2513_v63 = vcombine.low %v1465_v55, %v1472_v25  ;;  %v6079_v16 = vcombine.high %v1465_v55, %v1472_v25  ;;  %5823 = vst.msk [vmem:[%s6933_s14 + $0x14] sm:$0xf] %vm3161_vm1, %v6324_v27  ;;  %5839 = vst.msk [vmem:[%s6933_s14 + $0x54] sm:$0xf] %vm3161_vm1, %v6340_v24  ;;  %v1493_v9 = vcombine.low %v7339_v23, %v704_v44  ;;  %v7415_v28 = vpop.permute.xlu0 %601 }
 0x211   : > { %5855 = vst.msk [vmem:[%s6933_s14 + $0x94] sm:$0xf] %vm3161_vm1, %v6356_v56  ;;  %5871 = vst.msk [vmem:[%s6933_s14 + $0xd4] sm:$0xf] %vm3161_vm1, %v6372_v57  ;;  %v1494_v1 = vcombine.high %v7339_v23, %v704_v44  ;;  %v2504_v50 = vrot.slane %v2497_v18, %v6774_v54  ;;  %v2512_v46 = vrot.slane %v6078_v62, %v6774_v54 }
 0x212   : > { %v2520_v4 = vrot.slane %v2513_v63, %v6774_v54  ;;  %v2528_v5 = vrot.slane %v6079_v16, %v6774_v54  ;;  %v1501_v52 = vrot.slane %v1493_v9, %v6774_v54  ;;  %v4066_v17 = vcombine.low %v6648_v31, %v7375_v22 }
 0x213   : > { %v1508_v12 = vrot.slane %v1494_v1, %v6774_v54  ;;  %v4067_v23 = vcombine.high %v6648_v31, %v7375_v22  ;;  %v2529_v59 = vcombine.low %v2504_v50, %v2512_v46  ;;  %v2530_v14 = vcombine.high %v2504_v50, %v2512_v46 }
 0x214   : > { %v2545_v19 = vcombine.low %v2520_v4, %v2528_v5  ;;  %v2546_v48 = vcombine.high %v2520_v4, %v2528_v5  ;;  %v1509_v51 = vcombine.low %v1485_v3, %v1501_v52  ;;  %v1510_v11 = vcombine.high %v1485_v3, %v1501_v52 }
 0x215   : > { %v1525_v13 = vcombine.low %v1492_v10, %v1508_v12  ;;  %v1526_v20 = vcombine.high %v1492_v10, %v1508_v12  ;;  %v2537_v47 = vrot.slane %v2529_v59, %v6778_v61  ;;  %v2544_v2 = vrot.slane %v2530_v14, %v6778_v61  ;;  %v3361_v14 = vpop.permute.xlu1 %3360 }
 0x216   : > { %v2553_v15 = vrot.slane %v2545_v19, %v6778_v61  ;;  %v2560_v0 = vrot.slane %v2546_v48, %v6778_v61  ;;  %v1517_v45 = vrot.slane %v1509_v51, %v6778_v61  ;;  %v1524_v31 = vrot.slane %v1510_v11, %v6778_v61 }
 0x217   : > { %v1533_v6 = vrot.slane %v1525_v13, %v6778_v61  ;;  %v1540_v49 = vrot.slane %v1526_v20, %v6778_v61  ;;  %v4074_v3 = vrot.slane %v4066_v17, %v6774_v54  ;;  %v4081_v10 = vrot.slane %v4067_v23, %v6774_v54  ;;  %v7439_v23 = vpop.permute.xlu0 %649 }
 0x218   : > { %v2561_v44 = vcombine.low %v2537_v47, %v2553_v15  ;;  %v2562_v22 = vcombine.high %v2537_v47, %v2553_v15  ;;  %v2563_v30 = vcombine.low %v2544_v2, %v2560_v0  ;;  %v2564_v60 = vcombine.high %v2544_v2, %v2560_v0 }
 0x219   : > { %v2565_v26 = vcombine.low %v1517_v45, %v1524_v31  ;;  %v6080_v21 = vcombine.high %v1517_v45, %v1524_v31  ;;  %v2581_v55 = vcombine.low %v1533_v6, %v1540_v49  ;;  %v6081_v25 = vcombine.high %v1533_v6, %v1540_v49 }
 0x21a   : > { %v6265_v27 = vpack.c.bf16 %v2561_v44, %v2561_v44  ;;  %v6281_v24 = vpack.c.bf16 %v2562_v22, %v2562_v22  ;;  %v6297_v56 = vpack.c.bf16 %v2563_v30, %v2563_v30  ;;  %v6313_v57 = vpack.c.bf16 %v2564_v60, %v2564_v60 }
 0x21b   : > { %v2572_v18 = vrot.slane %v2565_v26, %v6774_v54  ;;  %v2580_v62 = vrot.slane %v6080_v21, %v6774_v54  ;;  %v2588_v63 = vrot.slane %v2581_v55, %v6774_v54  ;;  %v2596_v16 = vrot.slane %v6081_v25, %v6774_v54  ;;  %v7449_v55 = vpop.permute.xlu1 %603  ;;  %v7451_v25 = vpop.permute.xlu0 %697 }
 0x21c   : > { %3172 = vst.msk [vmem:[%s6840_s11 + $0x28] sm:$0xf] %vm3161_vm1, %v6265_v27  ;;  %3188 = vst.msk [vmem:[%s6840_s11 + $0x68] sm:$0xf] %vm3161_vm1, %v6281_v24  ;;  %v4082_v9 = vcombine.low %v7349_v58, %v3359_v8  ;;  %v4083_v1 = vcombine.high %v7349_v58, %v3359_v8  ;;  %v4134_v52 = vcombine.low %v6654_v34, %v7413_v53 }
 0x21d   : > { %3204 = vst.msk [vmem:[%s6840_s11 + $0xa8] sm:$0xf] %vm3161_vm1, %v6297_v56  ;;  %3220 = vst.msk [vmem:[%s6840_s11 + $0xe8] sm:$0xf] %vm3161_vm1, %v6313_v57  ;;  %v2597_v50 = vcombine.low %v2572_v18, %v2580_v62  ;;  %v2598_v46 = vcombine.high %v2572_v18, %v2580_v62  ;;  %v2613_v4 = vcombine.low %v2588_v63, %v2596_v16 }
 0x21e   : > { %v2614_v5 = vcombine.high %v2588_v63, %v2596_v16  ;;  %v4135_v12 = vcombine.high %v6654_v34, %v7413_v53  ;;  %v4090_v59 = vrot.slane %v4082_v9, %v6774_v54  ;;  %v4097_v17 = vrot.slane %v4083_v1, %v6774_v54 }
 0x21f   : > { %v2605_v19 = vrot.slane %v2597_v50, %v6778_v61  ;;  %v2612_v58 = vrot.slane %v2598_v46, %v6778_v61  ;;  %v2621_v8 = vrot.slane %v2613_v4, %v6778_v61  ;;  %v4142_v27 = vrot.slane %v4134_v52, %v6774_v54 }
 0x220   : > { %v2628_v48 = vrot.slane %v2614_v5, %v6778_v61  ;;  %v4098_v51 = vcombine.low %v4074_v3, %v4090_v59  ;;  %v4099_v11 = vcombine.high %v4074_v3, %v4090_v59  ;;  %v4114_v13 = vcombine.low %v4081_v10, %v4097_v17 }
 0x221   : > { %v4115_v20 = vcombine.high %v4081_v10, %v4097_v17  ;;  %v2629_v34 = vcombine.low %v2605_v19, %v2621_v8  ;;  %v2630_v47 = vcombine.high %v2605_v19, %v2621_v8  ;;  %v4149_v24 = vrot.slane %v4135_v12, %v6774_v54  ;;  %v7479_v8 = vpop.permute.xlu1 %651 }
 0x222   : > { %v2631_v2 = vcombine.low %v2612_v58, %v2628_v48  ;;  %v2632_v15 = vcombine.high %v2612_v58, %v2628_v48  ;;  %v4106_v0 = vrot.slane %v4098_v51, %v6778_v61  ;;  %v4113_v45 = vrot.slane %v4099_v11, %v6778_v61  ;;  %v7481_v48 = vpop.permute.xlu0 %3258 }
 0x223   : > { %v4122_v31 = vrot.slane %v4114_v13, %v6778_v61  ;;  %v4129_v6 = vrot.slane %v4115_v20, %v6778_v61  ;;  %v6266_v49 = vpack.c.bf16 %v2629_v34, %v2629_v34  ;;  %v6282_v44 = vpack.c.bf16 %v2630_v47, %v2630_v47 }
 0x224   : > { %v6298_v22 = vpack.c.bf16 %v2631_v2, %v2631_v2  ;;  %v6314_v30 = vpack.c.bf16 %v2632_v15, %v2632_v15  ;;  %v5154_v60 = vcombine.low %v4106_v0, %v4113_v45  ;;  %v6174_v53 = vcombine.high %v4106_v0, %v4113_v45 }
 0x225   : > { %v5170_v26 = vcombine.low %v4122_v31, %v4129_v6  ;;  %v6175_v21 = vcombine.high %v4122_v31, %v4129_v6  ;;  %3173 = vst.msk [vmem:[%s6840_s11 + $0x2c] sm:$0xf] %vm3161_vm1, %v6266_v49  ;;  %3189 = vst.msk [vmem:[%s6840_s11 + $0x6c] sm:$0xf] %vm3161_vm1, %v6282_v44  ;;  %v4150_v56 = vcombine.low %v7397_v7, %v3361_v14 }
 0x226   : > { %3205 = vst.msk [vmem:[%s6840_s11 + $0xac] sm:$0xf] %vm3161_vm1, %v6298_v22  ;;  %3221 = vst.msk [vmem:[%s6840_s11 + $0xec] sm:$0xf] %vm3161_vm1, %v6314_v30  ;;  %v4151_v57 = vcombine.high %v7397_v7, %v3361_v14  ;;  %v5161_v18 = vrot.slane %v5154_v60, %v6774_v54  ;;  %v5169_v62 = vrot.slane %v6174_v53, %v6774_v54 }
 0x227   : > { %v5177_v63 = vrot.slane %v5170_v26, %v6774_v54  ;;  %v5185_v16 = vrot.slane %v6175_v21, %v6774_v54  ;;  %v4158_v3 = vrot.slane %v4150_v56, %v6774_v54  ;;  %v1273_v9 = vcombine.low %v6644_v29, %v7439_v23  ;;  %v700_v56 = vpop.permute.xlu1 %699 }
 0x228   : > { %v4165_v10 = vrot.slane %v4151_v57, %v6774_v54  ;;  %v1274_v1 = vcombine.high %v6644_v29, %v7439_v23  ;;  %v5186_v50 = vcombine.low %v5161_v18, %v5169_v62  ;;  %v5187_v7 = vcombine.high %v5161_v18, %v5169_v62  ;;  %v7505_v57 = vpop.permute.xlu0 %3306 }
 0x229   : > { %v5202_v46 = vcombine.low %v5177_v63, %v5185_v16  ;;  %v5203_v4 = vcombine.high %v5177_v63, %v5185_v16  ;;  %v4166_v5 = vcombine.low %v4142_v27, %v4158_v3  ;;  %v4167_v52 = vcombine.high %v4142_v27, %v4158_v3 }
 0x22a   : > { %v4182_v12 = vcombine.low %v4149_v24, %v4165_v10  ;;  %v4183_v59 = vcombine.high %v4149_v24, %v4165_v10  ;;  %v5194_v17 = vrot.slane %v5186_v50, %v6778_v61  ;;  %v5201_v14 = vrot.slane %v5187_v7, %v6778_v61 }
 0x22b   : > { %v5210_v19 = vrot.slane %v5202_v46, %v6778_v61  ;;  %v5217_v58 = vrot.slane %v5203_v4, %v6778_v61  ;;  %v4174_v29 = vrot.slane %v4166_v5, %v6778_v61  ;;  %v4181_v23 = vrot.slane %v4167_v52, %v6778_v61 }
 0x22c   : > { %v4190_v51 = vrot.slane %v4182_v12, %v6778_v61  ;;  %v4197_v11 = vrot.slane %v4183_v59, %v6778_v61  ;;  %v1281_v26 = vrot.slane %v1273_v9, %v6774_v54  ;;  %v1288_v21 = vrot.slane %v1274_v1, %v6774_v54 }
 0x22d   : > { %v5218_v13 = vcombine.low %v5194_v17, %v5210_v19  ;;  %v5219_v20 = vcombine.high %v5194_v17, %v5210_v19  ;;  %v5220_v34 = vcombine.low %v5201_v14, %v5217_v58  ;;  %v5221_v47 = vcombine.high %v5201_v14, %v5217_v58 }
 0x22e   : > { %v5222_v2 = vcombine.low %v4174_v29, %v4181_v23  ;;  %v6176_v15 = vcombine.high %v4174_v29, %v4181_v23  ;;  %v5238_v0 = vcombine.low %v4190_v51, %v4197_v11  ;;  %v6177_v45 = vcombine.high %v4190_v51, %v4197_v11  ;;  %v7521_v29 = vpop.permute.xlu1 %3260  ;;  %v7523_v23 = vpop.permute.xlu0 %3354 }
 0x22f   : > { %v6329_v31 = vpack.c.bf16 %v5218_v13, %v5218_v13  ;;  %v6345_v6 = vpack.c.bf16 %v5219_v20, %v5219_v20  ;;  %v6361_v49 = vpack.c.bf16 %v5220_v34, %v5220_v34  ;;  %v6377_v44 = vpack.c.bf16 %v5221_v47, %v5221_v47 }
 0x230   : > { %v5229_v22 = vrot.slane %v5222_v2, %v6774_v54  ;;  %v5237_v30 = vrot.slane %v6176_v15, %v6774_v54  ;;  %v5245_v60 = vrot.slane %v5238_v0, %v6774_v54  ;;  %v5253_v53 = vrot.slane %v6177_v45, %v6774_v54 }
 0x231   : > { %5828 = vst.msk [vmem:[%s6933_s14 + $0x28] sm:$0xf] %vm3161_vm1, %v6329_v31  ;;  %5844 = vst.msk [vmem:[%s6933_s14 + $0x68] sm:$0xf] %vm3161_vm1, %v6345_v6  ;;  %v1289_v27 = vcombine.low %v7415_v28, %v7451_v25  ;;  %v1290_v24 = vcombine.high %v7415_v28, %v7451_v25  ;;  %v1341_v3 = vcombine.low %v6650_v32, %v7479_v8 }
 0x232   : > { %5860 = vst.msk [vmem:[%s6933_s14 + $0xa8] sm:$0xf] %vm3161_vm1, %v6361_v49  ;;  %5876 = vst.msk [vmem:[%s6933_s14 + $0xe8] sm:$0xf] %vm3161_vm1, %v6377_v44  ;;  %v5254_v18 = vcombine.low %v5229_v22, %v5237_v30  ;;  %v5255_v62 = vcombine.high %v5229_v22, %v5237_v30  ;;  %v5270_v63 = vcombine.low %v5245_v60, %v5253_v53 }
 0x233   : > { %v5271_v16 = vcombine.high %v5245_v60, %v5253_v53  ;;  %v1342_v10 = vcombine.high %v6650_v32, %v7479_v8  ;;  %v1297_v9 = vrot.slane %v1289_v27, %v6774_v54  ;;  %v1304_v1 = vrot.slane %v1290_v24, %v6774_v54 }
 0x234   : > { %v5262_v50 = vrot.slane %v5254_v18, %v6778_v61  ;;  %v5269_v28 = vrot.slane %v5255_v62, %v6778_v61  ;;  %v5278_v25 = vrot.slane %v5270_v63, %v6778_v61  ;;  %v1349_v0 = vrot.slane %v1341_v3, %v6774_v54  ;;  %v7547_v18 = vpop.permute.xlu1 %3308  ;;  %v7549_v62 = vpop.permute.xlu0 %613 }
 0x235   : > { %v5285_v7 = vrot.slane %v5271_v16, %v6778_v61  ;;  %v1305_v46 = vcombine.low %v1281_v26, %v1297_v9  ;;  %v1306_v4 = vcombine.high %v1281_v26, %v1297_v9  ;;  %v1321_v5 = vcombine.low %v1288_v21, %v1304_v1 }
 0x236   : > { %v1322_v52 = vcombine.high %v1288_v21, %v1304_v1  ;;  %v5286_v12 = vcombine.low %v5262_v50, %v5278_v25  ;;  %v5287_v59 = vcombine.high %v5262_v50, %v5278_v25  ;;  %v1356_v45 = vrot.slane %v1342_v10, %v6774_v54 }
 0x237   : > { %v5288_v17 = vcombine.low %v5269_v28, %v5285_v7  ;;  %v5289_v32 = vcombine.high %v5269_v28, %v5285_v7  ;;  %v1313_v14 = vrot.slane %v1305_v46, %v6778_v61  ;;  %v1320_v19 = vrot.slane %v1306_v4, %v6778_v61 }
 0x238   : > { %v1329_v58 = vrot.slane %v1321_v5, %v6778_v61  ;;  %v1336_v8 = vrot.slane %v1322_v52, %v6778_v61  ;;  %v6330_v51 = vpack.c.bf16 %v5286_v12, %v5286_v12  ;;  %v6346_v11 = vpack.c.bf16 %v5287_v59, %v5287_v59 }
 0x239   : > { %v6362_v13 = vpack.c.bf16 %v5288_v17, %v5288_v17  ;;  %v6378_v20 = vpack.c.bf16 %v5289_v32, %v5289_v32  ;;  %v2361_v34 = vcombine.low %v1313_v14, %v1320_v19  ;;  %v6074_v47 = vcombine.high %v1313_v14, %v1320_v19 }
 0x23a   : > { %v2377_v2 = vcombine.low %v1329_v58, %v1336_v8  ;;  %v6075_v15 = vcombine.high %v1329_v58, %v1336_v8  ;;  %5829 = vst.msk [vmem:[%s6933_s14 + $0x2c] sm:$0xf] %vm3161_vm1, %v6330_v51  ;;  %5845 = vst.msk [vmem:[%s6933_s14 + $0x6c] sm:$0xf] %vm3161_vm1, %v6346_v11  ;;  %v1357_v31 = vcombine.low %v7449_v55, %v700_v56  ;;  %v7559_v51 = vpop.permute.xlu1 %3356  ;;  %v7561_v11 = vpop.permute.xlu0 %661 }
 0x23b   : > { %5861 = vst.msk [vmem:[%s6933_s14 + $0xac] sm:$0xf] %vm3161_vm1, %v6362_v13  ;;  %5877 = vst.msk [vmem:[%s6933_s14 + $0xec] sm:$0xf] %vm3161_vm1, %v6378_v20  ;;  %v1358_v6 = vcombine.high %v7449_v55, %v700_v56  ;;  %v2368_v49 = vrot.slane %v2361_v34, %v6774_v54  ;;  %v2376_v44 = vrot.slane %v6074_v47, %v6774_v54 }
 0x23c   : > { %v2384_v22 = vrot.slane %v2377_v2, %v6774_v54  ;;  %v2392_v30 = vrot.slane %v6075_v15, %v6774_v54  ;;  %v1365_v60 = vrot.slane %v1357_v31, %v6774_v54  ;;  %v3930_v26 = vcombine.low %v6652_v33, %v7505_v57 }
 0x23d   : > { %v1372_v53 = vrot.slane %v1358_v6, %v6774_v54  ;;  %v3931_v21 = vcombine.high %v6652_v33, %v7505_v57  ;;  %v2393_v27 = vcombine.low %v2368_v49, %v2376_v44  ;;  %v2394_v55 = vcombine.high %v2368_v49, %v2376_v44 }
 0x23e   : > { %v2409_v24 = vcombine.low %v2384_v22, %v2392_v30  ;;  %v2410_v56 = vcombine.high %v2384_v22, %v2392_v30  ;;  %v1373_v63 = vcombine.low %v1349_v0, %v1365_v60  ;;  %v1374_v16 = vcombine.high %v1349_v0, %v1365_v60 }
 0x23f   : > { %v1389_v3 = vcombine.low %v1356_v45, %v1372_v53  ;;  %v1390_v10 = vcombine.high %v1356_v45, %v1372_v53  ;;  %v2401_v9 = vrot.slane %v2393_v27, %v6778_v61  ;;  %v2408_v1 = vrot.slane %v2394_v55, %v6778_v61 }
 0x240   : > { %v2417_v50 = vrot.slane %v2409_v24, %v6778_v61  ;;  %v2424_v33 = vrot.slane %v2410_v56, %v6778_v61  ;;  %v1381_v57 = vrot.slane %v1373_v63, %v6778_v61  ;;  %v1388_v28 = vrot.slane %v1374_v16, %v6778_v61  ;;  %v7591_v63 = vpop.permute.xlu1 %615  ;;  %v7593_v16 = vpop.permute.xlu0 %709 }
 0x241   : > { %v1397_v25 = vrot.slane %v1389_v3, %v6778_v61  ;;  %v1404_v7 = vrot.slane %v1390_v10, %v6778_v61  ;;  %v3938_v2 = vrot.slane %v3930_v26, %v6774_v54  ;;  %v3945_v15 = vrot.slane %v3931_v21, %v6774_v54 }
 0x242   : > { %v2425_v46 = vcombine.low %v2401_v9, %v2417_v50  ;;  %v2426_v4 = vcombine.high %v2401_v9, %v2417_v50  ;;  %v2427_v5 = vcombine.low %v2408_v1, %v2424_v33  ;;  %v2428_v52 = vcombine.high %v2408_v1, %v2424_v33 }
 0x243   : > { %v2429_v12 = vcombine.low %v1381_v57, %v1388_v28  ;;  %v6076_v59 = vcombine.high %v1381_v57, %v1388_v28  ;;  %v2445_v17 = vcombine.low %v1397_v25, %v1404_v7  ;;  %v6077_v32 = vcombine.high %v1397_v25, %v1404_v7 }
 0x244   : > { %v6263_v14 = vpack.c.bf16 %v2425_v46, %v2425_v46  ;;  %v6279_v19 = vpack.c.bf16 %v2426_v4, %v2426_v4  ;;  %v6295_v58 = vpack.c.bf16 %v2427_v5, %v2427_v5  ;;  %v6311_v8 = vpack.c.bf16 %v2428_v52, %v2428_v52 }
 0x245   : > { %v2436_v13 = vrot.slane %v2429_v12, %v6774_v54  ;;  %v2444_v20 = vrot.slane %v6076_v59, %v6774_v54  ;;  %v2452_v34 = vrot.slane %v2445_v17, %v6774_v54  ;;  %v2460_v47 = vrot.slane %v6077_v32, %v6774_v54 }
 0x246   : > { %3170 = vst.msk [vmem:[%s6840_s11 + $0x20] sm:$0xf] %vm3161_vm1, %v6263_v14  ;;  %3186 = vst.msk [vmem:[%s6840_s11 + $0x60] sm:$0xf] %vm3161_vm1, %v6279_v19  ;;  %v3946_v0 = vcombine.low %v7481_v48, %v7523_v23  ;;  %v3947_v45 = vcombine.high %v7481_v48, %v7523_v23  ;;  %v3998_v22 = vcombine.low %v6660_v35, %v7547_v18 }
 0x247   : > { %3202 = vst.msk [vmem:[%s6840_s11 + $0xa0] sm:$0xf] %vm3161_vm1, %v6295_v58  ;;  %3218 = vst.msk [vmem:[%s6840_s11 + $0xe0] sm:$0xf] %vm3161_vm1, %v6311_v8  ;;  %v2461_v31 = vcombine.low %v2436_v13, %v2444_v20  ;;  %v2462_v6 = vcombine.high %v2436_v13, %v2444_v20  ;;  %v2477_v49 = vcombine.low %v2452_v34, %v2460_v47  ;;  %v7617_v13 = vpop.permute.xlu1 %663  ;;  %v7619_v20 = vpop.permute.xlu0 %3270 }
 0x248   : > { %v2478_v44 = vcombine.high %v2452_v34, %v2460_v47  ;;  %v3999_v30 = vcombine.high %v6660_v35, %v7547_v18  ;;  %v3954_v60 = vrot.slane %v3946_v0, %v6774_v54  ;;  %v3961_v53 = vrot.slane %v3947_v45, %v6774_v54 }
 0x249   : > { %v2469_v26 = vrot.slane %v2461_v31, %v6778_v61  ;;  %v2476_v21 = vrot.slane %v2462_v6, %v6778_v61  ;;  %v2485_v48 = vrot.slane %v2477_v49, %v6778_v61  ;;  %v4006_v12 = vrot.slane %v3998_v22, %v6774_v54 }
 0x24a   : > { %v2492_v23 = vrot.slane %v2478_v44, %v6778_v61  ;;  %v3962_v27 = vcombine.low %v3938_v2, %v3954_v60  ;;  %v3963_v55 = vcombine.high %v3938_v2, %v3954_v60  ;;  %v3978_v24 = vcombine.low %v3945_v15, %v3961_v53 }
 0x24b   : > { %v3979_v56 = vcombine.high %v3945_v15, %v3961_v53  ;;  %v2493_v35 = vcombine.low %v2469_v26, %v2485_v48  ;;  %v2494_v18 = vcombine.high %v2469_v26, %v2485_v48  ;;  %v4013_v59 = vrot.slane %v3999_v30, %v6774_v54 }
 0x24c   : > { %v2495_v3 = vcombine.low %v2476_v21, %v2492_v23  ;;  %v2496_v10 = vcombine.high %v2476_v21, %v2492_v23  ;;  %v3970_v9 = vrot.slane %v3962_v27, %v6778_v61  ;;  %v3977_v1 = vrot.slane %v3963_v55, %v6778_v61 }
 0x24d   : > { %v3986_v50 = vrot.slane %v3978_v24, %v6778_v61  ;;  %v3993_v33 = vrot.slane %v3979_v56, %v6778_v61  ;;  %v6264_v57 = vpack.c.bf16 %v2493_v35, %v2493_v35  ;;  %v6280_v28 = vpack.c.bf16 %v2494_v18, %v2494_v18  ;;  %v7635_v24 = vpop.permute.xlu1 %711  ;;  %v7637_v56 = vpop.permute.xlu0 %3318 }
 0x24e   : > { %v6296_v25 = vpack.c.bf16 %v2495_v3, %v2495_v3  ;;  %v6312_v7 = vpack.c.bf16 %v2496_v10, %v2496_v10  ;;  %v5018_v46 = vcombine.low %v3970_v9, %v3977_v1  ;;  %v6170_v4 = vcombine.high %v3970_v9, %v3977_v1 }
 0x24f   : > { %v5034_v5 = vcombine.low %v3986_v50, %v3993_v33  ;;  %v6171_v52 = vcombine.high %v3986_v50, %v3993_v33  ;;  %3171 = vst.msk [vmem:[%s6840_s11 + $0x24] sm:$0xf] %vm3161_vm1, %v6264_v57  ;;  %3187 = vst.msk [vmem:[%s6840_s11 + $0x64] sm:$0xf] %vm3161_vm1, %v6280_v28  ;;  %v4014_v17 = vcombine.low %v7521_v29, %v7559_v51 }
 0x250   : > { %3203 = vst.msk [vmem:[%s6840_s11 + $0xa4] sm:$0xf] %vm3161_vm1, %v6296_v25  ;;  %3219 = vst.msk [vmem:[%s6840_s11 + $0xe4] sm:$0xf] %vm3161_vm1, %v6312_v7  ;;  %v4015_v32 = vcombine.high %v7521_v29, %v7559_v51  ;;  %v5025_v14 = vrot.slane %v5018_v46, %v6774_v54  ;;  %v5033_v19 = vrot.slane %v6170_v4, %v6774_v54 }
 0x251   : > { %v5041_v58 = vrot.slane %v5034_v5, %v6774_v54  ;;  %v5049_v8 = vrot.slane %v6171_v52, %v6774_v54  ;;  %v4022_v34 = vrot.slane %v4014_v17, %v6774_v54  ;;  %v1681_v2 = vcombine.low %v6662_v36, %v7561_v11 }
 0x252   : > { %v4029_v47 = vrot.slane %v4015_v32, %v6774_v54  ;;  %v1682_v29 = vcombine.high %v6662_v36, %v7561_v11  ;;  %v5050_v51 = vcombine.low %v5025_v14, %v5033_v19  ;;  %v5051_v15 = vcombine.high %v5025_v14, %v5033_v19 }
 0x253   : > { %v5066_v0 = vcombine.low %v5041_v58, %v5049_v8  ;;  %v5067_v45 = vcombine.high %v5041_v58, %v5049_v8  ;;  %v4030_v31 = vcombine.low %v4006_v12, %v4022_v34  ;;  %v4031_v6 = vcombine.high %v4006_v12, %v4022_v34  ;;  %v7663_v34 = vpop.permute.xlu1 %3272 }
 0x254   : > { %v4046_v49 = vcombine.low %v4013_v59, %v4029_v47  ;;  %v4047_v44 = vcombine.high %v4013_v59, %v4029_v47  ;;  %v5058_v22 = vrot.slane %v5050_v51, %v6778_v61  ;;  %v5065_v30 = vrot.slane %v5051_v15, %v6778_v61  ;;  %v7665_v47 = vpop.permute.xlu0 %609 }
 0x255   : > { %v5074_v60 = vrot.slane %v5066_v0, %v6778_v61  ;;  %v5081_v53 = vrot.slane %v5067_v45, %v6778_v61  ;;  %v4038_v26 = vrot.slane %v4030_v31, %v6778_v61  ;;  %v4045_v36 = vrot.slane %v4031_v6, %v6778_v61 }
 0x256   : > { %v4054_v11 = vrot.slane %v4046_v49, %v6778_v61  ;;  %v4061_v21 = vrot.slane %v4047_v44, %v6778_v61  ;;  %v1689_v46 = vrot.slane %v1681_v2, %v6774_v54  ;;  %v1696_v4 = vrot.slane %v1682_v29, %v6774_v54 }
 0x257   : > { %v5082_v48 = vcombine.low %v5058_v22, %v5074_v60  ;;  %v5083_v23 = vcombine.high %v5058_v22, %v5074_v60  ;;  %v5084_v27 = vcombine.low %v5065_v30, %v5081_v53  ;;  %v5085_v55 = vcombine.high %v5065_v30, %v5081_v53 }
 0x258   : > { %v5086_v35 = vcombine.low %v4038_v26, %v4045_v36  ;;  %v6172_v18 = vcombine.high %v4038_v26, %v4045_v36  ;;  %v5102_v3 = vcombine.low %v4054_v11, %v4061_v21  ;;  %v6173_v10 = vcombine.high %v4054_v11, %v4061_v21 }
 0x259   : > { %v6327_v9 = vpack.c.bf16 %v5082_v48, %v5082_v48  ;;  %v6343_v1 = vpack.c.bf16 %v5083_v23, %v5083_v23  ;;  %v6359_v50 = vpack.c.bf16 %v5084_v27, %v5084_v27  ;;  %v6375_v33 = vpack.c.bf16 %v5085_v55, %v5085_v55  ;;  %v7675_v27 = vpop.permute.xlu1 %3320  ;;  %v7677_v55 = vpop.permute.xlu0 %657 }
 0x25a   : > { %v5093_v57 = vrot.slane %v5086_v35, %v6774_v54  ;;  %v5101_v28 = vrot.slane %v6172_v18, %v6774_v54  ;;  %v5109_v25 = vrot.slane %v5102_v3, %v6774_v54  ;;  %v5117_v7 = vrot.slane %v6173_v10, %v6774_v54 }
 0x25b   : > { %5826 = vst.msk [vmem:[%s6933_s14 + $0x20] sm:$0xf] %vm3161_vm1, %v6327_v9  ;;  %5842 = vst.msk [vmem:[%s6933_s14 + $0x60] sm:$0xf] %vm3161_vm1, %v6343_v1  ;;  %v1697_v5 = vcombine.low %v7549_v62, %v7593_v16  ;;  %v1698_v52 = vcombine.high %v7549_v62, %v7593_v16  ;;  %v1749_v14 = vcombine.low %v6670_v38, %v7617_v13 }
 0x25c   : > { %5858 = vst.msk [vmem:[%s6933_s14 + $0xa0] sm:$0xf] %vm3161_vm1, %v6359_v50  ;;  %5874 = vst.msk [vmem:[%s6933_s14 + $0xe0] sm:$0xf] %vm3161_vm1, %v6375_v33  ;;  %v5118_v12 = vcombine.low %v5093_v57, %v5101_v28  ;;  %v5119_v59 = vcombine.high %v5093_v57, %v5101_v28  ;;  %v5134_v17 = vcombine.low %v5109_v25, %v5117_v7 }
 0x25d   : > { %v5135_v32 = vcombine.high %v5109_v25, %v5117_v7  ;;  %v1750_v19 = vcombine.high %v6670_v38, %v7617_v13  ;;  %v1705_v58 = vrot.slane %v1697_v5, %v6774_v54  ;;  %v1712_v8 = vrot.slane %v1698_v52, %v6774_v54 }
 0x25e   : > { %v5126_v62 = vrot.slane %v5118_v12, %v6778_v61  ;;  %v5133_v16 = vrot.slane %v5119_v59, %v6778_v61  ;;  %v5142_v2 = vrot.slane %v5134_v17, %v6778_v61  ;;  %v1757_v35 = vrot.slane %v1749_v14, %v6774_v54 }
 0x25f   : > { %v5149_v29 = vrot.slane %v5135_v32, %v6778_v61  ;;  %v1713_v51 = vcombine.low %v1689_v46, %v1705_v58  ;;  %v1714_v15 = vcombine.high %v1689_v46, %v1705_v58  ;;  %v1729_v0 = vcombine.low %v1696_v4, %v1712_v8  ;;  %v7707_v58 = vpop.permute.xlu1 %611 }
 0x260   : > { %v1730_v38 = vcombine.high %v1696_v4, %v1712_v8  ;;  %v5150_v13 = vcombine.low %v5126_v62, %v5142_v2  ;;  %v5151_v45 = vcombine.high %v5126_v62, %v5142_v2  ;;  %v1764_v18 = vrot.slane %v1750_v19, %v6774_v54  ;;  %v706_v8 = vpop.permute.xlu0 %705 }
 0x261   : > { %v5152_v31 = vcombine.low %v5133_v16, %v5149_v29  ;;  %v5153_v6 = vcombine.high %v5133_v16, %v5149_v29  ;;  %v1721_v49 = vrot.slane %v1713_v51, %v6778_v61  ;;  %v1728_v44 = vrot.slane %v1714_v15, %v6778_v61 }
 0x262   : > { %v1737_v22 = vrot.slane %v1729_v0, %v6778_v61  ;;  %v1744_v30 = vrot.slane %v1730_v38, %v6778_v61  ;;  %v6328_v60 = vpack.c.bf16 %v5150_v13, %v5150_v13  ;;  %v6344_v53 = vpack.c.bf16 %v5151_v45, %v5151_v45 }
 0x263   : > { %v6360_v26 = vpack.c.bf16 %v5152_v31, %v5152_v31  ;;  %v6376_v36 = vpack.c.bf16 %v5153_v6, %v5153_v6  ;;  %v2769_v11 = vcombine.low %v1721_v49, %v1728_v44  ;;  %v6086_v21 = vcombine.high %v1721_v49, %v1728_v44 }
 0x264   : > { %v2785_v48 = vcombine.low %v1737_v22, %v1744_v30  ;;  %v6087_v23 = vcombine.high %v1737_v22, %v1744_v30  ;;  %5827 = vst.msk [vmem:[%s6933_s14 + $0x24] sm:$0xf] %vm3161_vm1, %v6328_v60  ;;  %5843 = vst.msk [vmem:[%s6933_s14 + $0x64] sm:$0xf] %vm3161_vm1, %v6344_v53  ;;  %v1765_v3 = vcombine.low %v7591_v63, %v7635_v24 }
 0x265   : > { %5859 = vst.msk [vmem:[%s6933_s14 + $0xa4] sm:$0xf] %vm3161_vm1, %v6360_v26  ;;  %5875 = vst.msk [vmem:[%s6933_s14 + $0xe4] sm:$0xf] %vm3161_vm1, %v6376_v36  ;;  %v1766_v10 = vcombine.high %v7591_v63, %v7635_v24  ;;  %v2776_v9 = vrot.slane %v2769_v11, %v6774_v54  ;;  %v2784_v1 = vrot.slane %v6086_v21, %v6774_v54 }
 0x266   : > { %v2792_v50 = vrot.slane %v2785_v48, %v6774_v54  ;;  %v2800_v33 = vrot.slane %v6087_v23, %v6774_v54  ;;  %v1773_v57 = vrot.slane %v1765_v3, %v6774_v54  ;;  %v4338_v25 = vcombine.low %v6686_v40, %v7637_v56  ;;  %v660_v48 = vpop.permute.xlu1 %659  ;;  %v7735_v23 = vpop.permute.xlu0 %3266 }
 0x267   : > { %v1780_v28 = vrot.slane %v1766_v10, %v6774_v54  ;;  %v4339_v7 = vcombine.high %v6686_v40, %v7637_v56  ;;  %v2801_v46 = vcombine.low %v2776_v9, %v2784_v1  ;;  %v2802_v63 = vcombine.high %v2776_v9, %v2784_v1 }
 0x268   : > { %v2817_v24 = vcombine.low %v2792_v50, %v2800_v33  ;;  %v2818_v4 = vcombine.high %v2792_v50, %v2800_v33  ;;  %v1781_v5 = vcombine.low %v1757_v35, %v1773_v57  ;;  %v1782_v52 = vcombine.high %v1757_v35, %v1773_v57 }
 0x269   : > { %v1797_v12 = vcombine.low %v1764_v18, %v1780_v28  ;;  %v1798_v59 = vcombine.high %v1764_v18, %v1780_v28  ;;  %v2809_v17 = vrot.slane %v2801_v46, %v6778_v61  ;;  %v2816_v32 = vrot.slane %v2802_v63, %v6778_v61 }
 0x26a   : > { %v2825_v14 = vrot.slane %v2817_v24, %v6778_v61  ;;  %v2832_v19 = vrot.slane %v2818_v4, %v6778_v61  ;;  %v1789_v40 = vrot.slane %v1781_v5, %v6778_v61  ;;  %v1796_v56 = vrot.slane %v1782_v52, %v6778_v61 }
 0x26b   : > { %v1805_v62 = vrot.slane %v1797_v12, %v6778_v61  ;;  %v1812_v16 = vrot.slane %v1798_v59, %v6778_v61  ;;  %v7726_v26 = vrot.slane %v4338_v25, %v6774_v54  ;;  %v7729_v36 = vrot.slane %v4339_v7, %v6774_v54 }
 0x26c   : > { %v2833_v2 = vcombine.low %v2809_v17, %v2825_v14  ;;  %v2834_v29 = vcombine.high %v2809_v17, %v2825_v14  ;;  %v2835_v51 = vcombine.low %v2816_v32, %v2832_v19  ;;  %v2836_v15 = vcombine.high %v2816_v32, %v2832_v19  ;;  %v708_v32 = vpop.permute.xlu1 %707  ;;  %v3315_v14 = vpop.permute.xlu0 %3314 }
 0x26d   : > { %v2837_v0 = vcombine.low %v1789_v40, %v1796_v56  ;;  %v6088_v38 = vcombine.high %v1789_v40, %v1796_v56  ;;  %v2853_v13 = vcombine.low %v1805_v62, %v1812_v16  ;;  %v6089_v45 = vcombine.high %v1805_v62, %v1812_v16 }
 0x26e   : > { %v6269_v31 = vpack.c.bf16 %v2833_v2, %v2833_v2  ;;  %v6285_v6 = vpack.c.bf16 %v2834_v29, %v2834_v29  ;;  %v6301_v49 = vpack.c.bf16 %v2835_v51, %v2835_v51  ;;  %v6317_v44 = vpack.c.bf16 %v2836_v15, %v2836_v15 }
 0x26f   : > { %v2844_v22 = vrot.slane %v2837_v0, %v6774_v54  ;;  %v2852_v30 = vrot.slane %v6088_v38, %v6774_v54  ;;  %v2860_v60 = vrot.slane %v2853_v13, %v6774_v54  ;;  %v2868_v53 = vrot.slane %v6089_v45, %v6774_v54 }
 0x270   : > { %3176 = vst.msk [vmem:[%s6840_s11 + $0x38] sm:$0xf] %vm3161_vm1, %v6269_v31  ;;  %3192 = vst.msk [vmem:[%s6840_s11 + $0x78] sm:$0xf] %vm3161_vm1, %v6285_v6  ;;  %v1545_v11 = vcombine.low %v6668_v37, %v7677_v55  ;;  %v1546_v21 = vcombine.high %v6668_v37, %v7677_v55  ;;  %v4406_v9 = vcombine.low %v6694_v42, %v7675_v27 }
 0x271   : > { %3208 = vst.msk [vmem:[%s6840_s11 + $0xb8] sm:$0xf] %vm3161_vm1, %v6301_v49  ;;  %3224 = vst.msk [vmem:[%s6840_s11 + $0xf8] sm:$0xf] %vm3161_vm1, %v6317_v44  ;;  %v2869_v35 = vcombine.low %v2844_v22, %v2852_v30  ;;  %v2870_v18 = vcombine.high %v2844_v22, %v2852_v30  ;;  %v2885_v3 = vcombine.low %v2860_v60, %v2868_v53 }
 0x272   : > { %v2886_v10 = vcombine.high %v2860_v60, %v2868_v53  ;;  %v4407_v1 = vcombine.high %v6694_v42, %v7675_v27  ;;  %v1553_v50 = vrot.slane %v1545_v11, %v6774_v54  ;;  %v1560_v33 = vrot.slane %v1546_v21, %v6774_v54 }
 0x273   : > { %v2877_v57 = vrot.slane %v2869_v35, %v6778_v61  ;;  %v2884_v37 = vrot.slane %v2870_v18, %v6778_v61  ;;  %v2893_v55 = vrot.slane %v2885_v3, %v6778_v61  ;;  %v1613_v25 = vcombine.low %v6672_v39, %v660_v48 }
 0x274   : > { %v2900_v28 = vrot.slane %v2886_v10, %v6778_v61  ;;  %v1614_v7 = vcombine.high %v6672_v39, %v660_v48  ;;  %v1561_v46 = vcombine.low %v7665_v47, %v706_v8  ;;  %v1562_v63 = vcombine.high %v7665_v47, %v706_v8 }
 0x275   : > { %v2901_v24 = vcombine.low %v2877_v57, %v2893_v55  ;;  %v2902_v4 = vcombine.high %v2877_v57, %v2893_v55  ;;  %v1621_v12 = vrot.slane %v1613_v25, %v6774_v54  ;;  %v1629_v29 = vcombine.low %v7707_v58, %v708_v32 }
 0x276   : > { %v2903_v5 = vcombine.low %v2884_v37, %v2900_v28  ;;  %v2904_v52 = vcombine.high %v2884_v37, %v2900_v28  ;;  %v1628_v59 = vrot.slane %v1614_v7, %v6774_v54  ;;  %v1569_v17 = vrot.slane %v1561_v46, %v6774_v54 }
 0x277   : > { %v1576_v39 = vrot.slane %v1562_v63, %v6774_v54  ;;  %v6270_v19 = vpack.c.bf16 %v2901_v24, %v2901_v24  ;;  %v6286_v47 = vpack.c.bf16 %v2902_v4, %v2902_v4  ;;  %v1630_v51 = vcombine.high %v7707_v58, %v708_v32 }
 0x278   : > { %v6302_v8 = vpack.c.bf16 %v2903_v5, %v2903_v5  ;;  %v6318_v40 = vpack.c.bf16 %v2904_v52, %v2904_v52  ;;  %v1577_v56 = vcombine.low %v1553_v50, %v1569_v17  ;;  %v1578_v62 = vcombine.high %v1553_v50, %v1569_v17  ;;  %v7783_v50 = vpop.permute.xlu1 %3268 }
 0x279   : > { %v1593_v16 = vcombine.low %v1560_v33, %v1576_v39  ;;  %v1594_v2 = vcombine.high %v1560_v33, %v1576_v39  ;;  %3177 = vst.msk [vmem:[%s6840_s11 + $0x3c] sm:$0xf] %vm3161_vm1, %v6270_v19  ;;  %3193 = vst.msk [vmem:[%s6840_s11 + $0x7c] sm:$0xf] %vm3161_vm1, %v6286_v47  ;;  %v4202_v15 = vcombine.low %v6692_v41, %v3315_v14 }
 0x27a   : > { %3209 = vst.msk [vmem:[%s6840_s11 + $0xbc] sm:$0xf] %vm3161_vm1, %v6302_v8  ;;  %3225 = vst.msk [vmem:[%s6840_s11 + $0xfc] sm:$0xf] %vm3161_vm1, %v6318_v40  ;;  %v4203_v0 = vcombine.high %v6692_v41, %v3315_v14  ;;  %v1585_v38 = vrot.slane %v1577_v56, %v6778_v61  ;;  %v1592_v13 = vrot.slane %v1578_v62, %v6778_v61 }
 0x27b   : > { %v1601_v45 = vrot.slane %v1593_v16, %v6778_v61  ;;  %v1608_v31 = vrot.slane %v1594_v2, %v6778_v61  ;;  %v1637_v6 = vrot.slane %v1629_v29, %v6774_v54  ;;  %v1644_v49 = vrot.slane %v1630_v51, %v6774_v54  ;;  %v3363_v16 = vpop.permute.xlu0 %3362 }
 0x27c   : > { %v7774_v44 = vrot.slane %v4202_v15, %v6774_v54  ;;  %v7777_v58 = vrot.slane %v4203_v0, %v6774_v54  ;;  %v2633_v22 = vcombine.low %v1585_v38, %v1592_v13  ;;  %v6082_v41 = vcombine.high %v1585_v38, %v1592_v13  ;;  %v3317_v62 = vpop.permute.xlu1 %3316 }
 0x27d   : > { %v2649_v30 = vcombine.low %v1601_v45, %v1608_v31  ;;  %v6083_v60 = vcombine.high %v1601_v45, %v1608_v31  ;;  %v1645_v53 = vcombine.low %v1621_v12, %v1637_v6  ;;  %v1646_v11 = vcombine.high %v1621_v12, %v1637_v6 }
 0x27e   : > { %v1661_v21 = vcombine.low %v1628_v59, %v1644_v49  ;;  %v1662_v48 = vcombine.high %v1628_v59, %v1644_v49  ;;  %v2640_v35 = vrot.slane %v2633_v22, %v6774_v54  ;;  %v2648_v18 = vrot.slane %v6082_v41, %v6774_v54 }
 0x27f   : > { %v2656_v3 = vrot.slane %v2649_v30, %v6774_v54  ;;  %v2664_v10 = vrot.slane %v6083_v60, %v6774_v54  ;;  %v1653_v33 = vrot.slane %v1645_v53, %v6778_v61  ;;  %v1660_v57 = vrot.slane %v1646_v11, %v6778_v61 }
 0x280   : > { %v1669_v37 = vrot.slane %v1661_v21, %v6778_v61  ;;  %v1676_v55 = vrot.slane %v1662_v48, %v6778_v61  ;;  %v2665_v28 = vcombine.low %v2640_v35, %v2648_v18  ;;  %v2666_v25 = vcombine.high %v2640_v35, %v2648_v18 }
 0x281   : > { %v2681_v7 = vcombine.low %v2656_v3, %v2664_v10  ;;  %v2682_v46 = vcombine.high %v2656_v3, %v2664_v10  ;;  %v2701_v63 = vcombine.low %v1653_v33, %v1660_v57  ;;  %v6084_v24 = vcombine.high %v1653_v33, %v1660_v57  ;;  %v3365_v33 = vpop.permute.xlu1 %3364  ;;  %v3367_v57 = vpop.permute.xlu0 %3366 }
 0x282   : > { %v2717_v4 = vcombine.low %v1669_v37, %v1676_v55  ;;  %v6085_v5 = vcombine.high %v1669_v37, %v1676_v55  ;;  %v2673_v52 = vrot.slane %v2665_v28, %v6778_v61  ;;  %v2680_v12 = vrot.slane %v2666_v25, %v6778_v61 }
 0x283   : > { %v2689_v59 = vrot.slane %v2681_v7, %v6778_v61  ;;  %v2696_v17 = vrot.slane %v2682_v46, %v6778_v61  ;;  %v2708_v39 = vrot.slane %v2701_v63, %v6774_v54  ;;  %v2716_v32 = vrot.slane %v6084_v24, %v6774_v54 }
 0x284   : > { %v2724_v14 = vrot.slane %v2717_v4, %v6774_v54  ;;  %v2732_v19 = vrot.slane %v6085_v5, %v6774_v54  ;;  %v4270_v41 = vcombine.low %v6696_v43, %v3317_v62  ;;  %v4271_v30 = vcombine.high %v6696_v43, %v3317_v62 }
 0x285   : > { %v2697_v47 = vcombine.low %v2673_v52, %v2689_v59  ;;  %v2698_v8 = vcombine.high %v2673_v52, %v2689_v59  ;;  %v2699_v40 = vcombine.low %v2680_v12, %v2696_v17  ;;  %v2700_v56 = vcombine.high %v2680_v12, %v2696_v17 }
 0x286   : > { %v2733_v2 = vcombine.low %v2708_v39, %v2716_v32  ;;  %v2734_v29 = vcombine.high %v2708_v39, %v2716_v32  ;;  %v2749_v51 = vcombine.low %v2724_v14, %v2732_v19  ;;  %v2750_v15 = vcombine.high %v2724_v14, %v2732_v19 }
 0x287   : > { %v6267_v0 = vpack.c.bf16 %v2697_v47, %v2697_v47  ;;  %v6283_v38 = vpack.c.bf16 %v2698_v8, %v2698_v8  ;;  %v6299_v13 = vpack.c.bf16 %v2699_v40, %v2699_v40  ;;  %v6315_v45 = vpack.c.bf16 %v2700_v56, %v2700_v56 }
 0x288   : > { %v2741_v31 = vrot.slane %v2733_v2, %v6778_v61  ;;  %v2748_v6 = vrot.slane %v2734_v29, %v6778_v61  ;;  %v2757_v49 = vrot.slane %v2749_v51, %v6778_v61  ;;  %v2764_v22 = vrot.slane %v2750_v15, %v6778_v61 }
 0x289   : > { %3174 = vst.msk [vmem:[%s6840_s11 + $0x30] sm:$0xf] %vm3161_vm1, %v6267_v0  ;;  %3190 = vst.msk [vmem:[%s6840_s11 + $0x70] sm:$0xf] %vm3161_vm1, %v6283_v38  ;;  %v4218_v60 = vcombine.low %v7735_v23, %v3363_v16  ;;  %v4219_v53 = vcombine.high %v7735_v23, %v3363_v16  ;;  %v4278_v18 = vrot.slane %v4270_v41, %v6774_v54 }
 0x28a   : > { %3206 = vst.msk [vmem:[%s6840_s11 + $0xb0] sm:$0xf] %vm3161_vm1, %v6299_v13  ;;  %3222 = vst.msk [vmem:[%s6840_s11 + $0xf0] sm:$0xf] %vm3161_vm1, %v6315_v45  ;;  %v2765_v11 = vcombine.low %v2741_v31, %v2757_v49  ;;  %v2766_v21 = vcombine.high %v2741_v31, %v2757_v49  ;;  %v2767_v48 = vcombine.low %v2748_v6, %v2764_v22 }
 0x28b   : > { %v2768_v35 = vcombine.high %v2748_v6, %v2764_v22  ;;  %v4285_v3 = vrot.slane %v4271_v30, %v6774_v54  ;;  %v4226_v10 = vrot.slane %v4218_v60, %v6774_v54  ;;  %v4233_v43 = vrot.slane %v4219_v53, %v6774_v54 }
 0x28c   : > { %v6268_v37 = vpack.c.bf16 %v2765_v11, %v2765_v11  ;;  %v6284_v23 = vpack.c.bf16 %v2766_v21, %v2766_v21  ;;  %v6300_v55 = vpack.c.bf16 %v2767_v48, %v2767_v48  ;;  %v4286_v24 = vcombine.low %v7783_v50, %v3365_v33 }
 0x28d   : > { %v6316_v28 = vpack.c.bf16 %v2768_v35, %v2768_v35  ;;  %v4234_v25 = vcombine.low %v7774_v44, %v4226_v10  ;;  %v4235_v7 = vcombine.high %v7774_v44, %v4226_v10  ;;  %v4250_v46 = vcombine.low %v7777_v58, %v4233_v43 }
 0x28e   : > { %v4251_v63 = vcombine.high %v7777_v58, %v4233_v43  ;;  %3175 = vst.msk [vmem:[%s6840_s11 + $0x34] sm:$0xf] %vm3161_vm1, %v6268_v37  ;;  %3191 = vst.msk [vmem:[%s6840_s11 + $0x74] sm:$0xf] %vm3161_vm1, %v6284_v23  ;;  %v4287_v4 = vcombine.high %v7783_v50, %v3365_v33  ;;  %v4354_v5 = vcombine.low %v7619_v20, %v3367_v57 }
 0x28f   : > { %3207 = vst.msk [vmem:[%s6840_s11 + $0xb4] sm:$0xf] %vm3161_vm1, %v6300_v55  ;;  %3223 = vst.msk [vmem:[%s6840_s11 + $0xf4] sm:$0xf] %vm3161_vm1, %v6316_v28  ;;  %v4355_v44 = vcombine.high %v7619_v20, %v3367_v57  ;;  %v4242_v52 = vrot.slane %v4234_v25, %v6778_v61  ;;  %v4249_v58 = vrot.slane %v4235_v7, %v6778_v61 }
 0x290   : > { %v4258_v12 = vrot.slane %v4250_v46, %v6778_v61  ;;  %v4265_v59 = vrot.slane %v4251_v63, %v6778_v61  ;;  %v4294_v17 = vrot.slane %v4286_v24, %v6774_v54  ;;  %v4301_v39 = vrot.slane %v4287_v4, %v6774_v54 }
 0x291   : > { %v7840_v32 = vrot.slane %v4354_v5, %v6774_v54  ;;  %v7843_v50 = vrot.slane %v4355_v44, %v6774_v54  ;;  %v5290_v14 = vcombine.low %v4242_v52, %v4249_v58  ;;  %v6178_v20 = vcombine.high %v4242_v52, %v4249_v58 }
 0x292   : > { %v5306_v19 = vcombine.low %v4258_v12, %v4265_v59  ;;  %v6179_v47 = vcombine.high %v4258_v12, %v4265_v59  ;;  %v4302_v8 = vcombine.low %v4278_v18, %v4294_v17  ;;  %v4303_v40 = vcombine.high %v4278_v18, %v4294_v17 }
 0x293   : > { %v4318_v56 = vcombine.low %v4285_v3, %v4301_v39  ;;  %v4319_v62 = vcombine.high %v4285_v3, %v4301_v39  ;;  %v5297_v16 = vrot.slane %v5290_v14, %v6774_v54  ;;  %v5305_v2 = vrot.slane %v6178_v20, %v6774_v54 }
 0x294   : > { %v5313_v29 = vrot.slane %v5306_v19, %v6774_v54  ;;  %v5321_v51 = vrot.slane %v6179_v47, %v6774_v54  ;;  %v4310_v15 = vrot.slane %v4302_v8, %v6778_v61  ;;  %v4317_v0 = vrot.slane %v4303_v40, %v6778_v61  ;;  %v3369_v40 = vpop.permute.xlu1 %3368 }
 0x295   : > { %v4326_v38 = vrot.slane %v4318_v56, %v6778_v61  ;;  %v4333_v13 = vrot.slane %v4319_v62, %v6778_v61  ;;  %v5322_v45 = vcombine.low %v5297_v16, %v5305_v2  ;;  %v5323_v31 = vcombine.high %v5297_v16, %v5305_v2 }
 0x296   : > { %v5338_v6 = vcombine.low %v5313_v29, %v5321_v51  ;;  %v5339_v49 = vcombine.high %v5313_v29, %v5321_v51  ;;  %v5358_v22 = vcombine.low %v4310_v15, %v4317_v0  ;;  %v6180_v41 = vcombine.high %v4310_v15, %v4317_v0 }
 0x297   : > { %v5374_v30 = vcombine.low %v4326_v38, %v4333_v13  ;;  %v6181_v60 = vcombine.high %v4326_v38, %v4333_v13  ;;  %v5330_v53 = vrot.slane %v5322_v45, %v6778_v61  ;;  %v5337_v11 = vrot.slane %v5323_v31, %v6778_v61 }
 0x298   : > { %v5346_v21 = vrot.slane %v5338_v6, %v6778_v61  ;;  %v5353_v48 = vrot.slane %v5339_v49, %v6778_v61  ;;  %v5365_v35 = vrot.slane %v5358_v22, %v6774_v54  ;;  %v5373_v18 = vrot.slane %v6180_v41, %v6774_v54 }
 0x299   : > { %v5381_v3 = vrot.slane %v5374_v30, %v6774_v54  ;;  %v5389_v10 = vrot.slane %v6181_v60, %v6774_v54  ;;  %v4370_v58 = vcombine.low %v7726_v26, %v7840_v32  ;;  %v4371_v12 = vcombine.high %v7726_v26, %v7840_v32 }
 0x29a   : > { %v5354_v43 = vcombine.low %v5330_v53, %v5346_v21  ;;  %v5355_v33 = vcombine.high %v5330_v53, %v5346_v21  ;;  %v5356_v57 = vcombine.low %v5337_v11, %v5353_v48  ;;  %v5357_v37 = vcombine.high %v5337_v11, %v5353_v48 }
 0x29b   : > { %v5390_v23 = vcombine.low %v5365_v35, %v5373_v18  ;;  %v5391_v55 = vcombine.high %v5365_v35, %v5373_v18  ;;  %v5406_v28 = vcombine.low %v5381_v3, %v5389_v10  ;;  %v5407_v25 = vcombine.high %v5381_v3, %v5389_v10 }
 0x29c   : > { %v6331_v7 = vpack.c.bf16 %v5354_v43, %v5354_v43  ;;  %v6347_v46 = vpack.c.bf16 %v5355_v33, %v5355_v33  ;;  %v6363_v63 = vpack.c.bf16 %v5356_v57, %v5356_v57  ;;  %v6379_v24 = vpack.c.bf16 %v5357_v37, %v5357_v37 }
 0x29d   : > { %v5398_v4 = vrot.slane %v5390_v23, %v6778_v61  ;;  %v5405_v5 = vrot.slane %v5391_v55, %v6778_v61  ;;  %v5414_v44 = vrot.slane %v5406_v28, %v6778_v61  ;;  %v5421_v52 = vrot.slane %v5407_v25, %v6778_v61 }
 0x29e   : > { %5830 = vst.msk [vmem:[%s6933_s14 + $0x30] sm:$0xf] %vm3161_vm1, %v6331_v7  ;;  %5846 = vst.msk [vmem:[%s6933_s14 + $0x70] sm:$0xf] %vm3161_vm1, %v6347_v46  ;;  %v4386_v59 = vcombine.low %v7729_v36, %v7843_v50  ;;  %v4387_v17 = vcombine.high %v7729_v36, %v7843_v50  ;;  %v4378_v47 = vrot.slane %v4370_v58, %v6778_v61 }
 0x29f   : > { %5862 = vst.msk [vmem:[%s6933_s14 + $0xb0] sm:$0xf] %vm3161_vm1, %v6363_v63  ;;  %5878 = vst.msk [vmem:[%s6933_s14 + $0xf0] sm:$0xf] %vm3161_vm1, %v6379_v24  ;;  %v5422_v39 = vcombine.low %v5398_v4, %v5414_v44  ;;  %v5423_v14 = vcombine.high %v5398_v4, %v5414_v44  ;;  %v5424_v20 = vcombine.low %v5405_v5, %v5421_v52 }
 0x2a0   : > { %v5425_v19 = vcombine.high %v5405_v5, %v5421_v52  ;;  %v4385_v8 = vrot.slane %v4371_v12, %v6778_v61  ;;  %v4394_v26 = vrot.slane %v4386_v59, %v6778_v61  ;;  %v4401_v32 = vrot.slane %v4387_v17, %v6778_v61 }
 0x2a1   : > { %v6332_v56 = vpack.c.bf16 %v5422_v39, %v5422_v39  ;;  %v6348_v62 = vpack.c.bf16 %v5423_v14, %v5423_v14  ;;  %v6364_v36 = vpack.c.bf16 %v5424_v20, %v5424_v20  ;;  %v4422_v15 = vcombine.low %v7663_v34, %v3369_v40 }
 0x2a2   : > { %v6380_v50 = vpack.c.bf16 %v5425_v19, %v5425_v19  ;;  %v5426_v16 = vcombine.low %v4378_v47, %v4385_v8  ;;  %v6182_v2 = vcombine.high %v4378_v47, %v4385_v8  ;;  %v5442_v29 = vcombine.low %v4394_v26, %v4401_v32 }
 0x2a3   : > { %v6183_v51 = vcombine.high %v4394_v26, %v4401_v32  ;;  %5831 = vst.msk [vmem:[%s6933_s14 + $0x34] sm:$0xf] %vm3161_vm1, %v6332_v56  ;;  %5847 = vst.msk [vmem:[%s6933_s14 + $0x74] sm:$0xf] %vm3161_vm1, %v6348_v62  ;;  %v4423_v0 = vcombine.high %v7663_v34, %v3369_v40  ;;  %v4414_v6 = vrot.slane %v4406_v9, %v6774_v54 }
 0x2a4   : > { %5863 = vst.msk [vmem:[%s6933_s14 + $0xb4] sm:$0xf] %vm3161_vm1, %v6364_v36  ;;  %5879 = vst.msk [vmem:[%s6933_s14 + $0xf4] sm:$0xf] %vm3161_vm1, %v6380_v50  ;;  %v5433_v38 = vrot.slane %v5426_v16, %v6774_v54  ;;  %v5441_v13 = vrot.slane %v6182_v2, %v6774_v54  ;;  %v5449_v45 = vrot.slane %v5442_v29, %v6774_v54 }
 0x2a5   : > { %v5457_v31 = vrot.slane %v6183_v51, %v6774_v54  ;;  %v4421_v49 = vrot.slane %v4407_v1, %v6774_v54  ;;  %v4430_v34 = vrot.slane %v4422_v15, %v6774_v54  ;;  %v4437_v22 = vrot.slane %v4423_v0, %v6774_v54 }
 0x2a6   : > { %v5458_v41 = vcombine.low %v5433_v38, %v5441_v13  ;;  %v5459_v30 = vcombine.high %v5433_v38, %v5441_v13 }
 0x2a7   : > { %v5474_v60 = vcombine.low %v5449_v45, %v5457_v31  ;;  %v5475_v53 = vcombine.high %v5449_v45, %v5457_v31  ;;  %v4438_v11 = vcombine.low %v4414_v6, %v4430_v34  ;;  %v4439_v21 = vcombine.high %v4414_v6, %v4430_v34 }
 0x2a8   : > { %v4454_v48 = vcombine.low %v4421_v49, %v4437_v22  ;;  %v4455_v35 = vcombine.high %v4421_v49, %v4437_v22  ;;  %v5466_v18 = vrot.slane %v5458_v41, %v6778_v61  ;;  %v5473_v9 = vrot.slane %v5459_v30, %v6778_v61 }
 0x2a9   : > { %v5482_v3 = vrot.slane %v5474_v60, %v6778_v61  ;;  %v5489_v42 = vrot.slane %v5475_v53, %v6778_v61  ;;  %v4446_v27 = vrot.slane %v4438_v11, %v6778_v61  ;;  %v4453_v1 = vrot.slane %v4439_v21, %v6778_v61 }
 0x2aa   : > { %v4462_v10 = vrot.slane %v4454_v48, %v6778_v61  ;;  %v4469_v43 = vrot.slane %v4455_v35, %v6778_v61 }
 0x2ab   : > { %v5490_v33 = vcombine.low %v5466_v18, %v5482_v3  ;;  %v5491_v57 = vcombine.high %v5466_v18, %v5482_v3  ;;  %v5492_v37 = vcombine.low %v5473_v9, %v5489_v42  ;;  %v5493_v23 = vcombine.high %v5473_v9, %v5489_v42 }
 0x2ac   : > { %v5494_v55 = vcombine.low %v4446_v27, %v4453_v1  ;;  %v6184_v28 = vcombine.high %v4446_v27, %v4453_v1  ;;  %v5510_v25 = vcombine.low %v4462_v10, %v4469_v43  ;;  %v6185_v7 = vcombine.high %v4462_v10, %v4469_v43 }
 0x2ad   : > { %v6333_v46 = vpack.c.bf16 %v5490_v33, %v5490_v33  ;;  %v6349_v63 = vpack.c.bf16 %v5491_v57, %v5491_v57  ;;  %v6365_v24 = vpack.c.bf16 %v5492_v37, %v5492_v37  ;;  %v6381_v4 = vpack.c.bf16 %v5493_v23, %v5493_v23 }
 0x2ae   : > { %v5501_v5 = vrot.slane %v5494_v55, %v6774_v54  ;;  %v5509_v44 = vrot.slane %v6184_v28, %v6774_v54  ;;  %v5517_v52 = vrot.slane %v5510_v25, %v6774_v54  ;;  %v5525_v58 = vrot.slane %v6185_v7, %v6774_v54 }
 0x2af   : > { %5832 = vst.msk [vmem:[%s6933_s14 + $0x38] sm:$0xf] %vm3161_vm1, %v6333_v46  ;;  %5848 = vst.msk [vmem:[%s6933_s14 + $0x78] sm:$0xf] %vm3161_vm1, %v6349_v63 }
 0x2b0   : > { %5864 = vst.msk [vmem:[%s6933_s14 + $0xb8] sm:$0xf] %vm3161_vm1, %v6365_v24  ;;  %5880 = vst.msk [vmem:[%s6933_s14 + $0xf8] sm:$0xf] %vm3161_vm1, %v6381_v4  ;;  %v5526_v12 = vcombine.low %v5501_v5, %v5509_v44  ;;  %v5527_v59 = vcombine.high %v5501_v5, %v5509_v44  ;;  %v5542_v17 = vcombine.low %v5517_v52, %v5525_v58 }
 0x2b1   : > { %v5543_v39 = vcombine.high %v5517_v52, %v5525_v58 }
 0x2b2   : > { %v5534_v14 = vrot.slane %v5526_v12, %v6778_v61  ;;  %v5541_v54 = vrot.slane %v5527_v59, %v6778_v61  ;;  %v5550_v20 = vrot.slane %v5542_v17, %v6778_v61 }
 0x2b3   : > { %v5557_v19 = vrot.slane %v5543_v39, %v6778_v61 }
 0x2b4   : > { %v5558_v47 = vcombine.low %v5534_v14, %v5550_v20  ;;  %v5559_v8 = vcombine.high %v5534_v14, %v5550_v20 }
 0x2b5   : > { %v5560_v26 = vcombine.low %v5541_v54, %v5557_v19  ;;  %v5561_v32 = vcombine.high %v5541_v54, %v5557_v19 }
 0x2b6   : > { %v6334_v40 = vpack.c.bf16 %v5558_v47, %v5558_v47  ;;  %v6350_v56 = vpack.c.bf16 %v5559_v8, %v5559_v8 }
 0x2b7   : > { %v6366_v62 = vpack.c.bf16 %v5560_v26, %v5560_v26  ;;  %v6382_v36 = vpack.c.bf16 %v5561_v32, %v5561_v32 }
 0x2b8   : > { %5833 = vst.msk [vmem:[%s6933_s14 + $0x3c] sm:$0xf] %vm3161_vm1, %v6334_v40  ;;  %5849 = vst.msk [vmem:[%s6933_s14 + $0x7c] sm:$0xf] %vm3161_vm1, %v6350_v56 }
 0x2b9   : > { %5865 = vst.msk [vmem:[%s6933_s14 + $0xbc] sm:$0xf] %vm3161_vm1, %v6366_v62  ;;  %5881 = vst.msk [vmem:[%s6933_s14 + $0xfc] sm:$0xf] %vm3161_vm1, %v6382_v36 }
 0x2ba PF: > { %s15_s17 = sadd.s32 1, %s6506_s17   ;;  %s7955_s15 = smov %s6502_s16 }
 0x2bb   : > { %p12_p5 = scmp.ge.s32.totalorder %s15_s17, 4   ;;  %s7956_s16 = smov %s7958_s18 }
 0x2bd   :  { %14 = sbr.rel (!%p12_p5) target bundleno = 2 (0x2), region = 74 }

// kernel: tpu_custom_call.1
= control target key start
LH: loop header
LB: loop body
LE: loop exit
PB: predicated region body
PF: predicated region fallthrough
CT: control target
= control target key end

     0   :  { %s6538_s15 = smov 0   ;;  %s6540_s16 = smov 0   ;;  %s7950_s0 = inlined_call_operand.vmem [shape: bf16[2,128,32], index: 0, kind: input, shape index: {}]   ;;  %s7951_s1 = inlined_call_operand.vmem [shape: bf16[32,64], index: 1, kind: input, shape index: {}]   ;;  %s7952_s2 = inlined_call_operand.vmem [shape: bf16[32,64], index: 2, kind: input, shape index: {}]   ;;  %s7953_s3 = inlined_call_operand.vmem [shape: bf16[2,4,128,16], index: 3, kind: output, shape index: {0}]   ;;  %s7954_s4 = inlined_call_operand.vmem [shape: bf16[2,4,128,16], index: 4, kind: output, shape index: {1}]  }
   0x1   :  { %s6542_s17 = smov 0  }
   0x2 LB: > { %s27_s18 = sadd.s32 1, %s6502_s16  ;;  %p6023_p0 = scmp.ge.s32.totalorder %s6506_s17, 1  ;;  %s6506_s17 = sphi %s6542_s17, %s15_s17   ;;  %s6502_s16 = sphi %s6540_s16, %s7956_s16   ;;  %s6498_s15 = sphi %s6538_s15, %s7955_s15  }
   0x3   : > { %p29_p1 = scmp.ge.s32.totalorder %s27_s18, 2  ;;  %p188_p2 = scmp.lt.s32.totalorder %s6506_s17, 3 }
   0x5   : > { %s7958_s18 = smov (%p29_p1, %s27_s18), 0  ;;  %p189_p3 = pnand %p6023_p0, %p188_p2 }
   0x6   : > { %v6472_v0 = vld [vmem:[%s7951_s1] sm:$0xff] (!%p189_p3)   ;;  %p232_p4 = scmp.lt.s32.totalorder (!%p189_p3), %s6498_s15, 1  ;;  %v6473_v1 = vld [vmem:[%s7951_s1 + $0x8] sm:$0xff] (!%p189_p3)   ;;  %vm334_vm0 = vcmask (!%p189_p3), 261120   ;;  %s6508_s5 = smov (!%p189_p3), 96   ;;  %v734_v46 = vlaneseq (!%p189_p3)  ;;  %vm3161_vm1 = vcmask (!%p189_p3), 125952  }
   0x7   : > { %192 = sbr.rel (%p189_p3) target bundleno = 698 (0x2ba), region = 32  ;;  %6403 = vmatprep.subr.bf16.mxu0 (!%p189_p3), %v6472_v0  ;;  %v6474_v2 = vld [vmem:[%s7952_s2] sm:$0xff] (!%p189_p3)   ;;  %v6477_v3 = vld [vmem:[%s7952_s2 + $0x8] sm:$0xff] (!%p189_p3)   ;;  %s6509_s6 = smov (!%p189_p3), 112   ;;  %v6511_v44 = vmov (!%p189_p3), 1983009808  }
   0x8   : > { %6404 = vmatpush3.bf16.msra.mxu0 (!%p189_p3), %v6472_v0  ;;  %6423 = vmatprep.subr.bf16.mxu1 (!%p189_p3), %v6474_v2  ;;  %s6510_s7 = smov (!%p189_p3), 80   ;;  %v732_v45 = vunpack.c.l.s4 (!%p189_p3), %v6511_v44  ;;  %v6512_v47 = vmov (!%p189_p3), 1934713408   ;;  %v735_v50 = vshrl.u32 (!%p189_p3), %v734_v46, 7 }
   0x9   : > { %6405 = vmatprep.subr.bf16.mxu0 (!%p189_p3), %v6473_v1  ;;  %6424 = vmatpush3.bf16.msra.mxu1 (!%p189_p3), %v6474_v2  ;;  %v764_v48 = vunpack.c.l.s4 (!%p189_p3), %v6512_v47 }
   0xa   : > { %6425 = vmatprep.subr.bf16.mxu1 (!%p189_p3), %v6477_v3  ;;  %v733_v49 = vunpack.c.0.s8 (!%p189_p3), %v732_v45 }
   0xb   : > { %v765_v53 = vunpack.c.0.s8 (!%p189_p3), %v764_v48 }
   0xc   : > { %6406 = vmatpush3.bf16.msra.mxu0 (!%p189_p3), %v6473_v1  ;;  %v6774_v54 = vsub.s32 (!%p189_p3), %v733_v49, %v735_v50 }
   0xd   : > { %6426 = vmatpush3.bf16.msra.mxu1 (!%p189_p3), %v6477_v3  ;;  %v6778_v61 = vsub.s32 (!%p189_p3), %v765_v53, %v735_v50 }
   0xe   : > { %s7960_s15 = smov (!%p232_p4, %s6498_s15), 1 }
   0xf   : > { %s6252_s27 = sshll.u32 %s7960_s15, 6  ;;  %s6253_s8 = sshll.u32 %s7960_s15, 8 }
  0x10   : > { %s239_s30 = scalar_lea.vmem %s7950_s0, %s6252_s27  ;;  %s6840_s11 = scalar_lea.vmem %s7953_s3, %s6253_s8 }
  0x11   : > { %v6475_v4 = vld [vmem:[%s239_s30] sm:$0xff]   ;;  %v6476_v5 = vld [vmem:[%s239_s30 + $0x8] sm:$0xff]   ;;  %v6478_v6 = vld [vmem:[%s239_s30 + $0x10] sm:$0xff]   ;;  %s6933_s14 = scalar_lea.vmem %s7954_s4, %s6253_s8 }
  0x12   : > { %6407 = vmatprep.mubr.msk.bf16.mxu0 %vm334_vm0, %v6475_v4  ;;  %6427 = vmatprep.mubr.msk.bf16.mxu1 %vm334_vm0, %v6475_v4  ;;  %v6479_v7 = vld [vmem:[%s239_s30 + $0x18] sm:$0xff]   ;;  %v6480_v8 = vld [vmem:[%s239_s30 + $0x20] sm:$0xff]   ;;  %v6481_v9 = vld [vmem:[%s239_s30 + $0x28] sm:$0xff]  }
  0x13   : > { %6408 = vmatmul.mubr.msk.bf16.vlgmr.msra.gmra.mrb[0].mxu0 %vm334_vm0, %v6476_v5  ;;  %6428 = vmatmul.mubr.msk.bf16.vlgmr.msra.gmra.mrb[0].mxu1 %vm334_vm0, %v6476_v5  ;;  %v6482_v10 = vld [vmem:[%s239_s30 + $0x30] sm:$0xff]   ;;  %v6483_v11 = vld [vmem:[%s239_s30 + $0x38] sm:$0xff]  }
  0x14   : > { %6411 = vmatprep.mubr.msk.bf16.mxu0 %vm334_vm0, %v6478_v6  ;;  %6431 = vmatprep.mubr.msk.bf16.mxu1 %vm334_vm0, %v6478_v6 }
  0x1b   : > { %6412 = vmatmul.mubr.msk.bf16.gmra.mrb[4].mxu0 %vm334_vm0, %v6479_v7  ;;  %6432 = vmatmul.mubr.msk.bf16.gmra.mrb[4].mxu1 %vm334_vm0, %v6479_v7 }
  0x1c   : > { %6415 = vmatprep.mubr.msk.bf16.mxu0 %vm334_vm0, %v6480_v8  ;;  %6435 = vmatprep.mubr.msk.bf16.mxu1 %vm334_vm0, %v6480_v8 }
  0x23   : > { %6416 = vmatmul.mubr.msk.bf16.gmra.mrb[8].mxu0 %vm334_vm0, %v6481_v9  ;;  %6436 = vmatmul.mubr.msk.bf16.gmra.mrb[8].mxu1 %vm334_vm0, %v6481_v9 }
  0x24   : > { %6419 = vmatprep.mubr.msk.bf16.mxu0 %vm334_vm0, %v6482_v10  ;;  %6439 = vmatprep.mubr.msk.bf16.mxu1 %vm334_vm0, %v6482_v10 }
  0x2b   : > { %6420 = vmatmul.mubr.msk.bf16.gmra.mrb[12].mxu0 %vm334_vm0, %v6483_v11  ;;  %6440 = vmatmul.mubr.msk.bf16.gmra.mrb[12].mxu1 %vm334_vm0, %v6483_v11 }
  0xe6   : > { %v6590_v12 = vpop.f32.mrb[0].mxu0  ;;  %v6600_v15 = vpop.f32.mrb[0].mxu1 }
  0xe7   : > { %637 = vrot.lane.b32.xlu0 %v6590_v12, %s6508_s5  ;;  %589 = vrot.lane.b32.xlu1 %v6590_v12, %s6509_s6  ;;  %v6596_v13 = vpop.f32.mrb[1].mxu0  ;;  %v6604_v17 = vpop.f32.mrb[1].mxu1 }
  0xe8   : > { %v6598_v14 = vpop.f32.mrb[2].mxu0  ;;  %v6606_v18 = vpop.f32.mrb[2].mxu1 }
  0xe9   : > { %v6602_v16 = vpop.f32.mrb[3].mxu0  ;;  %v6612_v19 = vpop.f32.mrb[3].mxu1 }
  0xeb   : > { %685 = vrot.lane.b32.xlu0 %v6590_v12, %s6510_s7  ;;  %591 = vrot.lane.b32.xlu1 %v6598_v14, %s6509_s6 }
  0xee   : > { %v6614_v20 = vpop.f32.mrb[4].mxu0  ;;  %v6624_v23 = vpop.f32.mrb[4].mxu1 }
  0xef   : > { %3246 = vrot.lane.b32.xlu0 %v6600_v15, %s6509_s6  ;;  %639 = vrot.lane.b32.xlu1 %v6598_v14, %s6508_s5  ;;  %v6620_v21 = vpop.f32.mrb[5].mxu0  ;;  %v6628_v25 = vpop.f32.mrb[5].mxu1 }
  0xf0   : > { %v6622_v22 = vpop.f32.mrb[6].mxu0  ;;  %v6630_v26 = vpop.f32.mrb[6].mxu1 }
  0xf1   : > { %v6626_v24 = vpop.f32.mrb[7].mxu0  ;;  %v6636_v27 = vpop.f32.mrb[7].mxu1 }
  0xf3   : > { %3294 = vrot.lane.b32.xlu0 %v6600_v15, %s6508_s5  ;;  %687 = vrot.lane.b32.xlu1 %v6598_v14, %s6510_s7 }
  0xf6   : > { %v6638_v28 = vpop.f32.mrb[8].mxu0  ;;  %v6648_v31 = vpop.f32.mrb[8].mxu1 }
  0xf7   : > { %3342 = vrot.lane.b32.xlu0 %v6600_v15, %s6510_s7  ;;  %3248 = vrot.lane.b32.xlu1 %v6606_v18, %s6509_s6  ;;  %v6644_v29 = vpop.f32.mrb[9].mxu0  ;;  %v6652_v33 = vpop.f32.mrb[9].mxu1 }
  0xf8   : > { %v6646_v30 = vpop.f32.mrb[10].mxu0  ;;  %v6654_v34 = vpop.f32.mrb[10].mxu1 }
  0xf9   : > { %v6650_v32 = vpop.f32.mrb[11].mxu0  ;;  %v6660_v35 = vpop.f32.mrb[11].mxu1 }
  0xfb   : > { %585 = vrot.lane.b32.xlu0 %v6596_v13, %s6509_s6  ;;  %3296 = vrot.lane.b32.xlu1 %v6606_v18, %s6508_s5 }
  0xfe   : > { %v6662_v36 = vpop.f32.mrb[12].mxu0  ;;  %v6686_v40 = vpop.f32.mrb[12].mxu1 }
  0xff   : > { %633 = vrot.lane.b32.xlu0 %v6596_v13, %s6508_s5  ;;  %3344 = vrot.lane.b32.xlu1 %v6606_v18, %s6510_s7  ;;  %v6668_v37 = vpop.f32.mrb[13].mxu0  ;;  %v6692_v41 = vpop.f32.mrb[13].mxu1 }
 0x100   : > { %v6670_v38 = vpop.f32.mrb[14].mxu0  ;;  %v6694_v42 = vpop.f32.mrb[14].mxu1 }
 0x101   : > { %v6672_v39 = vpop.f32.mrb[15].mxu0  ;;  %v6696_v43 = vpop.f32.mrb[15].mxu1 }
 0x103   : > { %681 = vrot.lane.b32.xlu0 %v6596_v13, %s6510_s7  ;;  %635 = vrot.lane.b32.xlu1 %v6602_v16, %s6508_s5 }
 0x107   : > { %3242 = vrot.lane.b32.xlu0 %v6604_v17, %s6509_s6  ;;  %683 = vrot.lane.b32.xlu1 %v6602_v16, %s6510_s7 }
 0x10b   : > { %3290 = vrot.lane.b32.xlu0 %v6604_v17, %s6508_s5  ;;  %3244 = vrot.lane.b32.xlu1 %v6612_v19, %s6509_s6 }
 0x10f   : > { %3338 = vrot.lane.b32.xlu0 %v6604_v17, %s6510_s7  ;;  %3292 = vrot.lane.b32.xlu1 %v6612_v19, %s6508_s5 }
 0x113   : > { %3340 = vrot.lane.b32.xlu1 %v6612_v19, %s6510_s7  ;;  %587 = vrot.lane.b32.xlu0 %v6602_v16, %s6509_s6 }
 0x117   : > { %597 = vrot.lane.b32.xlu0 %v6614_v20, %s6509_s6  ;;  %599 = vrot.lane.b32.xlu1 %v6622_v22, %s6509_s6 }
 0x11b   : > { %645 = vrot.lane.b32.xlu0 %v6614_v20, %s6508_s5  ;;  %647 = vrot.lane.b32.xlu1 %v6622_v22, %s6508_s5 }
 0x11f   : > { %693 = vrot.lane.b32.xlu0 %v6614_v20, %s6510_s7  ;;  %695 = vrot.lane.b32.xlu1 %v6622_v22, %s6510_s7 }
 0x123   : > { %3254 = vrot.lane.b32.xlu0 %v6624_v23, %s6509_s6  ;;  %3256 = vrot.lane.b32.xlu1 %v6630_v26, %s6509_s6 }
 0x127   : > { %3302 = vrot.lane.b32.xlu0 %v6624_v23, %s6508_s5  ;;  %3304 = vrot.lane.b32.xlu1 %v6630_v26, %s6508_s5 }
 0x12b   : > { %3350 = vrot.lane.b32.xlu0 %v6624_v23, %s6510_s7  ;;  %3352 = vrot.lane.b32.xlu1 %v6630_v26, %s6510_s7 }
 0x12f   : > { %593 = vrot.lane.b32.xlu0 %v6620_v21, %s6509_s6  ;;  %595 = vrot.lane.b32.xlu1 %v6626_v24, %s6509_s6 }
 0x133   : > { %641 = vrot.lane.b32.xlu0 %v6620_v21, %s6508_s5  ;;  %643 = vrot.lane.b32.xlu1 %v6626_v24, %s6508_s5 }
 0x137   : > { %689 = vrot.lane.b32.xlu0 %v6620_v21, %s6510_s7  ;;  %691 = vrot.lane.b32.xlu1 %v6626_v24, %s6510_s7 }
 0x13b   : > { %3250 = vrot.lane.b32.xlu0 %v6628_v25, %s6509_s6  ;;  %3252 = vrot.lane.b32.xlu1 %v6636_v27, %s6509_s6 }
 0x13f   : > { %3298 = vrot.lane.b32.xlu0 %v6628_v25, %s6508_s5  ;;  %3300 = vrot.lane.b32.xlu1 %v6636_v27, %s6508_s5 }
 0x143   : > { %3346 = vrot.lane.b32.xlu0 %v6628_v25, %s6510_s7  ;;  %3348 = vrot.lane.b32.xlu1 %v6636_v27, %s6510_s7 }
 0x147   : > { %605 = vrot.lane.b32.xlu0 %v6638_v28, %s6509_s6  ;;  %607 = vrot.lane.b32.xlu1 %v6646_v30, %s6509_s6 }
 0x14b   : > { %653 = vrot.lane.b32.xlu0 %v6638_v28, %s6508_s5  ;;  %655 = vrot.lane.b32.xlu1 %v6646_v30, %s6508_s5 }
 0x14f   : > { %701 = vrot.lane.b32.xlu0 %v6638_v28, %s6510_s7  ;;  %703 = vrot.lane.b32.xlu1 %v6646_v30, %s6510_s7 }
 0x153   : > { %3262 = vrot.lane.b32.xlu0 %v6648_v31, %s6509_s6  ;;  %3264 = vrot.lane.b32.xlu1 %v6654_v34, %s6509_s6 }
 0x157   : > { %3310 = vrot.lane.b32.xlu0 %v6648_v31, %s6508_s5  ;;  %3312 = vrot.lane.b32.xlu1 %v6654_v34, %s6508_s5 }
 0x159   : > { %v638_v51 = vpop.permute.xlu0 %637  ;;  %v590_v52 = vpop.permute.xlu1 %589 }
 0x15a   : > { %v865_v55 = vcombine.low %v6590_v12, %v638_v51  ;;  %v866_v56 = vcombine.high %v6590_v12, %v638_v51 }
 0x15b   : > { %3358 = vrot.lane.b32.xlu0 %v6648_v31, %s6510_s7  ;;  %3360 = vrot.lane.b32.xlu1 %v6654_v34, %s6510_s7 }
 0x15c   : > { %v873_v62 = vrot.slane %v865_v55, %v6774_v54  ;;  %v880_v63 = vrot.slane %v866_v56, %v6774_v54 }
 0x15d   : > { %v686_v57 = vpop.permute.xlu0 %685  ;;  %v592_v58 = vpop.permute.xlu1 %591 }
 0x15e   : > { %v881_v59 = vcombine.low %v590_v52, %v686_v57  ;;  %v882_v60 = vcombine.high %v590_v52, %v686_v57 }
 0x15f   : > { %601 = vrot.lane.b32.xlu0 %v6644_v29, %s6509_s6  ;;  %603 = vrot.lane.b32.xlu1 %v6650_v32, %s6509_s6 }
 0x160   : > { %v889_v0 = vrot.slane %v881_v59, %v6774_v54  ;;  %v896_v1 = vrot.slane %v882_v60, %v6774_v54 }
 0x161   : > { %v6788_v2 = vpop.permute.xlu0 %3246  ;;  %v640_v3 = vpop.permute.xlu1 %639 }
 0x162   : > { %v897_v4 = vcombine.low %v873_v62, %v889_v0  ;;  %v898_v5 = vcombine.high %v873_v62, %v889_v0  ;;  %v913_v6 = vcombine.low %v880_v63, %v896_v1  ;;  %v914_v7 = vcombine.high %v880_v63, %v896_v1 }
 0x163   : > { %v933_v8 = vcombine.low %v6598_v14, %v640_v3  ;;  %v934_v9 = vcombine.high %v6598_v14, %v640_v3  ;;  %649 = vrot.lane.b32.xlu0 %v6644_v29, %s6508_s5  ;;  %651 = vrot.lane.b32.xlu1 %v6650_v32, %s6508_s5 }
 0x164   : > { %v905_v10 = vrot.slane %v897_v4, %v6778_v61  ;;  %v912_v11 = vrot.slane %v898_v5, %v6778_v61  ;;  %v921_v12 = vrot.slane %v913_v6, %v6778_v61  ;;  %v928_v44 = vrot.slane %v914_v7, %v6778_v61 }
 0x165   : > { %v6800_v45 = vpop.permute.xlu0 %3294  ;;  %v688_v46 = vpop.permute.xlu1 %687  ;;  %v941_v50 = vrot.slane %v933_v8, %v6774_v54  ;;  %v948_v51 = vrot.slane %v934_v9, %v6774_v54 }
 0x166   : > { %v1953_v47 = vcombine.low %v905_v10, %v912_v11  ;;  %v6062_v48 = vcombine.high %v905_v10, %v912_v11  ;;  %v1969_v14 = vcombine.low %v921_v12, %v928_v44  ;;  %v6063_v49 = vcombine.high %v921_v12, %v928_v44 }
 0x167   : > { %v949_v52 = vcombine.low %v592_v58, %v688_v46  ;;  %v950_v53 = vcombine.high %v592_v58, %v688_v46  ;;  %697 = vrot.lane.b32.xlu0 %v6644_v29, %s6510_s7  ;;  %699 = vrot.lane.b32.xlu1 %v6650_v32, %s6510_s7  ;;  %v3522_v60 = vcombine.low %v6600_v15, %v6800_v45 }
 0x168   : > { %v1960_v55 = vrot.slane %v1953_v47, %v6774_v54  ;;  %v1968_v56 = vrot.slane %v6062_v48, %v6774_v54  ;;  %v1976_v57 = vrot.slane %v1969_v14, %v6774_v54  ;;  %v1984_v59 = vrot.slane %v6063_v49, %v6774_v54 }
 0x169   : > { %v3523_v58 = vcombine.high %v6600_v15, %v6800_v45  ;;  %v957_v62 = vrot.slane %v949_v52, %v6774_v54  ;;  %v964_v63 = vrot.slane %v950_v53, %v6774_v54  ;;  %v3343_v0 = vpop.permute.xlu0 %3342  ;;  %v6818_v10 = vpop.permute.xlu1 %3248 }
 0x16a   : > { %v1985_v1 = vcombine.low %v1960_v55, %v1968_v56  ;;  %v1986_v3 = vcombine.high %v1960_v55, %v1968_v56  ;;  %v2001_v4 = vcombine.low %v1976_v57, %v1984_v59  ;;  %v2002_v5 = vcombine.high %v1976_v57, %v1984_v59 }
 0x16b   : > { %v965_v6 = vcombine.low %v941_v50, %v957_v62  ;;  %v966_v7 = vcombine.high %v941_v50, %v957_v62  ;;  %v981_v8 = vcombine.low %v948_v51, %v964_v63  ;;  %v982_v9 = vcombine.high %v948_v51, %v964_v63  ;;  %3258 = vrot.lane.b32.xlu0 %v6652_v33, %s6509_s6 }
 0x16c   : > { %v1993_v15 = vrot.slane %v1985_v1, %v6778_v61  ;;  %v2000_v11 = vrot.slane %v1986_v3, %v6778_v61  ;;  %v2009_v12 = vrot.slane %v2001_v4, %v6778_v61  ;;  %v2016_v44 = vrot.slane %v2002_v5, %v6778_v61  ;;  %3260 = vrot.lane.b32.xlu1 %v6660_v35, %s6509_s6 }
 0x16d   : > { %v973_v45 = vrot.slane %v965_v6, %v6778_v61  ;;  %v980_v46 = vrot.slane %v966_v7, %v6778_v61  ;;  %v989_v47 = vrot.slane %v981_v8, %v6778_v61  ;;  %v996_v48 = vrot.slane %v982_v9, %v6778_v61  ;;  %v6833_v52 = vpop.permute.xlu0 %585  ;;  %v3297_v7 = vpop.permute.xlu1 %3296 }
 0x16e   : > { %v2017_v14 = vcombine.low %v1993_v15, %v2009_v12  ;;  %v2018_v49 = vcombine.high %v1993_v15, %v2009_v12  ;;  %v2019_v50 = vcombine.low %v2000_v11, %v2016_v44  ;;  %v2020_v51 = vcombine.high %v2000_v11, %v2016_v44 }
 0x16f   : > { %v2021_v53 = vcombine.low %v973_v45, %v980_v46  ;;  %v6064_v55 = vcombine.high %v973_v45, %v980_v46  ;;  %v2037_v56 = vcombine.low %v989_v47, %v996_v48  ;;  %v6065_v57 = vcombine.high %v989_v47, %v996_v48  ;;  %3306 = vrot.lane.b32.xlu0 %v6652_v33, %s6508_s5 }
 0x170   : > { %v6257_v59 = vpack.c.bf16 %v2017_v14, %v2017_v14  ;;  %v6273_v62 = vpack.c.bf16 %v2018_v49, %v2018_v49  ;;  %v6289_v63 = vpack.c.bf16 %v2019_v50, %v2019_v50  ;;  %v6305_v1 = vpack.c.bf16 %v2020_v51, %v2020_v51  ;;  %3308 = vrot.lane.b32.xlu1 %v6660_v35, %s6508_s5 }
 0x171   : > { %v2028_v3 = vrot.slane %v2021_v53, %v6774_v54  ;;  %v2036_v4 = vrot.slane %v6064_v55, %v6774_v54  ;;  %v2044_v5 = vrot.slane %v2037_v56, %v6774_v54  ;;  %v2052_v6 = vrot.slane %v6065_v57, %v6774_v54 }
 0x172   : > { %3164 = vst.msk [vmem:[%s6840_s11 + $0x8] sm:$0xf] %vm3161_vm1, %v6257_v59  ;;  %3180 = vst.msk [vmem:[%s6840_s11 + $0x48] sm:$0xf] %vm3161_vm1, %v6273_v62  ;;  %v3530_v8 = vrot.slane %v3522_v60, %v6774_v54  ;;  %v3537_v9 = vrot.slane %v3523_v58, %v6774_v54  ;;  %v3538_v15 = vcombine.low %v6788_v2, %v3343_v0  ;;  %v6868_v58 = vpop.permute.xlu0 %633 }
 0x173   : > { %3196 = vst.msk [vmem:[%s6840_s11 + $0x88] sm:$0xf] %vm3161_vm1, %v6289_v63  ;;  %3212 = vst.msk [vmem:[%s6840_s11 + $0xc8] sm:$0xf] %vm3161_vm1, %v6305_v1  ;;  %v3539_v11 = vcombine.high %v6788_v2, %v3343_v0  ;;  %v2053_v12 = vcombine.low %v2028_v3, %v2036_v4  ;;  %v2054_v44 = vcombine.high %v2028_v3, %v2036_v4  ;;  %3354 = vrot.lane.b32.xlu0 %v6652_v33, %s6510_s7 }
 0x174   : > { %v2069_v45 = vcombine.low %v2044_v5, %v2052_v6  ;;  %v2070_v46 = vcombine.high %v2044_v5, %v2052_v6  ;;  %v3546_v47 = vrot.slane %v3538_v15, %v6774_v54  ;;  %v3590_v14 = vcombine.low %v6606_v18, %v3297_v7  ;;  %3356 = vrot.lane.b32.xlu1 %v6660_v35, %s6510_s7  ;;  %v3345_v5 = vpop.permute.xlu1 %3344 }
 0x175   : > { %v3553_v48 = vrot.slane %v3539_v11, %v6774_v54  ;;  %v3591_v60 = vcombine.high %v6606_v18, %v3297_v7  ;;  %v2061_v2 = vrot.slane %v2053_v12, %v6778_v61  ;;  %v2068_v0 = vrot.slane %v2054_v44, %v6778_v61 }
 0x176   : > { %v2077_v49 = vrot.slane %v2069_v45, %v6778_v61  ;;  %v2084_v50 = vrot.slane %v2070_v46, %v6778_v61  ;;  %v3554_v51 = vcombine.low %v3530_v8, %v3546_v47  ;;  %v3555_v53 = vcombine.high %v3530_v8, %v3546_v47  ;;  %v6884_v45 = vpop.permute.xlu0 %681 }
 0x177   : > { %v3570_v55 = vcombine.low %v3537_v9, %v3553_v48  ;;  %v3571_v56 = vcombine.high %v3537_v9, %v3553_v48  ;;  %613 = vrot.lane.b32.xlu0 %v6662_v36, %s6509_s6  ;;  %v3598_v46 = vrot.slane %v3590_v14, %v6774_v54  ;;  %v3605_v47 = vrot.slane %v3591_v60, %v6774_v54 }
 0x178   : > { %v2085_v57 = vcombine.low %v2061_v2, %v2077_v49  ;;  %v2086_v59 = vcombine.high %v2061_v2, %v2077_v49  ;;  %v2087_v18 = vcombine.low %v2068_v0, %v2084_v50  ;;  %v2088_v62 = vcombine.high %v2068_v0, %v2084_v50  ;;  %615 = vrot.lane.b32.xlu1 %v6670_v38, %s6509_s6 }
 0x179   : > { %v3562_v63 = vrot.slane %v3554_v51, %v6778_v61  ;;  %v3569_v1 = vrot.slane %v3555_v53, %v6778_v61  ;;  %v3578_v3 = vrot.slane %v3570_v55, %v6778_v61  ;;  %v3585_v4 = vrot.slane %v3571_v56, %v6778_v61 }
 0x17a   : > { %v6258_v6 = vpack.c.bf16 %v2085_v57, %v2085_v57  ;;  %v6274_v7 = vpack.c.bf16 %v2086_v59, %v2086_v59  ;;  %v6290_v8 = vpack.c.bf16 %v2087_v18, %v2087_v18  ;;  %v6306_v9 = vpack.c.bf16 %v2088_v62, %v2088_v62 }
 0x17b   : > { %v4610_v15 = vcombine.low %v3562_v63, %v3569_v1  ;;  %v6158_v11 = vcombine.high %v3562_v63, %v3569_v1  ;;  %v4626_v12 = vcombine.low %v3578_v3, %v3585_v4  ;;  %v6159_v44 = vcombine.high %v3578_v3, %v3585_v4  ;;  %661 = vrot.lane.b32.xlu0 %v6662_v36, %s6508_s5  ;;  %v6912_v3 = vpop.permute.xlu1 %635 }
 0x17c   : > { %3165 = vst.msk [vmem:[%s6840_s11 + $0xc] sm:$0xf] %vm3161_vm1, %v6258_v6  ;;  %3181 = vst.msk [vmem:[%s6840_s11 + $0x4c] sm:$0xf] %vm3161_vm1, %v6274_v7  ;;  %v3606_v48 = vcombine.low %v6818_v10, %v3345_v5  ;;  %v3607_v2 = vcombine.high %v6818_v10, %v3345_v5  ;;  %663 = vrot.lane.b32.xlu1 %v6670_v38, %s6508_s5  ;;  %v729_v14 = vcombine.low %v6596_v13, %v6868_v58  ;;  %v6920_v6 = vpop.permute.xlu0 %3242 }
 0x17d   : > { %3197 = vst.msk [vmem:[%s6840_s11 + $0x8c] sm:$0xf] %vm3161_vm1, %v6290_v8  ;;  %3213 = vst.msk [vmem:[%s6840_s11 + $0xcc] sm:$0xf] %vm3161_vm1, %v6306_v9  ;;  %v4617_v0 = vrot.slane %v4610_v15, %v6774_v54  ;;  %v4625_v49 = vrot.slane %v6158_v11, %v6774_v54  ;;  %v4633_v50 = vrot.slane %v4626_v12, %v6774_v54 }
 0x17e   : > { %v4641_v51 = vrot.slane %v6159_v44, %v6774_v54  ;;  %v730_v10 = vcombine.high %v6596_v13, %v6868_v58  ;;  %v3614_v60 = vrot.slane %v3606_v48, %v6774_v54  ;;  %v3621_v53 = vrot.slane %v3607_v2, %v6774_v54 }
 0x17f   : > { %v4642_v55 = vcombine.low %v4617_v0, %v4625_v49  ;;  %v4643_v56 = vcombine.high %v4617_v0, %v4625_v49  ;;  %709 = vrot.lane.b32.xlu0 %v6662_v36, %s6510_s7 }
 0x180   : > { %v4658_v57 = vcombine.low %v4633_v50, %v4641_v51  ;;  %v4659_v59 = vcombine.high %v4633_v50, %v4641_v51  ;;  %v3622_v18 = vcombine.low %v3598_v46, %v3614_v60  ;;  %v3623_v62 = vcombine.high %v3598_v46, %v3614_v60  ;;  %711 = vrot.lane.b32.xlu1 %v6670_v38, %s6510_s7 }
 0x181   : > { %v3638_v63 = vcombine.low %v3605_v47, %v3621_v53  ;;  %v3639_v1 = vcombine.high %v3605_v47, %v3621_v53  ;;  %v4650_v13 = vrot.slane %v4642_v55, %v6778_v61  ;;  %v4657_v58 = vrot.slane %v4643_v56, %v6778_v61 }
 0x182   : > { %v4666_v4 = vrot.slane %v4658_v57, %v6778_v61  ;;  %v4673_v5 = vrot.slane %v4659_v59, %v6778_v61  ;;  %v3630_v7 = vrot.slane %v3622_v18, %v6778_v61  ;;  %v3637_v8 = vrot.slane %v3623_v62, %v6778_v61  ;;  %v6943_v59 = vpop.permute.xlu1 %683 }
 0x183   : > { %v3646_v9 = vrot.slane %v3638_v63, %v6778_v61  ;;  %v3653_v15 = vrot.slane %v3639_v1, %v6778_v61  ;;  %3270 = vrot.lane.b32.xlu0 %v6686_v40, %s6509_s6  ;;  %v737_v18 = vrot.slane %v729_v14, %v6774_v54  ;;  %v744_v62 = vrot.slane %v730_v10, %v6774_v54 }
 0x184   : > { %v4674_v11 = vcombine.low %v4650_v13, %v4666_v4  ;;  %v4675_v12 = vcombine.high %v4650_v13, %v4666_v4  ;;  %v4676_v44 = vcombine.low %v4657_v58, %v4673_v5  ;;  %v4677_v46 = vcombine.high %v4657_v58, %v4673_v5  ;;  %3272 = vrot.lane.b32.xlu1 %v6694_v42, %s6509_s6  ;;  %v3291_v13 = vpop.permute.xlu0 %3290 }
 0x185   : > { %v4678_v47 = vcombine.low %v3630_v7, %v3637_v8  ;;  %v6160_v48 = vcombine.high %v3630_v7, %v3637_v8  ;;  %v4694_v2 = vcombine.low %v3646_v9, %v3653_v15  ;;  %v6161_v0 = vcombine.high %v3646_v9, %v3653_v15 }
 0x186   : > { %v6321_v49 = vpack.c.bf16 %v4674_v11, %v4674_v11  ;;  %v6337_v50 = vpack.c.bf16 %v4675_v12, %v4675_v12  ;;  %v6353_v51 = vpack.c.bf16 %v4676_v44, %v4676_v44  ;;  %v6369_v60 = vpack.c.bf16 %v4677_v46, %v4677_v46 }
 0x187   : > { %v4685_v53 = vrot.slane %v4678_v47, %v6774_v54  ;;  %v4693_v55 = vrot.slane %v6160_v48, %v6774_v54  ;;  %v4701_v56 = vrot.slane %v4694_v2, %v6774_v54  ;;  %v4709_v57 = vrot.slane %v6161_v0, %v6774_v54  ;;  %3318 = vrot.lane.b32.xlu0 %v6686_v40, %s6508_s5 }
 0x188   : > { %5820 = vst.msk [vmem:[%s6933_s14 + $0x8] sm:$0xf] %vm3161_vm1, %v6321_v49  ;;  %5836 = vst.msk [vmem:[%s6933_s14 + $0x48] sm:$0xf] %vm3161_vm1, %v6337_v50  ;;  %v745_v63 = vcombine.low %v6833_v52, %v6884_v45  ;;  %v746_v1 = vcombine.high %v6833_v52, %v6884_v45  ;;  %v797_v10 = vcombine.low %v6602_v16, %v6912_v3  ;;  %3320 = vrot.lane.b32.xlu1 %v6694_v42, %s6508_s5  ;;  %v6973_v50 = vpop.permute.xlu1 %3244 }
 0x189   : > { %5852 = vst.msk [vmem:[%s6933_s14 + $0x88] sm:$0xf] %vm3161_vm1, %v6353_v51  ;;  %5868 = vst.msk [vmem:[%s6933_s14 + $0xc8] sm:$0xf] %vm3161_vm1, %v6369_v60  ;;  %v4710_v58 = vcombine.low %v4685_v53, %v4693_v55  ;;  %v4711_v4 = vcombine.high %v4685_v53, %v4693_v55  ;;  %v4726_v5 = vcombine.low %v4701_v56, %v4709_v57 }
 0x18a   : > { %v4727_v7 = vcombine.high %v4701_v56, %v4709_v57  ;;  %v753_v8 = vrot.slane %v745_v63, %v6774_v54  ;;  %v760_v14 = vrot.slane %v746_v1, %v6774_v54  ;;  %v798_v9 = vcombine.high %v6602_v16, %v6912_v3  ;;  %v3339_v56 = vpop.permute.xlu0 %3338 }
 0x18b   : > { %v4718_v52 = vrot.slane %v4710_v58, %v6778_v61  ;;  %v4725_v45 = vrot.slane %v4711_v4, %v6778_v61  ;;  %v4734_v15 = vrot.slane %v4726_v5, %v6778_v61  ;;  %609 = vrot.lane.b32.xlu0 %v6668_v37, %s6509_s6 }
 0x18c   : > { %v4741_v11 = vrot.slane %v4727_v7, %v6778_v61  ;;  %v761_v12 = vcombine.low %v737_v18, %v753_v8  ;;  %v762_v44 = vcombine.high %v737_v18, %v753_v8  ;;  %v777_v46 = vcombine.low %v744_v62, %v760_v14  ;;  %611 = vrot.lane.b32.xlu1 %v6672_v39, %s6509_s6 }
 0x18d   : > { %v778_v47 = vcombine.high %v744_v62, %v760_v14  ;;  %v4742_v48 = vcombine.low %v4718_v52, %v4734_v15  ;;  %v4743_v2 = vcombine.high %v4718_v52, %v4734_v15  ;;  %v3386_v7 = vcombine.low %v6604_v17, %v3291_v13 }
 0x18e   : > { %v4744_v0 = vcombine.low %v4725_v45, %v4741_v11  ;;  %v4745_v49 = vcombine.high %v4725_v45, %v4741_v11  ;;  %v769_v51 = vrot.slane %v761_v12, %v6778_v61  ;;  %v776_v60 = vrot.slane %v762_v44, %v6778_v61 }
 0x18f   : > { %v785_v53 = vrot.slane %v777_v46, %v6778_v61  ;;  %v792_v55 = vrot.slane %v778_v47, %v6778_v61  ;;  %v6322_v57 = vpack.c.bf16 %v4742_v48, %v4742_v48  ;;  %v6338_v18 = vpack.c.bf16 %v4743_v2, %v4743_v2  ;;  %657 = vrot.lane.b32.xlu0 %v6668_v37, %s6508_s5  ;;  %v3293_v46 = vpop.permute.xlu1 %3292 }
 0x190   : > { %v6354_v62 = vpack.c.bf16 %v4744_v0, %v4744_v0  ;;  %v6370_v63 = vpack.c.bf16 %v4745_v49, %v4745_v49  ;;  %v1817_v1 = vcombine.low %v769_v51, %v776_v60  ;;  %v6058_v58 = vcombine.high %v769_v51, %v776_v60  ;;  %659 = vrot.lane.b32.xlu1 %v6672_v39, %s6508_s5 }
 0x191   : > { %v1833_v4 = vcombine.low %v785_v53, %v792_v55  ;;  %v6059_v5 = vcombine.high %v785_v53, %v792_v55  ;;  %5821 = vst.msk [vmem:[%s6933_s14 + $0xc] sm:$0xf] %vm3161_vm1, %v6322_v57  ;;  %5837 = vst.msk [vmem:[%s6933_s14 + $0x4c] sm:$0xf] %vm3161_vm1, %v6338_v18  ;;  %v3387_v8 = vcombine.high %v6604_v17, %v3291_v13 }
 0x192   : > { %5853 = vst.msk [vmem:[%s6933_s14 + $0x8c] sm:$0xf] %vm3161_vm1, %v6354_v62  ;;  %5869 = vst.msk [vmem:[%s6933_s14 + $0xcc] sm:$0xf] %vm3161_vm1, %v6370_v63  ;;  %v3402_v14 = vcombine.low %v6920_v6, %v3339_v56  ;;  %v3403_v52 = vcombine.high %v6920_v6, %v3339_v56  ;;  %v1824_v45 = vrot.slane %v1817_v1, %v6774_v54 }
 0x193   : > { %v1832_v15 = vrot.slane %v6058_v58, %v6774_v54  ;;  %v1840_v11 = vrot.slane %v1833_v4, %v6774_v54  ;;  %v1848_v12 = vrot.slane %v6059_v5, %v6774_v54  ;;  %v3394_v17 = vrot.slane %v3386_v7, %v6774_v54  ;;  %705 = vrot.lane.b32.xlu0 %v6668_v37, %s6510_s7 }
 0x194   : > { %v3401_v13 = vrot.slane %v3387_v8, %v6774_v54  ;;  %v3410_v6 = vrot.slane %v3402_v14, %v6774_v54  ;;  %v3417_v44 = vrot.slane %v3403_v52, %v6774_v54  ;;  %707 = vrot.lane.b32.xlu1 %v6672_v39, %s6510_s7  ;;  %v7019_v14 = vpop.permute.xlu0 %587 }
 0x195   : > { %v1849_v47 = vcombine.low %v1824_v45, %v1832_v15  ;;  %v1850_v48 = vcombine.high %v1824_v45, %v1832_v15  ;;  %v1865_v2 = vcombine.low %v1840_v11, %v1848_v12  ;;  %v1866_v0 = vcombine.high %v1840_v11, %v1848_v12  ;;  %v3341_v12 = vpop.permute.xlu1 %3340 }
 0x196   : > { %v3418_v49 = vcombine.low %v3394_v17, %v3410_v6  ;;  %v3419_v51 = vcombine.high %v3394_v17, %v3410_v6  ;;  %v3434_v60 = vcombine.low %v3401_v13, %v3417_v44  ;;  %v3435_v53 = vcombine.high %v3401_v13, %v3417_v44 }
 0x197   : > { %v1857_v55 = vrot.slane %v1849_v47, %v6778_v61  ;;  %v1864_v56 = vrot.slane %v1850_v48, %v6778_v61  ;;  %v1873_v57 = vrot.slane %v1865_v2, %v6778_v61  ;;  %v1880_v18 = vrot.slane %v1866_v0, %v6778_v61  ;;  %3266 = vrot.lane.b32.xlu0 %v6692_v41, %s6509_s6 }
 0x198   : > { %v3426_v62 = vrot.slane %v3418_v49, %v6778_v61  ;;  %v3433_v63 = vrot.slane %v3419_v51, %v6778_v61  ;;  %v3442_v1 = vrot.slane %v3434_v60, %v6778_v61  ;;  %v3449_v58 = vrot.slane %v3435_v53, %v6778_v61  ;;  %3268 = vrot.lane.b32.xlu1 %v6696_v43, %s6509_s6 }
 0x199   : > { %v1881_v4 = vcombine.low %v1857_v55, %v1873_v57  ;;  %v1882_v5 = vcombine.high %v1857_v55, %v1873_v57  ;;  %v1883_v7 = vcombine.low %v1864_v56, %v1880_v18  ;;  %v1884_v8 = vcombine.high %v1864_v56, %v1880_v18 }
 0x19a   : > { %v4474_v52 = vcombine.low %v3426_v62, %v3433_v63  ;;  %v6154_v45 = vcombine.high %v3426_v62, %v3433_v63  ;;  %v4490_v15 = vcombine.low %v3442_v1, %v3449_v58  ;;  %v6155_v11 = vcombine.high %v3442_v1, %v3449_v58 }
 0x19b   : > { %v6255_v17 = vpack.c.bf16 %v1881_v4, %v1881_v4  ;;  %v6271_v13 = vpack.c.bf16 %v1882_v5, %v1882_v5  ;;  %v6287_v6 = vpack.c.bf16 %v1883_v7, %v1883_v7  ;;  %v6303_v44 = vpack.c.bf16 %v1884_v8, %v1884_v8  ;;  %3314 = vrot.lane.b32.xlu0 %v6692_v41, %s6508_s5 }
 0x19c   : > { %v4481_v47 = vrot.slane %v4474_v52, %v6774_v54  ;;  %v4489_v48 = vrot.slane %v6154_v45, %v6774_v54  ;;  %v4497_v2 = vrot.slane %v4490_v15, %v6774_v54  ;;  %v4505_v0 = vrot.slane %v6155_v11, %v6774_v54  ;;  %3316 = vrot.lane.b32.xlu1 %v6696_v43, %s6508_s5 }
 0x19d   : > { %3162 = vst.msk [vmem:[%s6840_s11] sm:$0xf] %vm3161_vm1, %v6255_v17  ;;  %3178 = vst.msk [vmem:[%s6840_s11 + $0x40] sm:$0xf] %vm3161_vm1, %v6271_v13  ;;  %v3454_v49 = vcombine.low %v6612_v19, %v3293_v46  ;;  %v3455_v51 = vcombine.high %v6612_v19, %v3293_v46  ;;  %v3470_v60 = vcombine.low %v6973_v50, %v3341_v12  ;;  %v7047_v19 = vpop.permute.xlu0 %597 }
 0x19e   : > { %3194 = vst.msk [vmem:[%s6840_s11 + $0x80] sm:$0xf] %vm3161_vm1, %v6287_v6  ;;  %3210 = vst.msk [vmem:[%s6840_s11 + $0xc0] sm:$0xf] %vm3161_vm1, %v6303_v44  ;;  %v3471_v53 = vcombine.high %v6973_v50, %v3341_v12  ;;  %v4506_v55 = vcombine.low %v4481_v47, %v4489_v48  ;;  %v4507_v56 = vcombine.high %v4481_v47, %v4489_v48 }
 0x19f   : > { %v4522_v57 = vcombine.low %v4497_v2, %v4505_v0  ;;  %v4523_v18 = vcombine.high %v4497_v2, %v4505_v0  ;;  %v3462_v62 = vrot.slane %v3454_v49, %v6774_v54  ;;  %v3469_v63 = vrot.slane %v3455_v51, %v6774_v54  ;;  %3362 = vrot.lane.b32.xlu0 %v6692_v41, %s6510_s7 }
 0x1a0   : > { %v3478_v1 = vrot.slane %v3470_v60, %v6774_v54  ;;  %v3485_v58 = vrot.slane %v3471_v53, %v6774_v54  ;;  %v4514_v50 = vrot.slane %v4506_v55, %v6778_v61  ;;  %v4521_v46 = vrot.slane %v4507_v56, %v6778_v61  ;;  %3364 = vrot.lane.b32.xlu1 %v6696_v43, %s6510_s7 }
 0x1a1   : > { %v4530_v4 = vrot.slane %v4522_v57, %v6778_v61  ;;  %v4537_v5 = vrot.slane %v4523_v18, %v6778_v61  ;;  %v646_v56 = vpop.permute.xlu0 %645  ;;  %v805_v57 = vrot.slane %v797_v10, %v6774_v54  ;;  %v812_v18 = vrot.slane %v798_v9, %v6774_v54 }
 0x1a2   : > { %v3486_v7 = vcombine.low %v3462_v62, %v3478_v1  ;;  %v3487_v8 = vcombine.high %v3462_v62, %v3478_v1  ;;  %v3502_v52 = vcombine.low %v3469_v63, %v3485_v58  ;;  %v3503_v45 = vcombine.high %v3469_v63, %v3485_v58 }
 0x1a3   : > { %v4538_v15 = vcombine.low %v4514_v50, %v4530_v4  ;;  %v4539_v11 = vcombine.high %v4514_v50, %v4530_v4  ;;  %v4540_v12 = vcombine.low %v4521_v46, %v4537_v5  ;;  %v4541_v17 = vcombine.high %v4521_v46, %v4537_v5  ;;  %3366 = vrot.lane.b32.xlu0 %v6686_v40, %s6510_s7 }
 0x1a4   : > { %v3494_v13 = vrot.slane %v3486_v7, %v6778_v61  ;;  %v3501_v6 = vrot.slane %v3487_v8, %v6778_v61  ;;  %v3510_v44 = vrot.slane %v3502_v52, %v6778_v61  ;;  %v3517_v47 = vrot.slane %v3503_v45, %v6778_v61  ;;  %3368 = vrot.lane.b32.xlu1 %v6694_v42, %s6510_s7 }
 0x1a5   : > { %v6319_v48 = vpack.c.bf16 %v4538_v15, %v4538_v15  ;;  %v6335_v2 = vpack.c.bf16 %v4539_v11, %v4539_v11  ;;  %v6351_v0 = vpack.c.bf16 %v4540_v12, %v4540_v12  ;;  %v6367_v49 = vpack.c.bf16 %v4541_v17, %v4541_v17  ;;  %v7095_v15 = vpop.permute.xlu1 %599 }
 0x1a6   : > { %v4542_v51 = vcombine.low %v3494_v13, %v3501_v6  ;;  %v6156_v60 = vcombine.high %v3494_v13, %v3501_v6  ;;  %v4558_v53 = vcombine.low %v3510_v44, %v3517_v47  ;;  %v6157_v55 = vcombine.high %v3510_v44, %v3517_v47 }
 0x1a7   : > { %5818 = vst.msk [vmem:[%s6933_s14] sm:$0xf] %vm3161_vm1, %v6319_v48  ;;  %5834 = vst.msk [vmem:[%s6933_s14 + $0x40] sm:$0xf] %vm3161_vm1, %v6335_v2  ;;  %v813_v62 = vcombine.low %v7019_v14, %v6943_v59  ;;  %v814_v63 = vcombine.high %v7019_v14, %v6943_v59  ;;  %v1137_v59 = vcombine.low %v6614_v20, %v646_v56 }
 0x1a8   : > { %5850 = vst.msk [vmem:[%s6933_s14 + $0x80] sm:$0xf] %vm3161_vm1, %v6351_v0  ;;  %5866 = vst.msk [vmem:[%s6933_s14 + $0xc0] sm:$0xf] %vm3161_vm1, %v6367_v49  ;;  %v4549_v16 = vrot.slane %v4542_v51, %v6774_v54  ;;  %v4557_v3 = vrot.slane %v6156_v60, %v6774_v54  ;;  %v4565_v10 = vrot.slane %v4558_v53, %v6774_v54  ;;  %v694_v51 = vpop.permute.xlu0 %693 }
 0x1a9   : > { %v4573_v9 = vrot.slane %v6157_v55, %v6774_v54  ;;  %v821_v1 = vrot.slane %v813_v62, %v6774_v54  ;;  %v828_v58 = vrot.slane %v814_v63, %v6774_v54  ;;  %v1138_v14 = vcombine.high %v6614_v20, %v646_v56 }
 0x1aa   : > { %v4574_v50 = vcombine.low %v4549_v16, %v4557_v3  ;;  %v4575_v46 = vcombine.high %v4549_v16, %v4557_v3 }
 0x1ab   : > { %v4590_v4 = vcombine.low %v4565_v10, %v4573_v9  ;;  %v4591_v5 = vcombine.high %v4565_v10, %v4573_v9  ;;  %v829_v7 = vcombine.low %v805_v57, %v821_v1  ;;  %v830_v8 = vcombine.high %v805_v57, %v821_v1  ;;  %v648_v1 = vpop.permute.xlu1 %647 }
 0x1ac   : > { %v845_v52 = vcombine.low %v812_v18, %v828_v58  ;;  %v846_v45 = vcombine.high %v812_v18, %v828_v58  ;;  %v4582_v11 = vrot.slane %v4574_v50, %v6778_v61  ;;  %v4589_v12 = vrot.slane %v4575_v46, %v6778_v61 }
 0x1ad   : > { %v4598_v17 = vrot.slane %v4590_v4, %v6778_v61  ;;  %v4605_v13 = vrot.slane %v4591_v5, %v6778_v61  ;;  %v837_v20 = vrot.slane %v829_v7, %v6778_v61  ;;  %v844_v6 = vrot.slane %v830_v8, %v6778_v61 }
 0x1ae   : > { %v853_v44 = vrot.slane %v845_v52, %v6778_v61  ;;  %v860_v47 = vrot.slane %v846_v45, %v6778_v61  ;;  %v1145_v58 = vrot.slane %v1137_v59, %v6774_v54  ;;  %v1152_v50 = vrot.slane %v1138_v14, %v6774_v54 }
 0x1af   : > { %v4606_v48 = vcombine.low %v4582_v11, %v4598_v17  ;;  %v4607_v2 = vcombine.high %v4582_v11, %v4598_v17  ;;  %v4608_v0 = vcombine.low %v4589_v12, %v4605_v13  ;;  %v4609_v49 = vcombine.high %v4589_v12, %v4605_v13  ;;  %v7125_v13 = vpop.permute.xlu0 %3254 }
 0x1b0   : > { %v1885_v60 = vcombine.low %v837_v20, %v844_v6  ;;  %v6060_v53 = vcombine.high %v837_v20, %v844_v6  ;;  %v1901_v55 = vcombine.low %v853_v44, %v860_v47  ;;  %v6061_v56 = vcombine.high %v853_v44, %v860_v47 }
 0x1b1   : > { %v6320_v57 = vpack.c.bf16 %v4606_v48, %v4606_v48  ;;  %v6336_v18 = vpack.c.bf16 %v4607_v2, %v4607_v2  ;;  %v6352_v62 = vpack.c.bf16 %v4608_v0, %v4608_v0  ;;  %v6368_v63 = vpack.c.bf16 %v4609_v49, %v4609_v49 }
 0x1b2   : > { %v1892_v16 = vrot.slane %v1885_v60, %v6774_v54  ;;  %v1900_v3 = vrot.slane %v6060_v53, %v6774_v54  ;;  %v1908_v10 = vrot.slane %v1901_v55, %v6774_v54  ;;  %v1916_v9 = vrot.slane %v6061_v56, %v6774_v54  ;;  %v696_v56 = vpop.permute.xlu1 %695 }
 0x1b3   : > { %5819 = vst.msk [vmem:[%s6933_s14 + $0x4] sm:$0xf] %vm3161_vm1, %v6320_v57  ;;  %5835 = vst.msk [vmem:[%s6933_s14 + $0x44] sm:$0xf] %vm3161_vm1, %v6336_v18  ;;  %v1153_v46 = vcombine.low %v7047_v19, %v694_v51  ;;  %v1154_v4 = vcombine.high %v7047_v19, %v694_v51  ;;  %v1205_v45 = vcombine.low %v6622_v22, %v648_v1 }
 0x1b4   : > { %5851 = vst.msk [vmem:[%s6933_s14 + $0x84] sm:$0xf] %vm3161_vm1, %v6352_v62  ;;  %5867 = vst.msk [vmem:[%s6933_s14 + $0xc4] sm:$0xf] %vm3161_vm1, %v6368_v63  ;;  %v1917_v5 = vcombine.low %v1892_v16, %v1900_v3  ;;  %v1918_v7 = vcombine.high %v1892_v16, %v1900_v3  ;;  %v1933_v8 = vcombine.low %v1908_v10, %v1916_v9 }
 0x1b5   : > { %v1934_v52 = vcombine.high %v1908_v10, %v1916_v9  ;;  %v1206_v11 = vcombine.high %v6622_v22, %v648_v1  ;;  %v1161_v12 = vrot.slane %v1153_v46, %v6774_v54  ;;  %v1168_v17 = vrot.slane %v1154_v4, %v6774_v54  ;;  %v3303_v1 = vpop.permute.xlu0 %3302 }
 0x1b6   : > { %v1925_v59 = vrot.slane %v1917_v5, %v6778_v61  ;;  %v1932_v14 = vrot.slane %v1918_v7, %v6778_v61  ;;  %v1941_v19 = vrot.slane %v1933_v8, %v6778_v61  ;;  %v1221_v46 = vcombine.low %v7095_v15, %v696_v56 }
 0x1b7   : > { %v1948_v20 = vrot.slane %v1934_v52, %v6778_v61  ;;  %v1169_v6 = vcombine.low %v1145_v58, %v1161_v12  ;;  %v1170_v44 = vcombine.high %v1145_v58, %v1161_v12  ;;  %v1185_v47 = vcombine.low %v1152_v50, %v1168_v17 }
 0x1b8   : > { %v1186_v48 = vcombine.high %v1152_v50, %v1168_v17  ;;  %v1949_v2 = vcombine.low %v1925_v59, %v1941_v19  ;;  %v1950_v22 = vcombine.high %v1925_v59, %v1941_v19  ;;  %v1213_v58 = vrot.slane %v1205_v45, %v6774_v54 }
 0x1b9   : > { %v1951_v0 = vcombine.low %v1932_v14, %v1948_v20  ;;  %v1952_v49 = vcombine.high %v1932_v14, %v1948_v20  ;;  %v1177_v51 = vrot.slane %v1169_v6, %v6778_v61  ;;  %v1184_v60 = vrot.slane %v1170_v44, %v6778_v61 }
 0x1ba   : > { %v1193_v53 = vrot.slane %v1185_v47, %v6778_v61  ;;  %v1200_v55 = vrot.slane %v1186_v48, %v6778_v61  ;;  %v6256_v57 = vpack.c.bf16 %v1949_v2, %v1949_v2  ;;  %v6272_v18 = vpack.c.bf16 %v1950_v22, %v1950_v22  ;;  %v7155_v48 = vpop.permute.xlu1 %3256 }
 0x1bb   : > { %v6288_v62 = vpack.c.bf16 %v1951_v0, %v1951_v0  ;;  %v6304_v63 = vpack.c.bf16 %v1952_v49, %v1952_v49  ;;  %v2225_v16 = vcombine.low %v1177_v51, %v1184_v60  ;;  %v6070_v3 = vcombine.high %v1177_v51, %v1184_v60 }
 0x1bc   : > { %v2241_v10 = vcombine.low %v1193_v53, %v1200_v55  ;;  %v6071_v9 = vcombine.high %v1193_v53, %v1200_v55  ;;  %3163 = vst.msk [vmem:[%s6840_s11 + $0x4] sm:$0xf] %vm3161_vm1, %v6256_v57  ;;  %3179 = vst.msk [vmem:[%s6840_s11 + $0x44] sm:$0xf] %vm3161_vm1, %v6272_v18  ;;  %v1220_v50 = vrot.slane %v1206_v11, %v6774_v54 }
 0x1bd   : > { %3195 = vst.msk [vmem:[%s6840_s11 + $0x84] sm:$0xf] %vm3161_vm1, %v6288_v62  ;;  %3211 = vst.msk [vmem:[%s6840_s11 + $0xc4] sm:$0xf] %vm3161_vm1, %v6304_v63  ;;  %v1222_v4 = vcombine.high %v7095_v15, %v696_v56  ;;  %v2232_v5 = vrot.slane %v2225_v16, %v6774_v54  ;;  %v2240_v7 = vrot.slane %v6070_v3, %v6774_v54  ;;  %v3351_v62 = vpop.permute.xlu0 %3350 }
 0x1be   : > { %v2248_v8 = vrot.slane %v2241_v10, %v6774_v54  ;;  %v2256_v52 = vrot.slane %v6071_v9, %v6774_v54  ;;  %v1229_v12 = vrot.slane %v1221_v46, %v6774_v54  ;;  %v3794_v45 = vcombine.low %v6624_v23, %v3303_v1 }
 0x1bf   : > { %v1236_v17 = vrot.slane %v1222_v4, %v6774_v54  ;;  %v3795_v11 = vcombine.high %v6624_v23, %v3303_v1  ;;  %v2257_v59 = vcombine.low %v2232_v5, %v2240_v7  ;;  %v2258_v14 = vcombine.high %v2232_v5, %v2240_v7 }
 0x1c0   : > { %v2273_v19 = vcombine.low %v2248_v8, %v2256_v52  ;;  %v2274_v15 = vcombine.high %v2248_v8, %v2256_v52  ;;  %v1237_v20 = vcombine.low %v1213_v58, %v1229_v12  ;;  %v1238_v6 = vcombine.high %v1213_v58, %v1229_v12  ;;  %v3305_v8 = vpop.permute.xlu1 %3304 }
 0x1c1   : > { %v1253_v44 = vcombine.low %v1220_v50, %v1236_v17  ;;  %v1254_v47 = vcombine.high %v1220_v50, %v1236_v17  ;;  %v2265_v2 = vrot.slane %v2257_v59, %v6778_v61  ;;  %v2272_v22 = vrot.slane %v2258_v14, %v6778_v61 }
 0x1c2   : > { %v2281_v0 = vrot.slane %v2273_v19, %v6778_v61  ;;  %v2288_v49 = vrot.slane %v2274_v15, %v6778_v61  ;;  %v1245_v23 = vrot.slane %v1237_v20, %v6778_v61  ;;  %v1252_v51 = vrot.slane %v1238_v6, %v6778_v61 }
 0x1c3   : > { %v1261_v60 = vrot.slane %v1253_v44, %v6778_v61  ;;  %v1268_v53 = vrot.slane %v1254_v47, %v6778_v61  ;;  %v3802_v52 = vrot.slane %v3794_v45, %v6774_v54  ;;  %v3809_v12 = vrot.slane %v3795_v11, %v6774_v54 }
 0x1c4   : > { %v2289_v55 = vcombine.low %v2265_v2, %v2281_v0  ;;  %v2290_v56 = vcombine.high %v2265_v2, %v2281_v0  ;;  %v2291_v57 = vcombine.low %v2272_v22, %v2288_v49  ;;  %v2292_v18 = vcombine.high %v2272_v22, %v2288_v49  ;;  %v7185_v22 = vpop.permute.xlu0 %593 }
 0x1c5   : > { %v2293_v63 = vcombine.low %v1245_v23, %v1252_v51  ;;  %v6072_v16 = vcombine.high %v1245_v23, %v1252_v51  ;;  %v2309_v3 = vcombine.low %v1261_v60, %v1268_v53  ;;  %v6073_v10 = vcombine.high %v1261_v60, %v1268_v53 }
 0x1c6   : > { %v6261_v9 = vpack.c.bf16 %v2289_v55, %v2289_v55  ;;  %v6277_v1 = vpack.c.bf16 %v2290_v56, %v2290_v56  ;;  %v6293_v58 = vpack.c.bf16 %v2291_v57, %v2291_v57  ;;  %v6309_v50 = vpack.c.bf16 %v2292_v18, %v2292_v18 }
 0x1c7   : > { %v2300_v46 = vrot.slane %v2293_v63, %v6774_v54  ;;  %v2308_v4 = vrot.slane %v6072_v16, %v6774_v54  ;;  %v2316_v5 = vrot.slane %v2309_v3, %v6774_v54  ;;  %v2324_v7 = vrot.slane %v6073_v10, %v6774_v54  ;;  %v3353_v16 = vpop.permute.xlu1 %3352 }
 0x1c8   : > { %3168 = vst.msk [vmem:[%s6840_s11 + $0x18] sm:$0xf] %vm3161_vm1, %v6261_v9  ;;  %3184 = vst.msk [vmem:[%s6840_s11 + $0x58] sm:$0xf] %vm3161_vm1, %v6277_v1  ;;  %v3810_v17 = vcombine.low %v7125_v13, %v3351_v62  ;;  %v3811_v59 = vcombine.high %v7125_v13, %v3351_v62  ;;  %v3862_v6 = vcombine.low %v6630_v26, %v3305_v8 }
 0x1c9   : > { %3200 = vst.msk [vmem:[%s6840_s11 + $0x98] sm:$0xf] %vm3161_vm1, %v6293_v58  ;;  %3216 = vst.msk [vmem:[%s6840_s11 + $0xd8] sm:$0xf] %vm3161_vm1, %v6309_v50  ;;  %v2325_v14 = vcombine.low %v2300_v46, %v2308_v4  ;;  %v2326_v19 = vcombine.high %v2300_v46, %v2308_v4  ;;  %v2341_v15 = vcombine.low %v2316_v5, %v2324_v7 }
 0x1ca   : > { %v2342_v20 = vcombine.high %v2316_v5, %v2324_v7  ;;  %v3863_v44 = vcombine.high %v6630_v26, %v3305_v8  ;;  %v3818_v47 = vrot.slane %v3810_v17, %v6774_v54  ;;  %v3825_v2 = vrot.slane %v3811_v59, %v6774_v54  ;;  %v642_v5 = vpop.permute.xlu0 %641 }
 0x1cb   : > { %v2333_v45 = vrot.slane %v2325_v14, %v6778_v61  ;;  %v2340_v11 = vrot.slane %v2326_v19, %v6778_v61  ;;  %v2349_v13 = vrot.slane %v2341_v15, %v6778_v61  ;;  %v3870_v7 = vrot.slane %v3862_v6, %v6774_v54 }
 0x1cc   : > { %v2356_v0 = vrot.slane %v2342_v20, %v6778_v61  ;;  %v3826_v49 = vcombine.low %v3802_v52, %v3818_v47  ;;  %v3827_v23 = vcombine.high %v3802_v52, %v3818_v47  ;;  %v3842_v51 = vcombine.low %v3809_v12, %v3825_v2 }
 0x1cd   : > { %v3843_v60 = vcombine.high %v3809_v12, %v3825_v2  ;;  %v2357_v53 = vcombine.low %v2333_v45, %v2349_v13  ;;  %v2358_v26 = vcombine.high %v2333_v45, %v2349_v13  ;;  %v3877_v8 = vrot.slane %v3863_v44, %v6774_v54 }
 0x1ce   : > { %v2359_v55 = vcombine.low %v2340_v11, %v2356_v0  ;;  %v2360_v56 = vcombine.high %v2340_v11, %v2356_v0  ;;  %v3834_v57 = vrot.slane %v3826_v49, %v6778_v61  ;;  %v3841_v18 = vrot.slane %v3827_v23, %v6778_v61  ;;  %v7215_v23 = vpop.permute.xlu1 %595 }
 0x1cf   : > { %v3850_v62 = vrot.slane %v3842_v51, %v6778_v61  ;;  %v3857_v63 = vrot.slane %v3843_v60, %v6778_v61  ;;  %v6262_v3 = vpack.c.bf16 %v2357_v53, %v2357_v53  ;;  %v6278_v10 = vpack.c.bf16 %v2358_v26, %v2358_v26 }
 0x1d0   : > { %v6294_v9 = vpack.c.bf16 %v2359_v55, %v2359_v55  ;;  %v6310_v1 = vpack.c.bf16 %v2360_v56, %v2360_v56  ;;  %v4882_v58 = vcombine.low %v3834_v57, %v3841_v18  ;;  %v6166_v50 = vcombine.high %v3834_v57, %v3841_v18 }
 0x1d1   : > { %v4898_v46 = vcombine.low %v3850_v62, %v3857_v63  ;;  %v6167_v4 = vcombine.high %v3850_v62, %v3857_v63  ;;  %3169 = vst.msk [vmem:[%s6840_s11 + $0x1c] sm:$0xf] %vm3161_vm1, %v6262_v3  ;;  %3185 = vst.msk [vmem:[%s6840_s11 + $0x5c] sm:$0xf] %vm3161_vm1, %v6278_v10  ;;  %v3878_v52 = vcombine.low %v7155_v48, %v3353_v16  ;;  %v690_v3 = vpop.permute.xlu0 %689 }
 0x1d2   : > { %3201 = vst.msk [vmem:[%s6840_s11 + $0x9c] sm:$0xf] %vm3161_vm1, %v6294_v9  ;;  %3217 = vst.msk [vmem:[%s6840_s11 + $0xdc] sm:$0xf] %vm3161_vm1, %v6310_v1  ;;  %v3879_v12 = vcombine.high %v7155_v48, %v3353_v16  ;;  %v4889_v17 = vrot.slane %v4882_v58, %v6774_v54  ;;  %v4897_v59 = vrot.slane %v6166_v50, %v6774_v54 }
 0x1d3   : > { %v4905_v14 = vrot.slane %v4898_v46, %v6774_v54  ;;  %v4913_v19 = vrot.slane %v6167_v4, %v6774_v54  ;;  %v3886_v15 = vrot.slane %v3878_v52, %v6774_v54  ;;  %v1001_v6 = vcombine.low %v6620_v21, %v642_v5 }
 0x1d4   : > { %v3893_v20 = vrot.slane %v3879_v12, %v6774_v54  ;;  %v1002_v44 = vcombine.high %v6620_v21, %v642_v5  ;;  %v4914_v47 = vcombine.low %v4889_v17, %v4897_v59  ;;  %v4915_v2 = vcombine.high %v4889_v17, %v4897_v59  ;;  %v644_v17 = vpop.permute.xlu1 %643 }
 0x1d5   : > { %v4930_v45 = vcombine.low %v4905_v14, %v4913_v19  ;;  %v4931_v48 = vcombine.high %v4905_v14, %v4913_v19  ;;  %v3894_v11 = vcombine.low %v3870_v7, %v3886_v15  ;;  %v3895_v13 = vcombine.high %v3870_v7, %v3886_v15 }
 0x1d6   : > { %v3910_v0 = vcombine.low %v3877_v8, %v3893_v20  ;;  %v3911_v49 = vcombine.high %v3877_v8, %v3893_v20  ;;  %v4922_v51 = vrot.slane %v4914_v47, %v6778_v61  ;;  %v4929_v60 = vrot.slane %v4915_v2, %v6778_v61 }
 0x1d7   : > { %v4938_v53 = vrot.slane %v4930_v45, %v6778_v61  ;;  %v4945_v26 = vrot.slane %v4931_v48, %v6778_v61  ;;  %v3902_v21 = vrot.slane %v3894_v11, %v6778_v61  ;;  %v3909_v55 = vrot.slane %v3895_v13, %v6778_v61 }
 0x1d8   : > { %v3918_v56 = vrot.slane %v3910_v0, %v6778_v61  ;;  %v3925_v57 = vrot.slane %v3911_v49, %v6778_v61  ;;  %v1009_v59 = vrot.slane %v1001_v6, %v6774_v54  ;;  %v1016_v14 = vrot.slane %v1002_v44, %v6774_v54  ;;  %v7245_v49 = vpop.permute.xlu0 %3250 }
 0x1d9   : > { %v4946_v18 = vcombine.low %v4922_v51, %v4938_v53  ;;  %v4947_v62 = vcombine.high %v4922_v51, %v4938_v53  ;;  %v4948_v63 = vcombine.low %v4929_v60, %v4945_v26  ;;  %v4949_v16 = vcombine.high %v4929_v60, %v4945_v26 }
 0x1da   : > { %v4950_v10 = vcombine.low %v3902_v21, %v3909_v55  ;;  %v6168_v9 = vcombine.high %v3902_v21, %v3909_v55  ;;  %v4966_v1 = vcombine.low %v3918_v56, %v3925_v57  ;;  %v6169_v58 = vcombine.high %v3918_v56, %v3925_v57 }
 0x1db   : > { %v6325_v50 = vpack.c.bf16 %v4946_v18, %v4946_v18  ;;  %v6341_v46 = vpack.c.bf16 %v4947_v62, %v4947_v62  ;;  %v6357_v4 = vpack.c.bf16 %v4948_v63, %v4948_v63  ;;  %v6373_v5 = vpack.c.bf16 %v4949_v16, %v4949_v16 }
 0x1dc   : > { %v4957_v7 = vrot.slane %v4950_v10, %v6774_v54  ;;  %v4965_v8 = vrot.slane %v6168_v9, %v6774_v54  ;;  %v4973_v52 = vrot.slane %v4966_v1, %v6774_v54  ;;  %v4981_v12 = vrot.slane %v6169_v58, %v6774_v54 }
 0x1dd   : > { %5824 = vst.msk [vmem:[%s6933_s14 + $0x18] sm:$0xf] %vm3161_vm1, %v6325_v50  ;;  %5840 = vst.msk [vmem:[%s6933_s14 + $0x58] sm:$0xf] %vm3161_vm1, %v6341_v46  ;;  %v1017_v19 = vcombine.low %v7185_v22, %v690_v3  ;;  %v1018_v15 = vcombine.high %v7185_v22, %v690_v3  ;;  %v1069_v48 = vcombine.low %v6626_v24, %v644_v17  ;;  %v692_v3 = vpop.permute.xlu1 %691 }
 0x1de   : > { %5856 = vst.msk [vmem:[%s6933_s14 + $0x98] sm:$0xf] %vm3161_vm1, %v6357_v4  ;;  %5872 = vst.msk [vmem:[%s6933_s14 + $0xd8] sm:$0xf] %vm3161_vm1, %v6373_v5  ;;  %v4982_v20 = vcombine.low %v4957_v7, %v4965_v8  ;;  %v4983_v47 = vcombine.high %v4957_v7, %v4965_v8  ;;  %v4998_v2 = vcombine.low %v4973_v52, %v4981_v12  ;;  %v3299_v7 = vpop.permute.xlu0 %3298 }
 0x1df   : > { %v4999_v45 = vcombine.high %v4973_v52, %v4981_v12  ;;  %v1070_v11 = vcombine.high %v6626_v24, %v644_v17  ;;  %v1025_v13 = vrot.slane %v1017_v19, %v6774_v54  ;;  %v1032_v0 = vrot.slane %v1018_v15, %v6774_v54 }
 0x1e0   : > { %v4990_v6 = vrot.slane %v4982_v20, %v6778_v61  ;;  %v4997_v44 = vrot.slane %v4983_v47, %v6778_v61  ;;  %v5006_v22 = vrot.slane %v4998_v2, %v6778_v61  ;;  %v1077_v8 = vrot.slane %v1069_v48, %v6774_v54 }
 0x1e1   : > { %v5013_v51 = vrot.slane %v4999_v45, %v6778_v61  ;;  %v1033_v60 = vcombine.low %v1009_v59, %v1025_v13  ;;  %v1034_v53 = vcombine.high %v1009_v59, %v1025_v13  ;;  %v1049_v26 = vcombine.low %v1016_v14, %v1032_v0 }
 0x1e2   : > { %v1050_v21 = vcombine.high %v1016_v14, %v1032_v0  ;;  %v5014_v55 = vcombine.low %v4990_v6, %v5006_v22  ;;  %v5015_v24 = vcombine.high %v4990_v6, %v5006_v22  ;;  %v1084_v52 = vrot.slane %v1070_v11, %v6774_v54 }
 0x1e3   : > { %v5016_v56 = vcombine.low %v4997_v44, %v5013_v51  ;;  %v5017_v57 = vcombine.high %v4997_v44, %v5013_v51  ;;  %v1041_v18 = vrot.slane %v1033_v60, %v6778_v61  ;;  %v1048_v62 = vrot.slane %v1034_v53, %v6778_v61  ;;  %v7275_v51 = vpop.permute.xlu1 %3252 }
 0x1e4   : > { %v1057_v63 = vrot.slane %v1049_v26, %v6778_v61  ;;  %v1064_v16 = vrot.slane %v1050_v21, %v6778_v61  ;;  %v6326_v10 = vpack.c.bf16 %v5014_v55, %v5014_v55  ;;  %v6342_v9 = vpack.c.bf16 %v5015_v24, %v5015_v24  ;;  %v3347_v55 = vpop.permute.xlu0 %3346 }
 0x1e5   : > { %v6358_v1 = vpack.c.bf16 %v5016_v56, %v5016_v56  ;;  %v6374_v58 = vpack.c.bf16 %v5017_v57, %v5017_v57  ;;  %v2089_v50 = vcombine.low %v1041_v18, %v1048_v62  ;;  %v6066_v46 = vcombine.high %v1041_v18, %v1048_v62 }
 0x1e6   : > { %v2105_v4 = vcombine.low %v1057_v63, %v1064_v16  ;;  %v6067_v5 = vcombine.high %v1057_v63, %v1064_v16  ;;  %5825 = vst.msk [vmem:[%s6933_s14 + $0x1c] sm:$0xf] %vm3161_vm1, %v6326_v10  ;;  %5841 = vst.msk [vmem:[%s6933_s14 + $0x5c] sm:$0xf] %vm3161_vm1, %v6342_v9  ;;  %v1085_v12 = vcombine.low %v7215_v23, %v692_v3 }
 0x1e7   : > { %5857 = vst.msk [vmem:[%s6933_s14 + $0x9c] sm:$0xf] %vm3161_vm1, %v6358_v1  ;;  %5873 = vst.msk [vmem:[%s6933_s14 + $0xdc] sm:$0xf] %vm3161_vm1, %v6374_v58  ;;  %v1086_v17 = vcombine.high %v7215_v23, %v692_v3  ;;  %v2096_v59 = vrot.slane %v2089_v50, %v6774_v54  ;;  %v2104_v14 = vrot.slane %v6066_v46, %v6774_v54 }
 0x1e8   : > { %v2112_v19 = vrot.slane %v2105_v4, %v6774_v54  ;;  %v2120_v15 = vrot.slane %v6067_v5, %v6774_v54  ;;  %v1093_v20 = vrot.slane %v1085_v12, %v6774_v54  ;;  %v3658_v2 = vcombine.low %v6628_v25, %v3299_v7  ;;  %v3301_v12 = vpop.permute.xlu1 %3300 }
 0x1e9   : > { %v1100_v47 = vrot.slane %v1086_v17, %v6774_v54  ;;  %v3659_v45 = vcombine.high %v6628_v25, %v3299_v7  ;;  %v2121_v48 = vcombine.low %v2096_v59, %v2104_v14  ;;  %v2122_v11 = vcombine.high %v2096_v59, %v2104_v14 }
 0x1ea   : > { %v2137_v13 = vcombine.low %v2112_v19, %v2120_v15  ;;  %v2138_v23 = vcombine.high %v2112_v19, %v2120_v15  ;;  %v1101_v0 = vcombine.low %v1077_v8, %v1093_v20  ;;  %v1102_v6 = vcombine.high %v1077_v8, %v1093_v20  ;;  %v7301_v15 = vpop.permute.xlu0 %605 }
 0x1eb   : > { %v1117_v44 = vcombine.low %v1084_v52, %v1100_v47  ;;  %v1118_v22 = vcombine.high %v1084_v52, %v1100_v47  ;;  %v2129_v60 = vrot.slane %v2121_v48, %v6778_v61  ;;  %v2136_v53 = vrot.slane %v2122_v11, %v6778_v61 }
 0x1ec   : > { %v2145_v26 = vrot.slane %v2137_v13, %v6778_v61  ;;  %v2152_v21 = vrot.slane %v2138_v23, %v6778_v61  ;;  %v1109_v25 = vrot.slane %v1101_v0, %v6778_v61  ;;  %v1116_v24 = vrot.slane %v1102_v6, %v6778_v61 }
 0x1ed   : > { %v1125_v56 = vrot.slane %v1117_v44, %v6778_v61  ;;  %v1132_v57 = vrot.slane %v1118_v22, %v6778_v61  ;;  %v3666_v17 = vrot.slane %v3658_v2, %v6774_v54  ;;  %v3673_v59 = vrot.slane %v3659_v45, %v6774_v54 }
 0x1ee   : > { %v2153_v18 = vcombine.low %v2129_v60, %v2145_v26  ;;  %v2154_v62 = vcombine.high %v2129_v60, %v2145_v26  ;;  %v2155_v63 = vcombine.low %v2136_v53, %v2152_v21  ;;  %v2156_v16 = vcombine.high %v2136_v53, %v2152_v21 }
 0x1ef   : > { %v2157_v3 = vcombine.low %v1109_v25, %v1116_v24  ;;  %v6068_v10 = vcombine.high %v1109_v25, %v1116_v24  ;;  %v2173_v9 = vcombine.low %v1125_v56, %v1132_v57  ;;  %v6069_v1 = vcombine.high %v1125_v56, %v1132_v57 }
 0x1f0   : > { %v6259_v58 = vpack.c.bf16 %v2153_v18, %v2153_v18  ;;  %v6275_v50 = vpack.c.bf16 %v2154_v62, %v2154_v62  ;;  %v6291_v46 = vpack.c.bf16 %v2155_v63, %v2155_v63  ;;  %v6307_v4 = vpack.c.bf16 %v2156_v16, %v2156_v16  ;;  %v3349_v62 = vpop.permute.xlu1 %3348  ;;  %v7315_v63 = vpop.permute.xlu0 %653 }
 0x1f1   : > { %v2164_v5 = vrot.slane %v2157_v3, %v6774_v54  ;;  %v2172_v7 = vrot.slane %v6068_v10, %v6774_v54  ;;  %v2180_v8 = vrot.slane %v2173_v9, %v6774_v54  ;;  %v2188_v52 = vrot.slane %v6069_v1, %v6774_v54 }
 0x1f2   : > { %3166 = vst.msk [vmem:[%s6840_s11 + $0x10] sm:$0xf] %vm3161_vm1, %v6259_v58  ;;  %3182 = vst.msk [vmem:[%s6840_s11 + $0x50] sm:$0xf] %vm3161_vm1, %v6275_v50  ;;  %v3674_v14 = vcombine.low %v7245_v49, %v3347_v55  ;;  %v3675_v19 = vcombine.high %v7245_v49, %v3347_v55  ;;  %v3726_v13 = vcombine.low %v6636_v27, %v3301_v12 }
 0x1f3   : > { %3198 = vst.msk [vmem:[%s6840_s11 + $0x90] sm:$0xf] %vm3161_vm1, %v6291_v46  ;;  %3214 = vst.msk [vmem:[%s6840_s11 + $0xd0] sm:$0xf] %vm3161_vm1, %v6307_v4  ;;  %v2189_v20 = vcombine.low %v2164_v5, %v2172_v7  ;;  %v2190_v47 = vcombine.high %v2164_v5, %v2172_v7  ;;  %v2205_v48 = vcombine.low %v2180_v8, %v2188_v52 }
 0x1f4   : > { %v2206_v11 = vcombine.high %v2180_v8, %v2188_v52  ;;  %v3727_v23 = vcombine.high %v6636_v27, %v3301_v12  ;;  %v3682_v0 = vrot.slane %v3674_v14, %v6774_v54  ;;  %v3689_v2 = vrot.slane %v3675_v19, %v6774_v54 }
 0x1f5   : > { %v2197_v45 = vrot.slane %v2189_v20, %v6778_v61  ;;  %v2204_v6 = vrot.slane %v2190_v47, %v6778_v61  ;;  %v2213_v49 = vrot.slane %v2205_v48, %v6778_v61  ;;  %v3734_v4 = vrot.slane %v3726_v13, %v6774_v54 }
 0x1f6   : > { %v2220_v44 = vrot.slane %v2206_v11, %v6778_v61  ;;  %v3690_v22 = vcombine.low %v3666_v17, %v3682_v0  ;;  %v3691_v60 = vcombine.high %v3666_v17, %v3682_v0  ;;  %v3706_v53 = vcombine.low %v3673_v59, %v3689_v2  ;;  %v702_v0 = vpop.permute.xlu0 %701 }
 0x1f7   : > { %v3707_v26 = vcombine.high %v3673_v59, %v3689_v2  ;;  %v2221_v21 = vcombine.low %v2197_v45, %v2213_v49  ;;  %v2222_v55 = vcombine.high %v2197_v45, %v2213_v49  ;;  %v3741_v5 = vrot.slane %v3727_v23, %v6774_v54  ;;  %v7339_v23 = vpop.permute.xlu1 %607 }
 0x1f8   : > { %v2223_v25 = vcombine.low %v2204_v6, %v2220_v44  ;;  %v2224_v27 = vcombine.high %v2204_v6, %v2220_v44  ;;  %v3698_v24 = vrot.slane %v3690_v22, %v6778_v61  ;;  %v3705_v56 = vrot.slane %v3691_v60, %v6778_v61 }
 0x1f9   : > { %v3714_v57 = vrot.slane %v3706_v53, %v6778_v61  ;;  %v3721_v18 = vrot.slane %v3707_v26, %v6778_v61  ;;  %v6260_v16 = vpack.c.bf16 %v2221_v21, %v2221_v21  ;;  %v6276_v3 = vpack.c.bf16 %v2222_v55, %v2222_v55 }
 0x1fa   : > { %v6292_v10 = vpack.c.bf16 %v2223_v25, %v2223_v25  ;;  %v6308_v9 = vpack.c.bf16 %v2224_v27, %v2224_v27  ;;  %v4746_v1 = vcombine.low %v3698_v24, %v3705_v56  ;;  %v6162_v58 = vcombine.high %v3698_v24, %v3705_v56 }
 0x1fb   : > { %v4762_v50 = vcombine.low %v3714_v57, %v3721_v18  ;;  %v6163_v46 = vcombine.high %v3714_v57, %v3721_v18  ;;  %3167 = vst.msk [vmem:[%s6840_s11 + $0x14] sm:$0xf] %vm3161_vm1, %v6260_v16  ;;  %3183 = vst.msk [vmem:[%s6840_s11 + $0x54] sm:$0xf] %vm3161_vm1, %v6276_v3  ;;  %v3742_v7 = vcombine.low %v7275_v51, %v3349_v62 }
 0x1fc   : > { %3199 = vst.msk [vmem:[%s6840_s11 + $0x94] sm:$0xf] %vm3161_vm1, %v6292_v10  ;;  %3215 = vst.msk [vmem:[%s6840_s11 + $0xd4] sm:$0xf] %vm3161_vm1, %v6308_v9  ;;  %v3743_v8 = vcombine.high %v7275_v51, %v3349_v62  ;;  %v4753_v52 = vrot.slane %v4746_v1, %v6774_v54  ;;  %v4761_v12 = vrot.slane %v6162_v58, %v6774_v54  ;;  %v656_v1 = vpop.permute.xlu1 %655  ;;  %v7349_v58 = vpop.permute.xlu0 %3262 }
 0x1fd   : > { %v4769_v17 = vrot.slane %v4762_v50, %v6774_v54  ;;  %v4777_v59 = vrot.slane %v6163_v46, %v6774_v54  ;;  %v3750_v14 = vrot.slane %v3742_v7, %v6774_v54  ;;  %v1409_v20 = vcombine.low %v6638_v28, %v7315_v63 }
 0x1fe   : > { %v3757_v19 = vrot.slane %v3743_v8, %v6774_v54  ;;  %v1410_v47 = vcombine.high %v6638_v28, %v7315_v63  ;;  %v4778_v48 = vcombine.low %v4753_v52, %v4761_v12  ;;  %v4779_v51 = vcombine.high %v4753_v52, %v4761_v12 }
 0x1ff   : > { %v4794_v11 = vcombine.low %v4769_v17, %v4777_v59  ;;  %v4795_v13 = vcombine.high %v4769_v17, %v4777_v59  ;;  %v3758_v2 = vcombine.low %v3734_v4, %v3750_v14  ;;  %v3759_v45 = vcombine.high %v3734_v4, %v3750_v14 }
 0x200   : > { %v3774_v6 = vcombine.low %v3741_v5, %v3757_v19  ;;  %v3775_v49 = vcombine.high %v3741_v5, %v3757_v19  ;;  %v4786_v44 = vrot.slane %v4778_v48, %v6778_v61  ;;  %v4793_v22 = vrot.slane %v4779_v51, %v6778_v61 }
 0x201   : > { %v4802_v60 = vrot.slane %v4794_v11, %v6778_v61  ;;  %v4809_v53 = vrot.slane %v4795_v13, %v6778_v61  ;;  %v3766_v28 = vrot.slane %v3758_v2, %v6778_v61  ;;  %v3773_v26 = vrot.slane %v3759_v45, %v6778_v61 }
 0x202   : > { %v3782_v21 = vrot.slane %v3774_v6, %v6778_v61  ;;  %v3789_v55 = vrot.slane %v3775_v49, %v6778_v61  ;;  %v1417_v7 = vrot.slane %v1409_v20, %v6774_v54  ;;  %v1424_v8 = vrot.slane %v1410_v47, %v6774_v54 }
 0x203   : > { %v4810_v25 = vcombine.low %v4786_v44, %v4802_v60  ;;  %v4811_v27 = vcombine.high %v4786_v44, %v4802_v60  ;;  %v4812_v24 = vcombine.low %v4793_v22, %v4809_v53  ;;  %v4813_v56 = vcombine.high %v4793_v22, %v4809_v53  ;;  %v704_v44 = vpop.permute.xlu1 %703  ;;  %v7375_v22 = vpop.permute.xlu0 %3310 }
 0x204   : > { %v4814_v57 = vcombine.low %v3766_v28, %v3773_v26  ;;  %v6164_v18 = vcombine.high %v3766_v28, %v3773_v26  ;;  %v4830_v62 = vcombine.low %v3782_v21, %v3789_v55  ;;  %v6165_v63 = vcombine.high %v3782_v21, %v3789_v55 }
 0x205   : > { %v6323_v16 = vpack.c.bf16 %v4810_v25, %v4810_v25  ;;  %v6339_v3 = vpack.c.bf16 %v4811_v27, %v4811_v27  ;;  %v6355_v10 = vpack.c.bf16 %v4812_v24, %v4812_v24  ;;  %v6371_v9 = vpack.c.bf16 %v4813_v56, %v4813_v56 }
 0x206   : > { %v4821_v50 = vrot.slane %v4814_v57, %v6774_v54  ;;  %v4829_v46 = vrot.slane %v6164_v18, %v6774_v54  ;;  %v4837_v4 = vrot.slane %v4830_v62, %v6774_v54  ;;  %v4845_v5 = vrot.slane %v6165_v63, %v6774_v54 }
 0x207   : > { %5822 = vst.msk [vmem:[%s6933_s14 + $0x10] sm:$0xf] %vm3161_vm1, %v6323_v16  ;;  %5838 = vst.msk [vmem:[%s6933_s14 + $0x50] sm:$0xf] %vm3161_vm1, %v6339_v3  ;;  %v1425_v52 = vcombine.low %v7301_v15, %v702_v0  ;;  %v1426_v12 = vcombine.high %v7301_v15, %v702_v0  ;;  %v1477_v48 = vcombine.low %v6646_v30, %v656_v1 }
 0x208   : > { %5854 = vst.msk [vmem:[%s6933_s14 + $0x90] sm:$0xf] %vm3161_vm1, %v6355_v10  ;;  %5870 = vst.msk [vmem:[%s6933_s14 + $0xd0] sm:$0xf] %vm3161_vm1, %v6371_v9  ;;  %v4846_v17 = vcombine.low %v4821_v50, %v4829_v46  ;;  %v4847_v59 = vcombine.high %v4821_v50, %v4829_v46  ;;  %v4862_v14 = vcombine.low %v4837_v4, %v4845_v5 }
 0x209   : > { %v4863_v19 = vcombine.high %v4837_v4, %v4845_v5  ;;  %v1478_v51 = vcombine.high %v6646_v30, %v656_v1  ;;  %v1433_v11 = vrot.slane %v1425_v52, %v6774_v54  ;;  %v1440_v13 = vrot.slane %v1426_v12, %v6774_v54 }
 0x20a   : > { %v4854_v20 = vrot.slane %v4846_v17, %v6778_v61  ;;  %v4861_v47 = vrot.slane %v4847_v59, %v6778_v61  ;;  %v4870_v2 = vrot.slane %v4862_v14, %v6778_v61  ;;  %v1485_v3 = vrot.slane %v1477_v48, %v6774_v54 }
 0x20b   : > { %v4877_v15 = vrot.slane %v4863_v19, %v6778_v61  ;;  %v1441_v0 = vcombine.low %v1417_v7, %v1433_v11  ;;  %v1442_v45 = vcombine.high %v1417_v7, %v1433_v11  ;;  %v1457_v6 = vcombine.low %v1424_v8, %v1440_v13  ;;  %v7397_v7 = vpop.permute.xlu1 %3264 }
 0x20c   : > { %v1458_v49 = vcombine.high %v1424_v8, %v1440_v13  ;;  %v4878_v30 = vcombine.low %v4854_v20, %v4870_v2  ;;  %v4879_v60 = vcombine.high %v4854_v20, %v4870_v2  ;;  %v1492_v10 = vrot.slane %v1478_v51, %v6774_v54  ;;  %v3359_v8 = vpop.permute.xlu0 %3358 }
 0x20d   : > { %v4880_v53 = vcombine.low %v4861_v47, %v4877_v15  ;;  %v4881_v28 = vcombine.high %v4861_v47, %v4877_v15  ;;  %v1449_v26 = vrot.slane %v1441_v0, %v6778_v61  ;;  %v1456_v21 = vrot.slane %v1442_v45, %v6778_v61 }
 0x20e   : > { %v1465_v55 = vrot.slane %v1457_v6, %v6778_v61  ;;  %v1472_v25 = vrot.slane %v1458_v49, %v6778_v61  ;;  %v6324_v27 = vpack.c.bf16 %v4878_v30, %v4878_v30  ;;  %v6340_v24 = vpack.c.bf16 %v4879_v60, %v4879_v60 }
 0x20f   : > { %v6356_v56 = vpack.c.bf16 %v4880_v53, %v4880_v53  ;;  %v6372_v57 = vpack.c.bf16 %v4881_v28, %v4881_v28  ;;  %v2497_v18 = vcombine.low %v1449_v26, %v1456_v21  ;;  %v6078_v62 = vcombine.high %v1449_v26, %v1456_v21  ;;  %v7413_v53 = vpop.permute.xlu1 %3312 }
 0x210   : > { %v2513_v63 = vcombine.low %v1465_v55, %v1472_v25  ;;  %v6079_v16 = vcombine.high %v1465_v55, %v1472_v25  ;;  %5823 = vst.msk [vmem:[%s6933_s14 + $0x14] sm:$0xf] %vm3161_vm1, %v6324_v27  ;;  %5839 = vst.msk [vmem:[%s6933_s14 + $0x54] sm:$0xf] %vm3161_vm1, %v6340_v24  ;;  %v1493_v9 = vcombine.low %v7339_v23, %v704_v44  ;;  %v7415_v28 = vpop.permute.xlu0 %601 }
 0x211   : > { %5855 = vst.msk [vmem:[%s6933_s14 + $0x94] sm:$0xf] %vm3161_vm1, %v6356_v56  ;;  %5871 = vst.msk [vmem:[%s6933_s14 + $0xd4] sm:$0xf] %vm3161_vm1, %v6372_v57  ;;  %v1494_v1 = vcombine.high %v7339_v23, %v704_v44  ;;  %v2504_v50 = vrot.slane %v2497_v18, %v6774_v54  ;;  %v2512_v46 = vrot.slane %v6078_v62, %v6774_v54 }
 0x212   : > { %v2520_v4 = vrot.slane %v2513_v63, %v6774_v54  ;;  %v2528_v5 = vrot.slane %v6079_v16, %v6774_v54  ;;  %v1501_v52 = vrot.slane %v1493_v9, %v6774_v54  ;;  %v4066_v17 = vcombine.low %v6648_v31, %v7375_v22 }
 0x213   : > { %v1508_v12 = vrot.slane %v1494_v1, %v6774_v54  ;;  %v4067_v23 = vcombine.high %v6648_v31, %v7375_v22  ;;  %v2529_v59 = vcombine.low %v2504_v50, %v2512_v46  ;;  %v2530_v14 = vcombine.high %v2504_v50, %v2512_v46 }
 0x214   : > { %v2545_v19 = vcombine.low %v2520_v4, %v2528_v5  ;;  %v2546_v48 = vcombine.high %v2520_v4, %v2528_v5  ;;  %v1509_v51 = vcombine.low %v1485_v3, %v1501_v52  ;;  %v1510_v11 = vcombine.high %v1485_v3, %v1501_v52 }
 0x215   : > { %v1525_v13 = vcombine.low %v1492_v10, %v1508_v12  ;;  %v1526_v20 = vcombine.high %v1492_v10, %v1508_v12  ;;  %v2537_v47 = vrot.slane %v2529_v59, %v6778_v61  ;;  %v2544_v2 = vrot.slane %v2530_v14, %v6778_v61  ;;  %v3361_v14 = vpop.permute.xlu1 %3360 }
 0x216   : > { %v2553_v15 = vrot.slane %v2545_v19, %v6778_v61  ;;  %v2560_v0 = vrot.slane %v2546_v48, %v6778_v61  ;;  %v1517_v45 = vrot.slane %v1509_v51, %v6778_v61  ;;  %v1524_v31 = vrot.slane %v1510_v11, %v6778_v61 }
 0x217   : > { %v1533_v6 = vrot.slane %v1525_v13, %v6778_v61  ;;  %v1540_v49 = vrot.slane %v1526_v20, %v6778_v61  ;;  %v4074_v3 = vrot.slane %v4066_v17, %v6774_v54  ;;  %v4081_v10 = vrot.slane %v4067_v23, %v6774_v54  ;;  %v7439_v23 = vpop.permute.xlu0 %649 }
 0x218   : > { %v2561_v44 = vcombine.low %v2537_v47, %v2553_v15  ;;  %v2562_v22 = vcombine.high %v2537_v47, %v2553_v15  ;;  %v2563_v30 = vcombine.low %v2544_v2, %v2560_v0  ;;  %v2564_v60 = vcombine.high %v2544_v2, %v2560_v0 }
 0x219   : > { %v2565_v26 = vcombine.low %v1517_v45, %v1524_v31  ;;  %v6080_v21 = vcombine.high %v1517_v45, %v1524_v31  ;;  %v2581_v55 = vcombine.low %v1533_v6, %v1540_v49  ;;  %v6081_v25 = vcombine.high %v1533_v6, %v1540_v49 }
 0x21a   : > { %v6265_v27 = vpack.c.bf16 %v2561_v44, %v2561_v44  ;;  %v6281_v24 = vpack.c.bf16 %v2562_v22, %v2562_v22  ;;  %v6297_v56 = vpack.c.bf16 %v2563_v30, %v2563_v30  ;;  %v6313_v57 = vpack.c.bf16 %v2564_v60, %v2564_v60 }
 0x21b   : > { %v2572_v18 = vrot.slane %v2565_v26, %v6774_v54  ;;  %v2580_v62 = vrot.slane %v6080_v21, %v6774_v54  ;;  %v2588_v63 = vrot.slane %v2581_v55, %v6774_v54  ;;  %v2596_v16 = vrot.slane %v6081_v25, %v6774_v54  ;;  %v7449_v55 = vpop.permute.xlu1 %603  ;;  %v7451_v25 = vpop.permute.xlu0 %697 }
 0x21c   : > { %3172 = vst.msk [vmem:[%s6840_s11 + $0x28] sm:$0xf] %vm3161_vm1, %v6265_v27  ;;  %3188 = vst.msk [vmem:[%s6840_s11 + $0x68] sm:$0xf] %vm3161_vm1, %v6281_v24  ;;  %v4082_v9 = vcombine.low %v7349_v58, %v3359_v8  ;;  %v4083_v1 = vcombine.high %v7349_v58, %v3359_v8  ;;  %v4134_v52 = vcombine.low %v6654_v34, %v7413_v53 }
 0x21d   : > { %3204 = vst.msk [vmem:[%s6840_s11 + $0xa8] sm:$0xf] %vm3161_vm1, %v6297_v56  ;;  %3220 = vst.msk [vmem:[%s6840_s11 + $0xe8] sm:$0xf] %vm3161_vm1, %v6313_v57  ;;  %v2597_v50 = vcombine.low %v2572_v18, %v2580_v62  ;;  %v2598_v46 = vcombine.high %v2572_v18, %v2580_v62  ;;  %v2613_v4 = vcombine.low %v2588_v63, %v2596_v16 }
 0x21e   : > { %v2614_v5 = vcombine.high %v2588_v63, %v2596_v16  ;;  %v4135_v12 = vcombine.high %v6654_v34, %v7413_v53  ;;  %v4090_v59 = vrot.slane %v4082_v9, %v6774_v54  ;;  %v4097_v17 = vrot.slane %v4083_v1, %v6774_v54 }
 0x21f   : > { %v2605_v19 = vrot.slane %v2597_v50, %v6778_v61  ;;  %v2612_v58 = vrot.slane %v2598_v46, %v6778_v61  ;;  %v2621_v8 = vrot.slane %v2613_v4, %v6778_v61  ;;  %v4142_v27 = vrot.slane %v4134_v52, %v6774_v54 }
 0x220   : > { %v2628_v48 = vrot.slane %v2614_v5, %v6778_v61  ;;  %v4098_v51 = vcombine.low %v4074_v3, %v4090_v59  ;;  %v4099_v11 = vcombine.high %v4074_v3, %v4090_v59  ;;  %v4114_v13 = vcombine.low %v4081_v10, %v4097_v17 }
 0x221   : > { %v4115_v20 = vcombine.high %v4081_v10, %v4097_v17  ;;  %v2629_v34 = vcombine.low %v2605_v19, %v2621_v8  ;;  %v2630_v47 = vcombine.high %v2605_v19, %v2621_v8  ;;  %v4149_v24 = vrot.slane %v4135_v12, %v6774_v54  ;;  %v7479_v8 = vpop.permute.xlu1 %651 }
 0x222   : > { %v2631_v2 = vcombine.low %v2612_v58, %v2628_v48  ;;  %v2632_v15 = vcombine.high %v2612_v58, %v2628_v48  ;;  %v4106_v0 = vrot.slane %v4098_v51, %v6778_v61  ;;  %v4113_v45 = vrot.slane %v4099_v11, %v6778_v61  ;;  %v7481_v48 = vpop.permute.xlu0 %3258 }
 0x223   : > { %v4122_v31 = vrot.slane %v4114_v13, %v6778_v61  ;;  %v4129_v6 = vrot.slane %v4115_v20, %v6778_v61  ;;  %v6266_v49 = vpack.c.bf16 %v2629_v34, %v2629_v34  ;;  %v6282_v44 = vpack.c.bf16 %v2630_v47, %v2630_v47 }
 0x224   : > { %v6298_v22 = vpack.c.bf16 %v2631_v2, %v2631_v2  ;;  %v6314_v30 = vpack.c.bf16 %v2632_v15, %v2632_v15  ;;  %v5154_v60 = vcombine.low %v4106_v0, %v4113_v45  ;;  %v6174_v53 = vcombine.high %v4106_v0, %v4113_v45 }
 0x225   : > { %v5170_v26 = vcombine.low %v4122_v31, %v4129_v6  ;;  %v6175_v21 = vcombine.high %v4122_v31, %v4129_v6  ;;  %3173 = vst.msk [vmem:[%s6840_s11 + $0x2c] sm:$0xf] %vm3161_vm1, %v6266_v49  ;;  %3189 = vst.msk [vmem:[%s6840_s11 + $0x6c] sm:$0xf] %vm3161_vm1, %v6282_v44  ;;  %v4150_v56 = vcombine.low %v7397_v7, %v3361_v14 }
 0x226   : > { %3205 = vst.msk [vmem:[%s6840_s11 + $0xac] sm:$0xf] %vm3161_vm1, %v6298_v22  ;;  %3221 = vst.msk [vmem:[%s6840_s11 + $0xec] sm:$0xf] %vm3161_vm1, %v6314_v30  ;;  %v4151_v57 = vcombine.high %v7397_v7, %v3361_v14  ;;  %v5161_v18 = vrot.slane %v5154_v60, %v6774_v54  ;;  %v5169_v62 = vrot.slane %v6174_v53, %v6774_v54 }
 0x227   : > { %v5177_v63 = vrot.slane %v5170_v26, %v6774_v54  ;;  %v5185_v16 = vrot.slane %v6175_v21, %v6774_v54  ;;  %v4158_v3 = vrot.slane %v4150_v56, %v6774_v54  ;;  %v1273_v9 = vcombine.low %v6644_v29, %v7439_v23  ;;  %v700_v56 = vpop.permute.xlu1 %699 }
 0x228   : > { %v4165_v10 = vrot.slane %v4151_v57, %v6774_v54  ;;  %v1274_v1 = vcombine.high %v6644_v29, %v7439_v23  ;;  %v5186_v50 = vcombine.low %v5161_v18, %v5169_v62  ;;  %v5187_v7 = vcombine.high %v5161_v18, %v5169_v62  ;;  %v7505_v57 = vpop.permute.xlu0 %3306 }
 0x229   : > { %v5202_v46 = vcombine.low %v5177_v63, %v5185_v16  ;;  %v5203_v4 = vcombine.high %v5177_v63, %v5185_v16  ;;  %v4166_v5 = vcombine.low %v4142_v27, %v4158_v3  ;;  %v4167_v52 = vcombine.high %v4142_v27, %v4158_v3 }
 0x22a   : > { %v4182_v12 = vcombine.low %v4149_v24, %v4165_v10  ;;  %v4183_v59 = vcombine.high %v4149_v24, %v4165_v10  ;;  %v5194_v17 = vrot.slane %v5186_v50, %v6778_v61  ;;  %v5201_v14 = vrot.slane %v5187_v7, %v6778_v61 }
 0x22b   : > { %v5210_v19 = vrot.slane %v5202_v46, %v6778_v61  ;;  %v5217_v58 = vrot.slane %v5203_v4, %v6778_v61  ;;  %v4174_v29 = vrot.slane %v4166_v5, %v6778_v61  ;;  %v4181_v23 = vrot.slane %v4167_v52, %v6778_v61 }
 0x22c   : > { %v4190_v51 = vrot.slane %v4182_v12, %v6778_v61  ;;  %v4197_v11 = vrot.slane %v4183_v59, %v6778_v61  ;;  %v1281_v26 = vrot.slane %v1273_v9, %v6774_v54  ;;  %v1288_v21 = vrot.slane %v1274_v1, %v6774_v54 }
 0x22d   : > { %v5218_v13 = vcombine.low %v5194_v17, %v5210_v19  ;;  %v5219_v20 = vcombine.high %v5194_v17, %v5210_v19  ;;  %v5220_v34 = vcombine.low %v5201_v14, %v5217_v58  ;;  %v5221_v47 = vcombine.high %v5201_v14, %v5217_v58 }
 0x22e   : > { %v5222_v2 = vcombine.low %v4174_v29, %v4181_v23  ;;  %v6176_v15 = vcombine.high %v4174_v29, %v4181_v23  ;;  %v5238_v0 = vcombine.low %v4190_v51, %v4197_v11  ;;  %v6177_v45 = vcombine.high %v4190_v51, %v4197_v11  ;;  %v7521_v29 = vpop.permute.xlu1 %3260  ;;  %v7523_v23 = vpop.permute.xlu0 %3354 }
 0x22f   : > { %v6329_v31 = vpack.c.bf16 %v5218_v13, %v5218_v13  ;;  %v6345_v6 = vpack.c.bf16 %v5219_v20, %v5219_v20  ;;  %v6361_v49 = vpack.c.bf16 %v5220_v34, %v5220_v34  ;;  %v6377_v44 = vpack.c.bf16 %v5221_v47, %v5221_v47 }
 0x230   : > { %v5229_v22 = vrot.slane %v5222_v2, %v6774_v54  ;;  %v5237_v30 = vrot.slane %v6176_v15, %v6774_v54  ;;  %v5245_v60 = vrot.slane %v5238_v0, %v6774_v54  ;;  %v5253_v53 = vrot.slane %v6177_v45, %v6774_v54 }
 0x231   : > { %5828 = vst.msk [vmem:[%s6933_s14 + $0x28] sm:$0xf] %vm3161_vm1, %v6329_v31  ;;  %5844 = vst.msk [vmem:[%s6933_s14 + $0x68] sm:$0xf] %vm3161_vm1, %v6345_v6  ;;  %v1289_v27 = vcombine.low %v7415_v28, %v7451_v25  ;;  %v1290_v24 = vcombine.high %v7415_v28, %v7451_v25  ;;  %v1341_v3 = vcombine.low %v6650_v32, %v7479_v8 }
 0x232   : > { %5860 = vst.msk [vmem:[%s6933_s14 + $0xa8] sm:$0xf] %vm3161_vm1, %v6361_v49  ;;  %5876 = vst.msk [vmem:[%s6933_s14 + $0xe8] sm:$0xf] %vm3161_vm1, %v6377_v44  ;;  %v5254_v18 = vcombine.low %v5229_v22, %v5237_v30  ;;  %v5255_v62 = vcombine.high %v5229_v22, %v5237_v30  ;;  %v5270_v63 = vcombine.low %v5245_v60, %v5253_v53 }
 0x233   : > { %v5271_v16 = vcombine.high %v5245_v60, %v5253_v53  ;;  %v1342_v10 = vcombine.high %v6650_v32, %v7479_v8  ;;  %v1297_v9 = vrot.slane %v1289_v27, %v6774_v54  ;;  %v1304_v1 = vrot.slane %v1290_v24, %v6774_v54 }
 0x234   : > { %v5262_v50 = vrot.slane %v5254_v18, %v6778_v61  ;;  %v5269_v28 = vrot.slane %v5255_v62, %v6778_v61  ;;  %v5278_v25 = vrot.slane %v5270_v63, %v6778_v61  ;;  %v1349_v0 = vrot.slane %v1341_v3, %v6774_v54  ;;  %v7547_v18 = vpop.permute.xlu1 %3308  ;;  %v7549_v62 = vpop.permute.xlu0 %613 }
 0x235   : > { %v5285_v7 = vrot.slane %v5271_v16, %v6778_v61  ;;  %v1305_v46 = vcombine.low %v1281_v26, %v1297_v9  ;;  %v1306_v4 = vcombine.high %v1281_v26, %v1297_v9  ;;  %v1321_v5 = vcombine.low %v1288_v21, %v1304_v1 }
 0x236   : > { %v1322_v52 = vcombine.high %v1288_v21, %v1304_v1  ;;  %v5286_v12 = vcombine.low %v5262_v50, %v5278_v25  ;;  %v5287_v59 = vcombine.high %v5262_v50, %v5278_v25  ;;  %v1356_v45 = vrot.slane %v1342_v10, %v6774_v54 }
 0x237   : > { %v5288_v17 = vcombine.low %v5269_v28, %v5285_v7  ;;  %v5289_v32 = vcombine.high %v5269_v28, %v5285_v7  ;;  %v1313_v14 = vrot.slane %v1305_v46, %v6778_v61  ;;  %v1320_v19 = vrot.slane %v1306_v4, %v6778_v61 }
 0x238   : > { %v1329_v58 = vrot.slane %v1321_v5, %v6778_v61  ;;  %v1336_v8 = vrot.slane %v1322_v52, %v6778_v61  ;;  %v6330_v51 = vpack.c.bf16 %v5286_v12, %v5286_v12  ;;  %v6346_v11 = vpack.c.bf16 %v5287_v59, %v5287_v59 }
 0x239   : > { %v6362_v13 = vpack.c.bf16 %v5288_v17, %v5288_v17  ;;  %v6378_v20 = vpack.c.bf16 %v5289_v32, %v5289_v32  ;;  %v2361_v34 = vcombine.low %v1313_v14, %v1320_v19  ;;  %v6074_v47 = vcombine.high %v1313_v14, %v1320_v19 }
 0x23a   : > { %v2377_v2 = vcombine.low %v1329_v58, %v1336_v8  ;;  %v6075_v15 = vcombine.high %v1329_v58, %v1336_v8  ;;  %5829 = vst.msk [vmem:[%s6933_s14 + $0x2c] sm:$0xf] %vm3161_vm1, %v6330_v51  ;;  %5845 = vst.msk [vmem:[%s6933_s14 + $0x6c] sm:$0xf] %vm3161_vm1, %v6346_v11  ;;  %v1357_v31 = vcombine.low %v7449_v55, %v700_v56  ;;  %v7559_v51 = vpop.permute.xlu1 %3356  ;;  %v7561_v11 = vpop.permute.xlu0 %661 }
 0x23b   : > { %5861 = vst.msk [vmem:[%s6933_s14 + $0xac] sm:$0xf] %vm3161_vm1, %v6362_v13  ;;  %5877 = vst.msk [vmem:[%s6933_s14 + $0xec] sm:$0xf] %vm3161_vm1, %v6378_v20  ;;  %v1358_v6 = vcombine.high %v7449_v55, %v700_v56  ;;  %v2368_v49 = vrot.slane %v2361_v34, %v6774_v54  ;;  %v2376_v44 = vrot.slane %v6074_v47, %v6774_v54 }
 0x23c   : > { %v2384_v22 = vrot.slane %v2377_v2, %v6774_v54  ;;  %v2392_v30 = vrot.slane %v6075_v15, %v6774_v54  ;;  %v1365_v60 = vrot.slane %v1357_v31, %v6774_v54  ;;  %v3930_v26 = vcombine.low %v6652_v33, %v7505_v57 }
 0x23d   : > { %v1372_v53 = vrot.slane %v1358_v6, %v6774_v54  ;;  %v3931_v21 = vcombine.high %v6652_v33, %v7505_v57  ;;  %v2393_v27 = vcombine.low %v2368_v49, %v2376_v44  ;;  %v2394_v55 = vcombine.high %v2368_v49, %v2376_v44 }
 0x23e   : > { %v2409_v24 = vcombine.low %v2384_v22, %v2392_v30  ;;  %v2410_v56 = vcombine.high %v2384_v22, %v2392_v30  ;;  %v1373_v63 = vcombine.low %v1349_v0, %v1365_v60  ;;  %v1374_v16 = vcombine.high %v1349_v0, %v1365_v60 }
 0x23f   : > { %v1389_v3 = vcombine.low %v1356_v45, %v1372_v53  ;;  %v1390_v10 = vcombine.high %v1356_v45, %v1372_v53  ;;  %v2401_v9 = vrot.slane %v2393_v27, %v6778_v61  ;;  %v2408_v1 = vrot.slane %v2394_v55, %v6778_v61 }
 0x240   : > { %v2417_v50 = vrot.slane %v2409_v24, %v6778_v61  ;;  %v2424_v33 = vrot.slane %v2410_v56, %v6778_v61  ;;  %v1381_v57 = vrot.slane %v1373_v63, %v6778_v61  ;;  %v1388_v28 = vrot.slane %v1374_v16, %v6778_v61  ;;  %v7591_v63 = vpop.permute.xlu1 %615  ;;  %v7593_v16 = vpop.permute.xlu0 %709 }
 0x241   : > { %v1397_v25 = vrot.slane %v1389_v3, %v6778_v61  ;;  %v1404_v7 = vrot.slane %v1390_v10, %v6778_v61  ;;  %v3938_v2 = vrot.slane %v3930_v26, %v6774_v54  ;;  %v3945_v15 = vrot.slane %v3931_v21, %v6774_v54 }
 0x242   : > { %v2425_v46 = vcombine.low %v2401_v9, %v2417_v50  ;;  %v2426_v4 = vcombine.high %v2401_v9, %v2417_v50  ;;  %v2427_v5 = vcombine.low %v2408_v1, %v2424_v33  ;;  %v2428_v52 = vcombine.high %v2408_v1, %v2424_v33 }
 0x243   : > { %v2429_v12 = vcombine.low %v1381_v57, %v1388_v28  ;;  %v6076_v59 = vcombine.high %v1381_v57, %v1388_v28  ;;  %v2445_v17 = vcombine.low %v1397_v25, %v1404_v7  ;;  %v6077_v32 = vcombine.high %v1397_v25, %v1404_v7 }
 0x244   : > { %v6263_v14 = vpack.c.bf16 %v2425_v46, %v2425_v46  ;;  %v6279_v19 = vpack.c.bf16 %v2426_v4, %v2426_v4  ;;  %v6295_v58 = vpack.c.bf16 %v2427_v5, %v2427_v5  ;;  %v6311_v8 = vpack.c.bf16 %v2428_v52, %v2428_v52 }
 0x245   : > { %v2436_v13 = vrot.slane %v2429_v12, %v6774_v54  ;;  %v2444_v20 = vrot.slane %v6076_v59, %v6774_v54  ;;  %v2452_v34 = vrot.slane %v2445_v17, %v6774_v54  ;;  %v2460_v47 = vrot.slane %v6077_v32, %v6774_v54 }
 0x246   : > { %3170 = vst.msk [vmem:[%s6840_s11 + $0x20] sm:$0xf] %vm3161_vm1, %v6263_v14  ;;  %3186 = vst.msk [vmem:[%s6840_s11 + $0x60] sm:$0xf] %vm3161_vm1, %v6279_v19  ;;  %v3946_v0 = vcombine.low %v7481_v48, %v7523_v23  ;;  %v3947_v45 = vcombine.high %v7481_v48, %v7523_v23  ;;  %v3998_v22 = vcombine.low %v6660_v35, %v7547_v18 }
 0x247   : > { %3202 = vst.msk [vmem:[%s6840_s11 + $0xa0] sm:$0xf] %vm3161_vm1, %v6295_v58  ;;  %3218 = vst.msk [vmem:[%s6840_s11 + $0xe0] sm:$0xf] %vm3161_vm1, %v6311_v8  ;;  %v2461_v31 = vcombine.low %v2436_v13, %v2444_v20  ;;  %v2462_v6 = vcombine.high %v2436_v13, %v2444_v20  ;;  %v2477_v49 = vcombine.low %v2452_v34, %v2460_v47  ;;  %v7617_v13 = vpop.permute.xlu1 %663  ;;  %v7619_v20 = vpop.permute.xlu0 %3270 }
 0x248   : > { %v2478_v44 = vcombine.high %v2452_v34, %v2460_v47  ;;  %v3999_v30 = vcombine.high %v6660_v35, %v7547_v18  ;;  %v3954_v60 = vrot.slane %v3946_v0, %v6774_v54  ;;  %v3961_v53 = vrot.slane %v3947_v45, %v6774_v54 }
 0x249   : > { %v2469_v26 = vrot.slane %v2461_v31, %v6778_v61  ;;  %v2476_v21 = vrot.slane %v2462_v6, %v6778_v61  ;;  %v2485_v48 = vrot.slane %v2477_v49, %v6778_v61  ;;  %v4006_v12 = vrot.slane %v3998_v22, %v6774_v54 }
 0x24a   : > { %v2492_v23 = vrot.slane %v2478_v44, %v6778_v61  ;;  %v3962_v27 = vcombine.low %v3938_v2, %v3954_v60  ;;  %v3963_v55 = vcombine.high %v3938_v2, %v3954_v60  ;;  %v3978_v24 = vcombine.low %v3945_v15, %v3961_v53 }
 0x24b   : > { %v3979_v56 = vcombine.high %v3945_v15, %v3961_v53  ;;  %v2493_v35 = vcombine.low %v2469_v26, %v2485_v48  ;;  %v2494_v18 = vcombine.high %v2469_v26, %v2485_v48  ;;  %v4013_v59 = vrot.slane %v3999_v30, %v6774_v54 }
 0x24c   : > { %v2495_v3 = vcombine.low %v2476_v21, %v2492_v23  ;;  %v2496_v10 = vcombine.high %v2476_v21, %v2492_v23  ;;  %v3970_v9 = vrot.slane %v3962_v27, %v6778_v61  ;;  %v3977_v1 = vrot.slane %v3963_v55, %v6778_v61 }
 0x24d   : > { %v3986_v50 = vrot.slane %v3978_v24, %v6778_v61  ;;  %v3993_v33 = vrot.slane %v3979_v56, %v6778_v61  ;;  %v6264_v57 = vpack.c.bf16 %v2493_v35, %v2493_v35  ;;  %v6280_v28 = vpack.c.bf16 %v2494_v18, %v2494_v18  ;;  %v7635_v24 = vpop.permute.xlu1 %711  ;;  %v7637_v56 = vpop.permute.xlu0 %3318 }
 0x24e   : > { %v6296_v25 = vpack.c.bf16 %v2495_v3, %v2495_v3  ;;  %v6312_v7 = vpack.c.bf16 %v2496_v10, %v2496_v10  ;;  %v5018_v46 = vcombine.low %v3970_v9, %v3977_v1  ;;  %v6170_v4 = vcombine.high %v3970_v9, %v3977_v1 }
 0x24f   : > { %v5034_v5 = vcombine.low %v3986_v50, %v3993_v33  ;;  %v6171_v52 = vcombine.high %v3986_v50, %v3993_v33  ;;  %3171 = vst.msk [vmem:[%s6840_s11 + $0x24] sm:$0xf] %vm3161_vm1, %v6264_v57  ;;  %3187 = vst.msk [vmem:[%s6840_s11 + $0x64] sm:$0xf] %vm3161_vm1, %v6280_v28  ;;  %v4014_v17 = vcombine.low %v7521_v29, %v7559_v51 }
 0x250   : > { %3203 = vst.msk [vmem:[%s6840_s11 + $0xa4] sm:$0xf] %vm3161_vm1, %v6296_v25  ;;  %3219 = vst.msk [vmem:[%s6840_s11 + $0xe4] sm:$0xf] %vm3161_vm1, %v6312_v7  ;;  %v4015_v32 = vcombine.high %v7521_v29, %v7559_v51  ;;  %v5025_v14 = vrot.slane %v5018_v46, %v6774_v54  ;;  %v5033_v19 = vrot.slane %v6170_v4, %v6774_v54 }
 0x251   : > { %v5041_v58 = vrot.slane %v5034_v5, %v6774_v54  ;;  %v5049_v8 = vrot.slane %v6171_v52, %v6774_v54  ;;  %v4022_v34 = vrot.slane %v4014_v17, %v6774_v54  ;;  %v1681_v2 = vcombine.low %v6662_v36, %v7561_v11 }
 0x252   : > { %v4029_v47 = vrot.slane %v4015_v32, %v6774_v54  ;;  %v1682_v29 = vcombine.high %v6662_v36, %v7561_v11  ;;  %v5050_v51 = vcombine.low %v5025_v14, %v5033_v19  ;;  %v5051_v15 = vcombine.high %v5025_v14, %v5033_v19 }
 0x253   : > { %v5066_v0 = vcombine.low %v5041_v58, %v5049_v8  ;;  %v5067_v45 = vcombine.high %v5041_v58, %v5049_v8  ;;  %v4030_v31 = vcombine.low %v4006_v12, %v4022_v34  ;;  %v4031_v6 = vcombine.high %v4006_v12, %v4022_v34  ;;  %v7663_v34 = vpop.permute.xlu1 %3272 }
 0x254   : > { %v4046_v49 = vcombine.low %v4013_v59, %v4029_v47  ;;  %v4047_v44 = vcombine.high %v4013_v59, %v4029_v47  ;;  %v5058_v22 = vrot.slane %v5050_v51, %v6778_v61  ;;  %v5065_v30 = vrot.slane %v5051_v15, %v6778_v61  ;;  %v7665_v47 = vpop.permute.xlu0 %609 }
 0x255   : > { %v5074_v60 = vrot.slane %v5066_v0, %v6778_v61  ;;  %v5081_v53 = vrot.slane %v5067_v45, %v6778_v61  ;;  %v4038_v26 = vrot.slane %v4030_v31, %v6778_v61  ;;  %v4045_v36 = vrot.slane %v4031_v6, %v6778_v61 }
 0x256   : > { %v4054_v11 = vrot.slane %v4046_v49, %v6778_v61  ;;  %v4061_v21 = vrot.slane %v4047_v44, %v6778_v61  ;;  %v1689_v46 = vrot.slane %v1681_v2, %v6774_v54  ;;  %v1696_v4 = vrot.slane %v1682_v29, %v6774_v54 }
 0x257   : > { %v5082_v48 = vcombine.low %v5058_v22, %v5074_v60  ;;  %v5083_v23 = vcombine.high %v5058_v22, %v5074_v60  ;;  %v5084_v27 = vcombine.low %v5065_v30, %v5081_v53  ;;  %v5085_v55 = vcombine.high %v5065_v30, %v5081_v53 }
 0x258   : > { %v5086_v35 = vcombine.low %v4038_v26, %v4045_v36  ;;  %v6172_v18 = vcombine.high %v4038_v26, %v4045_v36  ;;  %v5102_v3 = vcombine.low %v4054_v11, %v4061_v21  ;;  %v6173_v10 = vcombine.high %v4054_v11, %v4061_v21 }
 0x259   : > { %v6327_v9 = vpack.c.bf16 %v5082_v48, %v5082_v48  ;;  %v6343_v1 = vpack.c.bf16 %v5083_v23, %v5083_v23  ;;  %v6359_v50 = vpack.c.bf16 %v5084_v27, %v5084_v27  ;;  %v6375_v33 = vpack.c.bf16 %v5085_v55, %v5085_v55  ;;  %v7675_v27 = vpop.permute.xlu1 %3320  ;;  %v7677_v55 = vpop.permute.xlu0 %657 }
 0x25a   : > { %v5093_v57 = vrot.slane %v5086_v35, %v6774_v54  ;;  %v5101_v28 = vrot.slane %v6172_v18, %v6774_v54  ;;  %v5109_v25 = vrot.slane %v5102_v3, %v6774_v54  ;;  %v5117_v7 = vrot.slane %v6173_v10, %v6774_v54 }
 0x25b   : > { %5826 = vst.msk [vmem:[%s6933_s14 + $0x20] sm:$0xf] %vm3161_vm1, %v6327_v9  ;;  %5842 = vst.msk [vmem:[%s6933_s14 + $0x60] sm:$0xf] %vm3161_vm1, %v6343_v1  ;;  %v1697_v5 = vcombine.low %v7549_v62, %v7593_v16  ;;  %v1698_v52 = vcombine.high %v7549_v62, %v7593_v16  ;;  %v1749_v14 = vcombine.low %v6670_v38, %v7617_v13 }
 0x25c   : > { %5858 = vst.msk [vmem:[%s6933_s14 + $0xa0] sm:$0xf] %vm3161_vm1, %v6359_v50  ;;  %5874 = vst.msk [vmem:[%s6933_s14 + $0xe0] sm:$0xf] %vm3161_vm1, %v6375_v33  ;;  %v5118_v12 = vcombine.low %v5093_v57, %v5101_v28  ;;  %v5119_v59 = vcombine.high %v5093_v57, %v5101_v28  ;;  %v5134_v17 = vcombine.low %v5109_v25, %v5117_v7 }
 0x25d   : > { %v5135_v32 = vcombine.high %v5109_v25, %v5117_v7  ;;  %v1750_v19 = vcombine.high %v6670_v38, %v7617_v13  ;;  %v1705_v58 = vrot.slane %v1697_v5, %v6774_v54  ;;  %v1712_v8 = vrot.slane %v1698_v52, %v6774_v54 }
 0x25e   : > { %v5126_v62 = vrot.slane %v5118_v12, %v6778_v61  ;;  %v5133_v16 = vrot.slane %v5119_v59, %v6778_v61  ;;  %v5142_v2 = vrot.slane %v5134_v17, %v6778_v61  ;;  %v1757_v35 = vrot.slane %v1749_v14, %v6774_v54 }
 0x25f   : > { %v5149_v29 = vrot.slane %v5135_v32, %v6778_v61  ;;  %v1713_v51 = vcombine.low %v1689_v46, %v1705_v58  ;;  %v1714_v15 = vcombine.high %v1689_v46, %v1705_v58  ;;  %v1729_v0 = vcombine.low %v1696_v4, %v1712_v8  ;;  %v7707_v58 = vpop.permute.xlu1 %611 }
 0x260   : > { %v1730_v38 = vcombine.high %v1696_v4, %v1712_v8  ;;  %v5150_v13 = vcombine.low %v5126_v62, %v5142_v2  ;;  %v5151_v45 = vcombine.high %v5126_v62, %v5142_v2  ;;  %v1764_v18 = vrot.slane %v1750_v19, %v6774_v54  ;;  %v706_v8 = vpop.permute.xlu0 %705 }
 0x261   : > { %v5152_v31 = vcombine.low %v5133_v16, %v5149_v29  ;;  %v5153_v6 = vcombine.high %v5133_v16, %v5149_v29  ;;  %v1721_v49 = vrot.slane %v1713_v51, %v6778_v61  ;;  %v1728_v44 = vrot.slane %v1714_v15, %v6778_v61 }
 0x262   : > { %v1737_v22 = vrot.slane %v1729_v0, %v6778_v61  ;;  %v1744_v30 = vrot.slane %v1730_v38, %v6778_v61  ;;  %v6328_v60 = vpack.c.bf16 %v5150_v13, %v5150_v13  ;;  %v6344_v53 = vpack.c.bf16 %v5151_v45, %v5151_v45 }
 0x263   : > { %v6360_v26 = vpack.c.bf16 %v5152_v31, %v5152_v31  ;;  %v6376_v36 = vpack.c.bf16 %v5153_v6, %v5153_v6  ;;  %v2769_v11 = vcombine.low %v1721_v49, %v1728_v44  ;;  %v6086_v21 = vcombine.high %v1721_v49, %v1728_v44 }
 0x264   : > { %v2785_v48 = vcombine.low %v1737_v22, %v1744_v30  ;;  %v6087_v23 = vcombine.high %v1737_v22, %v1744_v30  ;;  %5827 = vst.msk [vmem:[%s6933_s14 + $0x24] sm:$0xf] %vm3161_vm1, %v6328_v60  ;;  %5843 = vst.msk [vmem:[%s6933_s14 + $0x64] sm:$0xf] %vm3161_vm1, %v6344_v53  ;;  %v1765_v3 = vcombine.low %v7591_v63, %v7635_v24 }
 0x265   : > { %5859 = vst.msk [vmem:[%s6933_s14 + $0xa4] sm:$0xf] %vm3161_vm1, %v6360_v26  ;;  %5875 = vst.msk [vmem:[%s6933_s14 + $0xe4] sm:$0xf] %vm3161_vm1, %v6376_v36  ;;  %v1766_v10 = vcombine.high %v7591_v63, %v7635_v24  ;;  %v2776_v9 = vrot.slane %v2769_v11, %v6774_v54  ;;  %v2784_v1 = vrot.slane %v6086_v21, %v6774_v54 }
 0x266   : > { %v2792_v50 = vrot.slane %v2785_v48, %v6774_v54  ;;  %v2800_v33 = vrot.slane %v6087_v23, %v6774_v54  ;;  %v1773_v57 = vrot.slane %v1765_v3, %v6774_v54  ;;  %v4338_v25 = vcombine.low %v6686_v40, %v7637_v56  ;;  %v660_v48 = vpop.permute.xlu1 %659  ;;  %v7735_v23 = vpop.permute.xlu0 %3266 }
 0x267   : > { %v1780_v28 = vrot.slane %v1766_v10, %v6774_v54  ;;  %v4339_v7 = vcombine.high %v6686_v40, %v7637_v56  ;;  %v2801_v46 = vcombine.low %v2776_v9, %v2784_v1  ;;  %v2802_v63 = vcombine.high %v2776_v9, %v2784_v1 }
 0x268   : > { %v2817_v24 = vcombine.low %v2792_v50, %v2800_v33  ;;  %v2818_v4 = vcombine.high %v2792_v50, %v2800_v33  ;;  %v1781_v5 = vcombine.low %v1757_v35, %v1773_v57  ;;  %v1782_v52 = vcombine.high %v1757_v35, %v1773_v57 }
 0x269   : > { %v1797_v12 = vcombine.low %v1764_v18, %v1780_v28  ;;  %v1798_v59 = vcombine.high %v1764_v18, %v1780_v28  ;;  %v2809_v17 = vrot.slane %v2801_v46, %v6778_v61  ;;  %v2816_v32 = vrot.slane %v2802_v63, %v6778_v61 }
 0x26a   : > { %v2825_v14 = vrot.slane %v2817_v24, %v6778_v61  ;;  %v2832_v19 = vrot.slane %v2818_v4, %v6778_v61  ;;  %v1789_v40 = vrot.slane %v1781_v5, %v6778_v61  ;;  %v1796_v56 = vrot.slane %v1782_v52, %v6778_v61 }
 0x26b   : > { %v1805_v62 = vrot.slane %v1797_v12, %v6778_v61  ;;  %v1812_v16 = vrot.slane %v1798_v59, %v6778_v61  ;;  %v7726_v26 = vrot.slane %v4338_v25, %v6774_v54  ;;  %v7729_v36 = vrot.slane %v4339_v7, %v6774_v54 }
 0x26c   : > { %v2833_v2 = vcombine.low %v2809_v17, %v2825_v14  ;;  %v2834_v29 = vcombine.high %v2809_v17, %v2825_v14  ;;  %v2835_v51 = vcombine.low %v2816_v32, %v2832_v19  ;;  %v2836_v15 = vcombine.high %v2816_v32, %v2832_v19  ;;  %v708_v32 = vpop.permute.xlu1 %707  ;;  %v3315_v14 = vpop.permute.xlu0 %3314 }
 0x26d   : > { %v2837_v0 = vcombine.low %v1789_v40, %v1796_v56  ;;  %v6088_v38 = vcombine.high %v1789_v40, %v1796_v56  ;;  %v2853_v13 = vcombine.low %v1805_v62, %v1812_v16  ;;  %v6089_v45 = vcombine.high %v1805_v62, %v1812_v16 }
 0x26e   : > { %v6269_v31 = vpack.c.bf16 %v2833_v2, %v2833_v2  ;;  %v6285_v6 = vpack.c.bf16 %v2834_v29, %v2834_v29  ;;  %v6301_v49 = vpack.c.bf16 %v2835_v51, %v2835_v51  ;;  %v6317_v44 = vpack.c.bf16 %v2836_v15, %v2836_v15 }
 0x26f   : > { %v2844_v22 = vrot.slane %v2837_v0, %v6774_v54  ;;  %v2852_v30 = vrot.slane %v6088_v38, %v6774_v54  ;;  %v2860_v60 = vrot.slane %v2853_v13, %v6774_v54  ;;  %v2868_v53 = vrot.slane %v6089_v45, %v6774_v54 }
 0x270   : > { %3176 = vst.msk [vmem:[%s6840_s11 + $0x38] sm:$0xf] %vm3161_vm1, %v6269_v31  ;;  %3192 = vst.msk [vmem:[%s6840_s11 + $0x78] sm:$0xf] %vm3161_vm1, %v6285_v6  ;;  %v1545_v11 = vcombine.low %v6668_v37, %v7677_v55  ;;  %v1546_v21 = vcombine.high %v6668_v37, %v7677_v55  ;;  %v4406_v9 = vcombine.low %v6694_v42, %v7675_v27 }
 0x271   : > { %3208 = vst.msk [vmem:[%s6840_s11 + $0xb8] sm:$0xf] %vm3161_vm1, %v6301_v49  ;;  %3224 = vst.msk [vmem:[%s6840_s11 + $0xf8] sm:$0xf] %vm3161_vm1, %v6317_v44  ;;  %v2869_v35 = vcombine.low %v2844_v22, %v2852_v30  ;;  %v2870_v18 = vcombine.high %v2844_v22, %v2852_v30  ;;  %v2885_v3 = vcombine.low %v2860_v60, %v2868_v53 }
 0x272   : > { %v2886_v10 = vcombine.high %v2860_v60, %v2868_v53  ;;  %v4407_v1 = vcombine.high %v6694_v42, %v7675_v27  ;;  %v1553_v50 = vrot.slane %v1545_v11, %v6774_v54  ;;  %v1560_v33 = vrot.slane %v1546_v21, %v6774_v54 }
 0x273   : > { %v2877_v57 = vrot.slane %v2869_v35, %v6778_v61  ;;  %v2884_v37 = vrot.slane %v2870_v18, %v6778_v61  ;;  %v2893_v55 = vrot.slane %v2885_v3, %v6778_v61  ;;  %v1613_v25 = vcombine.low %v6672_v39, %v660_v48 }
 0x274   : > { %v2900_v28 = vrot.slane %v2886_v10, %v6778_v61  ;;  %v1614_v7 = vcombine.high %v6672_v39, %v660_v48  ;;  %v1561_v46 = vcombine.low %v7665_v47, %v706_v8  ;;  %v1562_v63 = vcombine.high %v7665_v47, %v706_v8 }
 0x275   : > { %v2901_v24 = vcombine.low %v2877_v57, %v2893_v55  ;;  %v2902_v4 = vcombine.high %v2877_v57, %v2893_v55  ;;  %v1621_v12 = vrot.slane %v1613_v25, %v6774_v54  ;;  %v1629_v29 = vcombine.low %v7707_v58, %v708_v32 }
 0x276   : > { %v2903_v5 = vcombine.low %v2884_v37, %v2900_v28  ;;  %v2904_v52 = vcombine.high %v2884_v37, %v2900_v28  ;;  %v1628_v59 = vrot.slane %v1614_v7, %v6774_v54  ;;  %v1569_v17 = vrot.slane %v1561_v46, %v6774_v54 }
 0x277   : > { %v1576_v39 = vrot.slane %v1562_v63, %v6774_v54  ;;  %v6270_v19 = vpack.c.bf16 %v2901_v24, %v2901_v24  ;;  %v6286_v47 = vpack.c.bf16 %v2902_v4, %v2902_v4  ;;  %v1630_v51 = vcombine.high %v7707_v58, %v708_v32 }
 0x278   : > { %v6302_v8 = vpack.c.bf16 %v2903_v5, %v2903_v5  ;;  %v6318_v40 = vpack.c.bf16 %v2904_v52, %v2904_v52  ;;  %v1577_v56 = vcombine.low %v1553_v50, %v1569_v17  ;;  %v1578_v62 = vcombine.high %v1553_v50, %v1569_v17  ;;  %v7783_v50 = vpop.permute.xlu1 %3268 }
 0x279   : > { %v1593_v16 = vcombine.low %v1560_v33, %v1576_v39  ;;  %v1594_v2 = vcombine.high %v1560_v33, %v1576_v39  ;;  %3177 = vst.msk [vmem:[%s6840_s11 + $0x3c] sm:$0xf] %vm3161_vm1, %v6270_v19  ;;  %3193 = vst.msk [vmem:[%s6840_s11 + $0x7c] sm:$0xf] %vm3161_vm1, %v6286_v47  ;;  %v4202_v15 = vcombine.low %v6692_v41, %v3315_v14 }
 0x27a   : > { %3209 = vst.msk [vmem:[%s6840_s11 + $0xbc] sm:$0xf] %vm3161_vm1, %v6302_v8  ;;  %3225 = vst.msk [vmem:[%s6840_s11 + $0xfc] sm:$0xf] %vm3161_vm1, %v6318_v40  ;;  %v4203_v0 = vcombine.high %v6692_v41, %v3315_v14  ;;  %v1585_v38 = vrot.slane %v1577_v56, %v6778_v61  ;;  %v1592_v13 = vrot.slane %v1578_v62, %v6778_v61 }
 0x27b   : > { %v1601_v45 = vrot.slane %v1593_v16, %v6778_v61  ;;  %v1608_v31 = vrot.slane %v1594_v2, %v6778_v61  ;;  %v1637_v6 = vrot.slane %v1629_v29, %v6774_v54  ;;  %v1644_v49 = vrot.slane %v1630_v51, %v6774_v54  ;;  %v3363_v16 = vpop.permute.xlu0 %3362 }
 0x27c   : > { %v7774_v44 = vrot.slane %v4202_v15, %v6774_v54  ;;  %v7777_v58 = vrot.slane %v4203_v0, %v6774_v54  ;;  %v2633_v22 = vcombine.low %v1585_v38, %v1592_v13  ;;  %v6082_v41 = vcombine.high %v1585_v38, %v1592_v13  ;;  %v3317_v62 = vpop.permute.xlu1 %3316 }
 0x27d   : > { %v2649_v30 = vcombine.low %v1601_v45, %v1608_v31  ;;  %v6083_v60 = vcombine.high %v1601_v45, %v1608_v31  ;;  %v1645_v53 = vcombine.low %v1621_v12, %v1637_v6  ;;  %v1646_v11 = vcombine.high %v1621_v12, %v1637_v6 }
 0x27e   : > { %v1661_v21 = vcombine.low %v1628_v59, %v1644_v49  ;;  %v1662_v48 = vcombine.high %v1628_v59, %v1644_v49  ;;  %v2640_v35 = vrot.slane %v2633_v22, %v6774_v54  ;;  %v2648_v18 = vrot.slane %v6082_v41, %v6774_v54 }
 0x27f   : > { %v2656_v3 = vrot.slane %v2649_v30, %v6774_v54  ;;  %v2664_v10 = vrot.slane %v6083_v60, %v6774_v54  ;;  %v1653_v33 = vrot.slane %v1645_v53, %v6778_v61  ;;  %v1660_v57 = vrot.slane %v1646_v11, %v6778_v61 }
 0x280   : > { %v1669_v37 = vrot.slane %v1661_v21, %v6778_v61  ;;  %v1676_v55 = vrot.slane %v1662_v48, %v6778_v61  ;;  %v2665_v28 = vcombine.low %v2640_v35, %v2648_v18  ;;  %v2666_v25 = vcombine.high %v2640_v35, %v2648_v18 }
 0x281   : > { %v2681_v7 = vcombine.low %v2656_v3, %v2664_v10  ;;  %v2682_v46 = vcombine.high %v2656_v3, %v2664_v10  ;;  %v2701_v63 = vcombine.low %v1653_v33, %v1660_v57  ;;  %v6084_v24 = vcombine.high %v1653_v33, %v1660_v57  ;;  %v3365_v33 = vpop.permute.xlu1 %3364  ;;  %v3367_v57 = vpop.permute.xlu0 %3366 }
 0x282   : > { %v2717_v4 = vcombine.low %v1669_v37, %v1676_v55  ;;  %v6085_v5 = vcombine.high %v1669_v37, %v1676_v55  ;;  %v2673_v52 = vrot.slane %v2665_v28, %v6778_v61  ;;  %v2680_v12 = vrot.slane %v2666_v25, %v6778_v61 }
 0x283   : > { %v2689_v59 = vrot.slane %v2681_v7, %v6778_v61  ;;  %v2696_v17 = vrot.slane %v2682_v46, %v6778_v61  ;;  %v2708_v39 = vrot.slane %v2701_v63, %v6774_v54  ;;  %v2716_v32 = vrot.slane %v6084_v24, %v6774_v54 }
 0x284   : > { %v2724_v14 = vrot.slane %v2717_v4, %v6774_v54  ;;  %v2732_v19 = vrot.slane %v6085_v5, %v6774_v54  ;;  %v4270_v41 = vcombine.low %v6696_v43, %v3317_v62  ;;  %v4271_v30 = vcombine.high %v6696_v43, %v3317_v62 }
 0x285   : > { %v2697_v47 = vcombine.low %v2673_v52, %v2689_v59  ;;  %v2698_v8 = vcombine.high %v2673_v52, %v2689_v59  ;;  %v2699_v40 = vcombine.low %v2680_v12, %v2696_v17  ;;  %v2700_v56 = vcombine.high %v2680_v12, %v2696_v17 }
 0x286   : > { %v2733_v2 = vcombine.low %v2708_v39, %v2716_v32  ;;  %v2734_v29 = vcombine.high %v2708_v39, %v2716_v32  ;;  %v2749_v51 = vcombine.low %v2724_v14, %v2732_v19  ;;  %v2750_v15 = vcombine.high %v2724_v14, %v2732_v19 }
 0x287   : > { %v6267_v0 = vpack.c.bf16 %v2697_v47, %v2697_v47  ;;  %v6283_v38 = vpack.c.bf16 %v2698_v8, %v2698_v8  ;;  %v6299_v13 = vpack.c.bf16 %v2699_v40, %v2699_v40  ;;  %v6315_v45 = vpack.c.bf16 %v2700_v56, %v2700_v56 }
 0x288   : > { %v2741_v31 = vrot.slane %v2733_v2, %v6778_v61  ;;  %v2748_v6 = vrot.slane %v2734_v29, %v6778_v61  ;;  %v2757_v49 = vrot.slane %v2749_v51, %v6778_v61  ;;  %v2764_v22 = vrot.slane %v2750_v15, %v6778_v61 }
 0x289   : > { %3174 = vst.msk [vmem:[%s6840_s11 + $0x30] sm:$0xf] %vm3161_vm1, %v6267_v0  ;;  %3190 = vst.msk [vmem:[%s6840_s11 + $0x70] sm:$0xf] %vm3161_vm1, %v6283_v38  ;;  %v4218_v60 = vcombine.low %v7735_v23, %v3363_v16  ;;  %v4219_v53 = vcombine.high %v7735_v23, %v3363_v16  ;;  %v4278_v18 = vrot.slane %v4270_v41, %v6774_v54 }
 0x28a   : > { %3206 = vst.msk [vmem:[%s6840_s11 + $0xb0] sm:$0xf] %vm3161_vm1, %v6299_v13  ;;  %3222 = vst.msk [vmem:[%s6840_s11 + $0xf0] sm:$0xf] %vm3161_vm1, %v6315_v45  ;;  %v2765_v11 = vcombine.low %v2741_v31, %v2757_v49  ;;  %v2766_v21 = vcombine.high %v2741_v31, %v2757_v49  ;;  %v2767_v48 = vcombine.low %v2748_v6, %v2764_v22 }
 0x28b   : > { %v2768_v35 = vcombine.high %v2748_v6, %v2764_v22  ;;  %v4285_v3 = vrot.slane %v4271_v30, %v6774_v54  ;;  %v4226_v10 = vrot.slane %v4218_v60, %v6774_v54  ;;  %v4233_v43 = vrot.slane %v4219_v53, %v6774_v54 }
 0x28c   : > { %v6268_v37 = vpack.c.bf16 %v2765_v11, %v2765_v11  ;;  %v6284_v23 = vpack.c.bf16 %v2766_v21, %v2766_v21  ;;  %v6300_v55 = vpack.c.bf16 %v2767_v48, %v2767_v48  ;;  %v4286_v24 = vcombine.low %v7783_v50, %v3365_v33 }
 0x28d   : > { %v6316_v28 = vpack.c.bf16 %v2768_v35, %v2768_v35  ;;  %v4234_v25 = vcombine.low %v7774_v44, %v4226_v10  ;;  %v4235_v7 = vcombine.high %v7774_v44, %v4226_v10  ;;  %v4250_v46 = vcombine.low %v7777_v58, %v4233_v43 }
 0x28e   : > { %v4251_v63 = vcombine.high %v7777_v58, %v4233_v43  ;;  %3175 = vst.msk [vmem:[%s6840_s11 + $0x34] sm:$0xf] %vm3161_vm1, %v6268_v37  ;;  %3191 = vst.msk [vmem:[%s6840_s11 + $0x74] sm:$0xf] %vm3161_vm1, %v6284_v23  ;;  %v4287_v4 = vcombine.high %v7783_v50, %v3365_v33  ;;  %v4354_v5 = vcombine.low %v7619_v20, %v3367_v57 }
 0x28f   : > { %3207 = vst.msk [vmem:[%s6840_s11 + $0xb4] sm:$0xf] %vm3161_vm1, %v6300_v55  ;;  %3223 = vst.msk [vmem:[%s6840_s11 + $0xf4] sm:$0xf] %vm3161_vm1, %v6316_v28  ;;  %v4355_v44 = vcombine.high %v7619_v20, %v3367_v57  ;;  %v4242_v52 = vrot.slane %v4234_v25, %v6778_v61  ;;  %v4249_v58 = vrot.slane %v4235_v7, %v6778_v61 }
 0x290   : > { %v4258_v12 = vrot.slane %v4250_v46, %v6778_v61  ;;  %v4265_v59 = vrot.slane %v4251_v63, %v6778_v61  ;;  %v4294_v17 = vrot.slane %v4286_v24, %v6774_v54  ;;  %v4301_v39 = vrot.slane %v4287_v4, %v6774_v54 }
 0x291   : > { %v7840_v32 = vrot.slane %v4354_v5, %v6774_v54  ;;  %v7843_v50 = vrot.slane %v4355_v44, %v6774_v54  ;;  %v5290_v14 = vcombine.low %v4242_v52, %v4249_v58  ;;  %v6178_v20 = vcombine.high %v4242_v52, %v4249_v58 }
 0x292   : > { %v5306_v19 = vcombine.low %v4258_v12, %v4265_v59  ;;  %v6179_v47 = vcombine.high %v4258_v12, %v4265_v59  ;;  %v4302_v8 = vcombine.low %v4278_v18, %v4294_v17  ;;  %v4303_v40 = vcombine.high %v4278_v18, %v4294_v17 }
 0x293   : > { %v4318_v56 = vcombine.low %v4285_v3, %v4301_v39  ;;  %v4319_v62 = vcombine.high %v4285_v3, %v4301_v39  ;;  %v5297_v16 = vrot.slane %v5290_v14, %v6774_v54  ;;  %v5305_v2 = vrot.slane %v6178_v20, %v6774_v54 }
 0x294   : > { %v5313_v29 = vrot.slane %v5306_v19, %v6774_v54  ;;  %v5321_v51 = vrot.slane %v6179_v47, %v6774_v54  ;;  %v4310_v15 = vrot.slane %v4302_v8, %v6778_v61  ;;  %v4317_v0 = vrot.slane %v4303_v40, %v6778_v61  ;;  %v3369_v40 = vpop.permute.xlu1 %3368 }
 0x295   : > { %v4326_v38 = vrot.slane %v4318_v56, %v6778_v61  ;;  %v4333_v13 = vrot.slane %v4319_v62, %v6778_v61  ;;  %v5322_v45 = vcombine.low %v5297_v16, %v5305_v2  ;;  %v5323_v31 = vcombine.high %v5297_v16, %v5305_v2 }
 0x296   : > { %v5338_v6 = vcombine.low %v5313_v29, %v5321_v51  ;;  %v5339_v49 = vcombine.high %v5313_v29, %v5321_v51  ;;  %v5358_v22 = vcombine.low %v4310_v15, %v4317_v0  ;;  %v6180_v41 = vcombine.high %v4310_v15, %v4317_v0 }
 0x297   : > { %v5374_v30 = vcombine.low %v4326_v38, %v4333_v13  ;;  %v6181_v60 = vcombine.high %v4326_v38, %v4333_v13  ;;  %v5330_v53 = vrot.slane %v5322_v45, %v6778_v61  ;;  %v5337_v11 = vrot.slane %v5323_v31, %v6778_v61 }
 0x298   : > { %v5346_v21 = vrot.slane %v5338_v6, %v6778_v61  ;;  %v5353_v48 = vrot.slane %v5339_v49, %v6778_v61  ;;  %v5365_v35 = vrot.slane %v5358_v22, %v6774_v54  ;;  %v5373_v18 = vrot.slane %v6180_v41, %v6774_v54 }
 0x299   : > { %v5381_v3 = vrot.slane %v5374_v30, %v6774_v54  ;;  %v5389_v10 = vrot.slane %v6181_v60, %v6774_v54  ;;  %v4370_v58 = vcombine.low %v7726_v26, %v7840_v32  ;;  %v4371_v12 = vcombine.high %v7726_v26, %v7840_v32 }
 0x29a   : > { %v5354_v43 = vcombine.low %v5330_v53, %v5346_v21  ;;  %v5355_v33 = vcombine.high %v5330_v53, %v5346_v21  ;;  %v5356_v57 = vcombine.low %v5337_v11, %v5353_v48  ;;  %v5357_v37 = vcombine.high %v5337_v11, %v5353_v48 }
 0x29b   : > { %v5390_v23 = vcombine.low %v5365_v35, %v5373_v18  ;;  %v5391_v55 = vcombine.high %v5365_v35, %v5373_v18  ;;  %v5406_v28 = vcombine.low %v5381_v3, %v5389_v10  ;;  %v5407_v25 = vcombine.high %v5381_v3, %v5389_v10 }
 0x29c   : > { %v6331_v7 = vpack.c.bf16 %v5354_v43, %v5354_v43  ;;  %v6347_v46 = vpack.c.bf16 %v5355_v33, %v5355_v33  ;;  %v6363_v63 = vpack.c.bf16 %v5356_v57, %v5356_v57  ;;  %v6379_v24 = vpack.c.bf16 %v5357_v37, %v5357_v37 }
 0x29d   : > { %v5398_v4 = vrot.slane %v5390_v23, %v6778_v61  ;;  %v5405_v5 = vrot.slane %v5391_v55, %v6778_v61  ;;  %v5414_v44 = vrot.slane %v5406_v28, %v6778_v61  ;;  %v5421_v52 = vrot.slane %v5407_v25, %v6778_v61 }
 0x29e   : > { %5830 = vst.msk [vmem:[%s6933_s14 + $0x30] sm:$0xf] %vm3161_vm1, %v6331_v7  ;;  %5846 = vst.msk [vmem:[%s6933_s14 + $0x70] sm:$0xf] %vm3161_vm1, %v6347_v46  ;;  %v4386_v59 = vcombine.low %v7729_v36, %v7843_v50  ;;  %v4387_v17 = vcombine.high %v7729_v36, %v7843_v50  ;;  %v4378_v47 = vrot.slane %v4370_v58, %v6778_v61 }
 0x29f   : > { %5862 = vst.msk [vmem:[%s6933_s14 + $0xb0] sm:$0xf] %vm3161_vm1, %v6363_v63  ;;  %5878 = vst.msk [vmem:[%s6933_s14 + $0xf0] sm:$0xf] %vm3161_vm1, %v6379_v24  ;;  %v5422_v39 = vcombine.low %v5398_v4, %v5414_v44  ;;  %v5423_v14 = vcombine.high %v5398_v4, %v5414_v44  ;;  %v5424_v20 = vcombine.low %v5405_v5, %v5421_v52 }
 0x2a0   : > { %v5425_v19 = vcombine.high %v5405_v5, %v5421_v52  ;;  %v4385_v8 = vrot.slane %v4371_v12, %v6778_v61  ;;  %v4394_v26 = vrot.slane %v4386_v59, %v6778_v61  ;;  %v4401_v32 = vrot.slane %v4387_v17, %v6778_v61 }
 0x2a1   : > { %v6332_v56 = vpack.c.bf16 %v5422_v39, %v5422_v39  ;;  %v6348_v62 = vpack.c.bf16 %v5423_v14, %v5423_v14  ;;  %v6364_v36 = vpack.c.bf16 %v5424_v20, %v5424_v20  ;;  %v4422_v15 = vcombine.low %v7663_v34, %v3369_v40 }
 0x2a2   : > { %v6380_v50 = vpack.c.bf16 %v5425_v19, %v5425_v19  ;;  %v5426_v16 = vcombine.low %v4378_v47, %v4385_v8  ;;  %v6182_v2 = vcombine.high %v4378_v47, %v4385_v8  ;;  %v5442_v29 = vcombine.low %v4394_v26, %v4401_v32 }
 0x2a3   : > { %v6183_v51 = vcombine.high %v4394_v26, %v4401_v32  ;;  %5831 = vst.msk [vmem:[%s6933_s14 + $0x34] sm:$0xf] %vm3161_vm1, %v6332_v56  ;;  %5847 = vst.msk [vmem:[%s6933_s14 + $0x74] sm:$0xf] %vm3161_vm1, %v6348_v62  ;;  %v4423_v0 = vcombine.high %v7663_v34, %v3369_v40  ;;  %v4414_v6 = vrot.slane %v4406_v9, %v6774_v54 }
 0x2a4   : > { %5863 = vst.msk [vmem:[%s6933_s14 + $0xb4] sm:$0xf] %vm3161_vm1, %v6364_v36  ;;  %5879 = vst.msk [vmem:[%s6933_s14 + $0xf4] sm:$0xf] %vm3161_vm1, %v6380_v50  ;;  %v5433_v38 = vrot.slane %v5426_v16, %v6774_v54  ;;  %v5441_v13 = vrot.slane %v6182_v2, %v6774_v54  ;;  %v5449_v45 = vrot.slane %v5442_v29, %v6774_v54 }
 0x2a5   : > { %v5457_v31 = vrot.slane %v6183_v51, %v6774_v54  ;;  %v4421_v49 = vrot.slane %v4407_v1, %v6774_v54  ;;  %v4430_v34 = vrot.slane %v4422_v15, %v6774_v54  ;;  %v4437_v22 = vrot.slane %v4423_v0, %v6774_v54 }
 0x2a6   : > { %v5458_v41 = vcombine.low %v5433_v38, %v5441_v13  ;;  %v5459_v30 = vcombine.high %v5433_v38, %v5441_v13 }
 0x2a7   : > { %v5474_v60 = vcombine.low %v5449_v45, %v5457_v31  ;;  %v5475_v53 = vcombine.high %v5449_v45, %v5457_v31  ;;  %v4438_v11 = vcombine.low %v4414_v6, %v4430_v34  ;;  %v4439_v21 = vcombine.high %v4414_v6, %v4430_v34 }
 0x2a8   : > { %v4454_v48 = vcombine.low %v4421_v49, %v4437_v22  ;;  %v4455_v35 = vcombine.high %v4421_v49, %v4437_v22  ;;  %v5466_v18 = vrot.slane %v5458_v41, %v6778_v61  ;;  %v5473_v9 = vrot.slane %v5459_v30, %v6778_v61 }
 0x2a9   : > { %v5482_v3 = vrot.slane %v5474_v60, %v6778_v61  ;;  %v5489_v42 = vrot.slane %v5475_v53, %v6778_v61  ;;  %v4446_v27 = vrot.slane %v4438_v11, %v6778_v61  ;;  %v4453_v1 = vrot.slane %v4439_v21, %v6778_v61 }
 0x2aa   : > { %v4462_v10 = vrot.slane %v4454_v48, %v6778_v61  ;;  %v4469_v43 = vrot.slane %v4455_v35, %v6778_v61 }
 0x2ab   : > { %v5490_v33 = vcombine.low %v5466_v18, %v5482_v3  ;;  %v5491_v57 = vcombine.high %v5466_v18, %v5482_v3  ;;  %v5492_v37 = vcombine.low %v5473_v9, %v5489_v42  ;;  %v5493_v23 = vcombine.high %v5473_v9, %v5489_v42 }
 0x2ac   : > { %v5494_v55 = vcombine.low %v4446_v27, %v4453_v1  ;;  %v6184_v28 = vcombine.high %v4446_v27, %v4453_v1  ;;  %v5510_v25 = vcombine.low %v4462_v10, %v4469_v43  ;;  %v6185_v7 = vcombine.high %v4462_v10, %v4469_v43 }
 0x2ad   : > { %v6333_v46 = vpack.c.bf16 %v5490_v33, %v5490_v33  ;;  %v6349_v63 = vpack.c.bf16 %v5491_v57, %v5491_v57  ;;  %v6365_v24 = vpack.c.bf16 %v5492_v37, %v5492_v37  ;;  %v6381_v4 = vpack.c.bf16 %v5493_v23, %v5493_v23 }
 0x2ae   : > { %v5501_v5 = vrot.slane %v5494_v55, %v6774_v54  ;;  %v5509_v44 = vrot.slane %v6184_v28, %v6774_v54  ;;  %v5517_v52 = vrot.slane %v5510_v25, %v6774_v54  ;;  %v5525_v58 = vrot.slane %v6185_v7, %v6774_v54 }
 0x2af   : > { %5832 = vst.msk [vmem:[%s6933_s14 + $0x38] sm:$0xf] %vm3161_vm1, %v6333_v46  ;;  %5848 = vst.msk [vmem:[%s6933_s14 + $0x78] sm:$0xf] %vm3161_vm1, %v6349_v63 }
 0x2b0   : > { %5864 = vst.msk [vmem:[%s6933_s14 + $0xb8] sm:$0xf] %vm3161_vm1, %v6365_v24  ;;  %5880 = vst.msk [vmem:[%s6933_s14 + $0xf8] sm:$0xf] %vm3161_vm1, %v6381_v4  ;;  %v5526_v12 = vcombine.low %v5501_v5, %v5509_v44  ;;  %v5527_v59 = vcombine.high %v5501_v5, %v5509_v44  ;;  %v5542_v17 = vcombine.low %v5517_v52, %v5525_v58 }
 0x2b1   : > { %v5543_v39 = vcombine.high %v5517_v52, %v5525_v58 }
 0x2b2   : > { %v5534_v14 = vrot.slane %v5526_v12, %v6778_v61  ;;  %v5541_v54 = vrot.slane %v5527_v59, %v6778_v61  ;;  %v5550_v20 = vrot.slane %v5542_v17, %v6778_v61 }
 0x2b3   : > { %v5557_v19 = vrot.slane %v5543_v39, %v6778_v61 }
 0x2b4   : > { %v5558_v47 = vcombine.low %v5534_v14, %v5550_v20  ;;  %v5559_v8 = vcombine.high %v5534_v14, %v5550_v20 }
 0x2b5   : > { %v5560_v26 = vcombine.low %v5541_v54, %v5557_v19  ;;  %v5561_v32 = vcombine.high %v5541_v54, %v5557_v19 }
 0x2b6   : > { %v6334_v40 = vpack.c.bf16 %v5558_v47, %v5558_v47  ;;  %v6350_v56 = vpack.c.bf16 %v5559_v8, %v5559_v8 }
 0x2b7   : > { %v6366_v62 = vpack.c.bf16 %v5560_v26, %v5560_v26  ;;  %v6382_v36 = vpack.c.bf16 %v5561_v32, %v5561_v32 }
 0x2b8   : > { %5833 = vst.msk [vmem:[%s6933_s14 + $0x3c] sm:$0xf] %vm3161_vm1, %v6334_v40  ;;  %5849 = vst.msk [vmem:[%s6933_s14 + $0x7c] sm:$0xf] %vm3161_vm1, %v6350_v56 }
 0x2b9   : > { %5865 = vst.msk [vmem:[%s6933_s14 + $0xbc] sm:$0xf] %vm3161_vm1, %v6366_v62  ;;  %5881 = vst.msk [vmem:[%s6933_s14 + $0xfc] sm:$0xf] %vm3161_vm1, %v6382_v36 }
 0x2ba PF: > { %s15_s17 = sadd.s32 1, %s6506_s17   ;;  %s7955_s15 = smov %s6502_s16 }
 0x2bb   : > { %p12_p5 = scmp.ge.s32.totalorder %s15_s17, 4   ;;  %s7956_s16 = smov %s7958_s18 }
 0x2bd   :  { %14 = sbr.rel (!%p12_p5) target bundleno = 2 (0x2), region = 74 }

</bundles_post_ra>
